<compile_context>
chip_gen: v7x
topology: tpu7x:2x2x1
jax: 0.10.0
libtpu: 0.0.40
codegen_flags: <defaults>
</compile_context>

<pallas_src>
import jax
import jax.numpy as jnp
from jax import lax
from jax.experimental import pallas as pl
from jax.experimental.pallas import tpu as pltpu

OUT_PAD = 128       # lane-dense padded class dim for the head output store
TM_DEFAULT = 256    # row tile for the conv GEMMs (>= MXU height)
BN_EPS = 1e-3       # InceptionResNetV2 BasicConv2d uses eps=0.001


def _round_up(x, m):
    return (x + m - 1) // m * m


# -----------------------------------------------------------------------------
# Kernel 1: fused GEMM + folded BatchNorm + ReLU:  y = relu((x @ w) * scale + shift)
# -----------------------------------------------------------------------------
def _gemm_bn_relu_kernel(x_ref, w_ref, scale_ref, shift_ref, o_ref):
    acc = jnp.dot(x_ref[...], w_ref[...], preferred_element_type=jnp.float32)
    y = acc * scale_ref[...] + shift_ref[...]
    o_ref[...] = jnp.maximum(y, 0.0)


def _gemm_bn_relu(x2d, w, scale, shift, *, tm=TM_DEFAULT):
    """x2d: [M, K] f32; w: [K, N] f32 (compact); scale/shift: [1, N]. Returns [M, N] f32."""
    m, k = x2d.shape
    n = w.shape[1]
    tm = min(tm, _round_up(m, 8))
    m_pad = _round_up(m, tm)
    if m_pad != m:
        x2d = jnp.pad(x2d, ((0, m_pad - m), (0, 0)))
    out = pl.pallas_call(
        _gemm_bn_relu_kernel,
        out_shape=jax.ShapeDtypeStruct((m_pad, n), jnp.float32),
        grid_spec=pltpu.PrefetchScalarGridSpec(
            num_scalar_prefetch=0,
            grid=(m_pad // tm,),
            in_specs=[
                pl.BlockSpec((tm, k), lambda i: (i, 0)),    # row-tiled activations
                pl.BlockSpec((k, n), lambda i: (0, 0)),     # compact weight, VMEM-resident
                pl.BlockSpec((1, n), lambda i: (0, 0)),     # folded BN scale
                pl.BlockSpec((1, n), lambda i: (0, 0)),     # folded BN shift
            ],
            out_specs=pl.BlockSpec((tm, n), lambda i: (i, 0)),
        ),
        compiler_params=pltpu.CompilerParams(dimension_semantics=("parallel",)),
    )(x2d, w, scale, shift)
    return out[:m]


def _extract_patches_3x3(x_nhwc, stride, padding):
    """Layout plumbing (XLA): [B,H,W,C] -> ([B,OH,OW,9*C], OH, OW); tap order (kh, kw, c)."""
    if padding:
        x_nhwc = jnp.pad(x_nhwc, ((0, 0), (padding, padding), (padding, padding), (0, 0)))
    _, h, w, _ = x_nhwc.shape
    oh = (h - 3) // stride + 1
    ow = (w - 3) // stride + 1
    taps = []
    for kh in range(3):
        for kw in range(3):
            taps.append(x_nhwc[:, kh:kh + (oh - 1) * stride + 1:stride,
                                  kw:kw + (ow - 1) * stride + 1:stride, :])
    return jnp.concatenate(taps, axis=-1), oh, ow


def _conv3x3_bn_relu(x_nhwc, w_hwio, gamma, beta, mean, var, *, stride, padding):
    """3x3 conv (no bias) + eval-mode BatchNorm + ReLU, all FLOPs in the Pallas GEMM."""
    b = x_nhwc.shape[0]
    cin = x_nhwc.shape[-1]
    cout = w_hwio.shape[-1]
    patches, oh, ow = _extract_patches_3x3(x_nhwc, stride, padding)
    x2d = patches.reshape(b * oh * ow, 9 * cin)
    w2d = w_hwio.reshape(9 * cin, cout)            # compact [9*Cin, Cout] in HBM
    inv = 1.0 / jnp.sqrt(var + BN_EPS)             # fold BN into per-channel scale/shift
    scale = (gamma * inv).reshape(1, cout)
    shift = (beta - mean * gamma * inv).reshape(1, cout)
    y2d = _gemm_bn_relu(x2d, w2d, scale, shift)
    return y2d.reshape(b, oh, ow, cout)


# -----------------------------------------------------------------------------
# Kernel 2: fused global average pool + last_linear + Sigmoid (lane-dense output)
# -----------------------------------------------------------------------------
def _head_kernel(f_ref, w_ref, b_ref, o_ref):
    # f_ref: [TB, C, S] (spatial on the lane axis), w_ref: [C, NC] compact, b_ref: [1, NC]
    pooled = jnp.mean(f_ref[...], axis=-1)                                   # [TB, C]
    logits = jnp.dot(pooled, w_ref[...], preferred_element_type=jnp.float32) + b_ref[...]
    probs = 1.0 / (1.0 + jnp.exp(-logits))                                   # Sigmoid
    tb, nc = probs.shape
    if nc < OUT_PAD:   # lane-dense 128-wide store; padded classes are written as 0
        probs = jnp.concatenate([probs, jnp.zeros((tb, OUT_PAD - nc), jnp.float32)], axis=-1)
    o_ref[...] = probs


def _avgpool_linear_sigmoid(feats_bcs, w, bias, *, tb=8):
    """feats_bcs: [B, C, S] f32; w: [C, NC] compact; bias: [NC]. Returns [B, NC] probs."""
    b, c, s = feats_bcs.shape
    nc = w.shape[1]
    assert nc <= OUT_PAD
    tb = min(tb, _round_up(b, 8))
    b_pad = _round_up(b, tb)
    if b_pad != b:
        feats_bcs = jnp.pad(feats_bcs, ((0, b_pad - b), (0, 0), (0, 0)))
    out = pl.pallas_call(
        _head_kernel,
        out_shape=jax.ShapeDtypeStruct((b_pad, OUT_PAD), jnp.float32),
        grid_spec=pltpu.PrefetchScalarGridSpec(
            num_scalar_prefetch=0,
            grid=(b_pad // tb,),
            in_specs=[
                pl.BlockSpec((tb, c, s), lambda i: (i, 0, 0)),   # batch-tiled features
                pl.BlockSpec((c, nc), lambda i: (0, 0)),         # compact classifier weight
                pl.BlockSpec((1, nc), lambda i: (0, 0)),         # bias
            ],
            out_specs=pl.BlockSpec((tb, OUT_PAD), lambda i: (i, 0)),
        ),
        compiler_params=pltpu.CompilerParams(dimension_semantics=("parallel",)),
    )(feats_bcs, w, bias.reshape(1, nc))
    return out[:b, :nc]


# -----------------------------------------------------------------------------
# Full forward (adapted stem -> [TODO trunk] -> avgpool + last_linear -> sigmoid)
# -----------------------------------------------------------------------------
@jax.jit
def adapted_inception_forward(params, x_nchw):
    p = params
    x = jnp.transpose(x_nchw, (0, 2, 3, 1))        # NCHW -> NHWC (layout plumbing)
    x = _conv3x3_bn_relu(x, p["w1"], p["g1"], p["b1"], p["m1"], p["v1"], stride=2, padding=0)
    x = _conv3x3_bn_relu(x, p["w2"], p["g2"], p["b2"], p["m2"], p["v2"], stride=1, padding=0)
    x = _conv3x3_bn_relu(x, p["w3"], p["g3"], p["b3"], p["m3"], p["v3"], stride=1, padding=1)
    # TODO(synk): InceptionResNetV2 trunk (maxpool_3a ... conv2d_7b) not implemented here.
    b, oh, ow, c = x.shape
    feats = jnp.transpose(x, (0, 3, 1, 2)).reshape(b, c, oh * ow)   # [B, C, S]
    return _avgpool_linear_sigmoid(feats, p["wfc"], p["bfc"])


def init_params(key, planes=4, start_width=32, num_classes=16):
    ks = jax.random.split(key, 8)

    def conv_w(k, cin, cout):
        bound = 1.0 / jnp.sqrt(jnp.float32(9 * cin))    # torch kaiming_uniform(a=sqrt(5))
        return jax.random.uniform(k, (3, 3, cin, cout), jnp.float32, -bound, bound)

    def bn(k, c):
        kg, kb, km, kv = jax.random.split(k, 4)
        gamma = jax.random.uniform(kg, (c,), jnp.float32, 0.5, 1.5)
        beta = 0.1 * jax.random.normal(kb, (c,), jnp.float32)
        mean = 0.1 * jax.random.normal(km, (c,), jnp.float32)
        var = jax.random.uniform(kv, (c,), jnp.float32, 0.5, 1.5)
        return gamma, beta, mean, var

    w1 = conv_w(ks[0], planes, start_width)
    g1, b1, m1, v1 = bn(ks[1], start_width)
    w2 = conv_w(ks[2], start_width, start_width)
    g2, b2, m2, v2 = bn(ks[3], start_width)
    w3 = conv_w(ks[4], start_width, 64)
    g3, b3, m3, v3 = bn(ks[5], 64)
    bound = 1.0 / jnp.sqrt(jnp.float32(64))
    wfc = jax.random.uniform(ks[6], (64, num_classes), jnp.float32, -bound, bound)
    bfc = jax.random.uniform(ks[7], (num_classes,), jnp.float32, -bound, bound)
    return dict(w1=w1, g1=g1, b1=b1, m1=m1, v1=v1,
                w2=w2, g2=b2 * 0 + g2, b2=b2, m2=m2, v2=v2,
                w3=w3, g3=g3, b3=b3, m3=m3, v3=v3,
                wfc=wfc, bfc=bfc)


def reference_forward(params, x_nchw):
    """Pure-JAX (XLA) reference for the implemented sub-graph."""
    p = params
    x = jnp.transpose(x_nchw, (0, 2, 3, 1))

    def conv_bn_relu(x, w, g, b, m, v, stride, padding):
        y = lax.conv_general_dilated(
            x, w, window_strides=(stride, stride),
            padding=[(padding, padding), (padding, padding)],
            dimension_numbers=("NHWC", "HWIO", "NHWC"),
            precision=lax.Precision.HIGHEST)
        y = (y - m) / jnp.sqrt(v + BN_EPS) * g + b
        return jnp.maximum(y, 0.0)

    x = conv_bn_relu(x, p["w1"], p["g1"], p["b1"], p["m1"], p["v1"], 2, 0)
    x = conv_bn_relu(x, p["w2"], p["g2"], p["b2"], p["m2"], p["v2"], 1, 0)
    x = conv_bn_relu(x, p["w3"], p["g3"], p["b3"], p["m3"], p["v3"], 1, 1)
    pooled = jnp.mean(x, axis=(1, 2))
    logits = pooled @ p["wfc"] + p["bfc"]
    return jax.nn.sigmoid(logits)


if __name__ == "__main__":
    B, planes, H, W = 2, 4, 33, 33          # input_size = (4, 33, 33)
    start_width, num_classes = 32, 16

    key = jax.random.PRNGKey(0)
    kx, kp = jax.random.split(key)
    x = jax.random.normal(kx, (B, planes, H, W), jnp.float32)
    params = init_params(kp, planes=planes, start_width=start_width, num_classes=num_classes)

    out = adapted_inception_forward(params, x)
    out = jax.block_until_ready(out)

    assert out.shape == (B, num_classes), out.shape
    assert bool(jnp.all(jnp.isfinite(out)))
    assert bool(jnp.all((out >= 0.0) & (out <= 1.0)))

    ref = reference_forward(params, x)
    assert bool(jnp.allclose(out, ref, atol=1e-3, rtol=1e-3)), (out, ref)

    print("KERNEL_OK")
</pallas_src>

<mosaic_0001>
module attributes {stable_mosaic.version = 11 : i64} {
  func.func @_gemm_bn_relu_kernel(%arg0: i32, %arg1: memref<256x36xf32, #tpu.memory_space<vmem>>, %arg2: memref<36x32xf32, #tpu.memory_space<vmem>>, %arg3: memref<1x32xf32, #tpu.memory_space<vmem>>, %arg4: memref<1x32xf32, #tpu.memory_space<vmem>>, %arg5: memref<256x32xf32, #tpu.memory_space<vmem>>) attributes {dimension_semantics = [#tpu.dimension_semantics<parallel>], iteration_bounds = array<i64: 2>, scalar_prefetch = 0 : i64, scratch_operands = 0 : i64, tpu.core_type = #tpu.core_type<tc>, window_params = [{transform_indices = @transform_0, window_bounds = array<i64: 256, 36>}, {pipeline_mode = #tpu.pipeline_mode<synchronous>, transform_indices = @transform_1, window_bounds = array<i64: 36, 32>}, {pipeline_mode = #tpu.pipeline_mode<synchronous>, transform_indices = @transform_2, window_bounds = array<i64: 1, 32>}, {pipeline_mode = #tpu.pipeline_mode<synchronous>, transform_indices = @transform_3, window_bounds = array<i64: 1, 32>}, {transform_indices = @transform_4, window_bounds = array<i64: 256, 32>}]} {
    %c0 = arith.constant 0 : index
    %c0_0 = arith.constant 0 : index
    %0 = vector.load %arg1[%c0, %c0_0] : memref<256x36xf32, #tpu.memory_space<vmem>>, vector<256x36xf32>
    %c0_1 = arith.constant 0 : index
    %c0_2 = arith.constant 0 : index
    %1 = vector.load %arg2[%c0_1, %c0_2] : memref<36x32xf32, #tpu.memory_space<vmem>>, vector<36x32xf32>
    %cst = arith.constant dense<0.000000e+00> : vector<256x32xf32>
    %2 = tpu.matmul %0, %1, %cst {dimension_numbers = #tpu.dot_dimension_numbers<[1], [0], [0], [1], [0, 0, 1, 1], [], []>} : vector<256x36xf32>, vector<36x32xf32>, vector<256x32xf32> -> vector<256x32xf32>
    %c0_3 = arith.constant 0 : index
    %c0_4 = arith.constant 0 : index
    %3 = vector.load %arg3[%c0_3, %c0_4] : memref<1x32xf32, #tpu.memory_space<vmem>>, vector<1x32xf32>
    %4 = vector.broadcast %3 : vector<1x32xf32> to vector<256x32xf32>
    %5 = arith.mulf %2, %4 : vector<256x32xf32>
    %c0_5 = arith.constant 0 : index
    %c0_6 = arith.constant 0 : index
    %6 = vector.load %arg4[%c0_5, %c0_6] : memref<1x32xf32, #tpu.memory_space<vmem>>, vector<1x32xf32>
    %7 = vector.broadcast %6 : vector<1x32xf32> to vector<256x32xf32>
    %8 = arith.addf %5, %7 : vector<256x32xf32>
    %cst_7 = arith.constant 0.000000e+00 : f32
    %9 = vector.broadcast %cst_7 : f32 to vector<256x32xf32>
    %10 = arith.maximumf %8, %9 : vector<256x32xf32>
    %c0_8 = arith.constant 0 : index
    %c0_9 = arith.constant 0 : index
    %11 = vector.load %arg5[%c0_8, %c0_9] : memref<256x32xf32, #tpu.memory_space<vmem>>, vector<256x32xf32>
    tpu.vector_store %arg5[%c0_8, %c0_9], %10 {strides = array<i32>} : memref<256x32xf32, #tpu.memory_space<vmem>>, vector<256x32xf32>,
    return
  }
  func.func @transform_0(%arg0: i32) -> (i32, i32) {
    %c0_i32 = arith.constant 0 : i32
    %c0_i32_0 = arith.constant 0 : i32
    return %arg0, %c0_i32 : i32, i32
  }
  func.func @transform_1(%arg0: i32) -> (i32, i32) {
    %c0_i32 = arith.constant 0 : i32
    %c0_i32_0 = arith.constant 0 : i32
    %c0_i32_1 = arith.constant 0 : i32
    return %c0_i32, %c0_i32_0 : i32, i32
  }
  func.func @transform_2(%arg0: i32) -> (i32, i32) {
    %c0_i32 = arith.constant 0 : i32
    %c0_i32_0 = arith.constant 0 : i32
    %c0_i32_1 = arith.constant 0 : i32
    return %c0_i32, %c0_i32_0 : i32, i32
  }
  func.func @transform_3(%arg0: i32) -> (i32, i32) {
    %c0_i32 = arith.constant 0 : i32
    %c0_i32_0 = arith.constant 0 : i32
    %c0_i32_1 = arith.constant 0 : i32
    return %c0_i32, %c0_i32_0 : i32, i32
  }
  func.func @transform_4(%arg0: i32) -> (i32, i32) {
    %c0_i32 = arith.constant 0 : i32
    %c0_i32_0 = arith.constant 0 : i32
    return %arg0, %c0_i32 : i32, i32
  }
}

module attributes {stable_mosaic.version = 11 : i64} {
  func.func @_gemm_bn_relu_kernel(%arg0: i32, %arg1: memref<256x288xf32, #tpu.memory_space<vmem>>, %arg2: memref<288x32xf32, #tpu.memory_space<vmem>>, %arg3: memref<1x32xf32, #tpu.memory_space<vmem>>, %arg4: memref<1x32xf32, #tpu.memory_space<vmem>>, %arg5: memref<256x32xf32, #tpu.memory_space<vmem>>) attributes {dimension_semantics = [#tpu.dimension_semantics<parallel>], iteration_bounds = array<i64: 2>, scalar_prefetch = 0 : i64, scratch_operands = 0 : i64, tpu.core_type = #tpu.core_type<tc>, window_params = [{transform_indices = @transform_0, window_bounds = array<i64: 256, 288>}, {pipeline_mode = #tpu.pipeline_mode<synchronous>, transform_indices = @transform_1, window_bounds = array<i64: 288, 32>}, {pipeline_mode = #tpu.pipeline_mode<synchronous>, transform_indices = @transform_2, window_bounds = array<i64: 1, 32>}, {pipeline_mode = #tpu.pipeline_mode<synchronous>, transform_indices = @transform_3, window_bounds = array<i64: 1, 32>}, {transform_indices = @transform_4, window_bounds = array<i64: 256, 32>}]} {
    %c0 = arith.constant 0 : index
    %c0_0 = arith.constant 0 : index
    %0 = vector.load %arg1[%c0, %c0_0] : memref<256x288xf32, #tpu.memory_space<vmem>>, vector<256x288xf32>
    %c0_1 = arith.constant 0 : index
    %c0_2 = arith.constant 0 : index
    %1 = vector.load %arg2[%c0_1, %c0_2] : memref<288x32xf32, #tpu.memory_space<vmem>>, vector<288x32xf32>
    %cst = arith.constant dense<0.000000e+00> : vector<256x32xf32>
    %2 = tpu.matmul %0, %1, %cst {dimension_numbers = #tpu.dot_dimension_numbers<[1], [0], [0], [1], [0, 0, 1, 1], [], []>} : vector<256x288xf32>, vector<288x32xf32>, vector<256x32xf32> -> vector<256x32xf32>
    %c0_3 = arith.constant 0 : index
    %c0_4 = arith.constant 0 : index
    %3 = vector.load %arg3[%c0_3, %c0_4] : memref<1x32xf32, #tpu.memory_space<vmem>>, vector<1x32xf32>
    %4 = vector.broadcast %3 : vector<1x32xf32> to vector<256x32xf32>
    %5 = arith.mulf %2, %4 : vector<256x32xf32>
    %c0_5 = arith.constant 0 : index
    %c0_6 = arith.constant 0 : index
    %6 = vector.load %arg4[%c0_5, %c0_6] : memref<1x32xf32, #tpu.memory_space<vmem>>, vector<1x32xf32>
    %7 = vector.broadcast %6 : vector<1x32xf32> to vector<256x32xf32>
    %8 = arith.addf %5, %7 : vector<256x32xf32>
    %cst_7 = arith.constant 0.000000e+00 : f32
    %9 = vector.broadcast %cst_7 : f32 to vector<256x32xf32>
    %10 = arith.maximumf %8, %9 : vector<256x32xf32>
    %c0_8 = arith.constant 0 : index
    %c0_9 = arith.constant 0 : index
    %11 = vector.load %arg5[%c0_8, %c0_9] : memref<256x32xf32, #tpu.memory_space<vmem>>, vector<256x32xf32>
    tpu.vector_store %arg5[%c0_8, %c0_9], %10 {strides = array<i32>} : memref<256x32xf32, #tpu.memory_space<vmem>>, vector<256x32xf32>,
    return
  }
  func.func @transform_0(%arg0: i32) -> (i32, i32) {
    %c0_i32 = arith.constant 0 : i32
    %c0_i32_0 = arith.constant 0 : i32
    return %arg0, %c0_i32 : i32, i32
  }
  func.func @transform_1(%arg0: i32) -> (i32, i32) {
    %c0_i32 = arith.constant 0 : i32
    %c0_i32_0 = arith.constant 0 : i32
    %c0_i32_1 = arith.constant 0 : i32
    return %c0_i32, %c0_i32_0 : i32, i32
  }
  func.func @transform_2(%arg0: i32) -> (i32, i32) {
    %c0_i32 = arith.constant 0 : i32
    %c0_i32_0 = arith.constant 0 : i32
    %c0_i32_1 = arith.constant 0 : i32
    return %c0_i32, %c0_i32_0 : i32, i32
  }
  func.func @transform_3(%arg0: i32) -> (i32, i32) {
    %c0_i32 = arith.constant 0 : i32
    %c0_i32_0 = arith.constant 0 : i32
    %c0_i32_1 = arith.constant 0 : i32
    return %c0_i32, %c0_i32_0 : i32, i32
  }
  func.func @transform_4(%arg0: i32) -> (i32, i32) {
    %c0_i32 = arith.constant 0 : i32
    %c0_i32_0 = arith.constant 0 : i32
    return %arg0, %c0_i32 : i32, i32
  }
}

module attributes {stable_mosaic.version = 11 : i64} {
  func.func @_gemm_bn_relu_kernel(%arg0: i32, %arg1: memref<256x288xf32, #tpu.memory_space<vmem>>, %arg2: memref<288x64xf32, #tpu.memory_space<vmem>>, %arg3: memref<1x64xf32, #tpu.memory_space<vmem>>, %arg4: memref<1x64xf32, #tpu.memory_space<vmem>>, %arg5: memref<256x64xf32, #tpu.memory_space<vmem>>) attributes {dimension_semantics = [#tpu.dimension_semantics<parallel>], iteration_bounds = array<i64: 2>, scalar_prefetch = 0 : i64, scratch_operands = 0 : i64, tpu.core_type = #tpu.core_type<tc>, window_params = [{transform_indices = @transform_0, window_bounds = array<i64: 256, 288>}, {pipeline_mode = #tpu.pipeline_mode<synchronous>, transform_indices = @transform_1, window_bounds = array<i64: 288, 64>}, {pipeline_mode = #tpu.pipeline_mode<synchronous>, transform_indices = @transform_2, window_bounds = array<i64: 1, 64>}, {pipeline_mode = #tpu.pipeline_mode<synchronous>, transform_indices = @transform_3, window_bounds = array<i64: 1, 64>}, {transform_indices = @transform_4, window_bounds = array<i64: 256, 64>}]} {
    %c0 = arith.constant 0 : index
    %c0_0 = arith.constant 0 : index
    %0 = vector.load %arg1[%c0, %c0_0] : memref<256x288xf32, #tpu.memory_space<vmem>>, vector<256x288xf32>
    %c0_1 = arith.constant 0 : index
    %c0_2 = arith.constant 0 : index
    %1 = vector.load %arg2[%c0_1, %c0_2] : memref<288x64xf32, #tpu.memory_space<vmem>>, vector<288x64xf32>
    %cst = arith.constant dense<0.000000e+00> : vector<256x64xf32>
    %2 = tpu.matmul %0, %1, %cst {dimension_numbers = #tpu.dot_dimension_numbers<[1], [0], [0], [1], [0, 0, 1, 1], [], []>} : vector<256x288xf32>, vector<288x64xf32>, vector<256x64xf32> -> vector<256x64xf32>
    %c0_3 = arith.constant 0 : index
    %c0_4 = arith.constant 0 : index
    %3 = vector.load %arg3[%c0_3, %c0_4] : memref<1x64xf32, #tpu.memory_space<vmem>>, vector<1x64xf32>
    %4 = vector.broadcast %3 : vector<1x64xf32> to vector<256x64xf32>
    %5 = arith.mulf %2, %4 : vector<256x64xf32>
    %c0_5 = arith.constant 0 : index
    %c0_6 = arith.constant 0 : index
    %6 = vector.load %arg4[%c0_5, %c0_6] : memref<1x64xf32, #tpu.memory_space<vmem>>, vector<1x64xf32>
    %7 = vector.broadcast %6 : vector<1x64xf32> to vector<256x64xf32>
    %8 = arith.addf %5, %7 : vector<256x64xf32>
    %cst_7 = arith.constant 0.000000e+00 : f32
    %9 = vector.broadcast %cst_7 : f32 to vector<256x64xf32>
    %10 = arith.maximumf %8, %9 : vector<256x64xf32>
    %c0_8 = arith.constant 0 : index
    %c0_9 = arith.constant 0 : index
    %11 = vector.load %arg5[%c0_8, %c0_9] : memref<256x64xf32, #tpu.memory_space<vmem>>, vector<256x64xf32>
    tpu.vector_store %arg5[%c0_8, %c0_9], %10 {strides = array<i32>} : memref<256x64xf32, #tpu.memory_space<vmem>>, vector<256x64xf32>,
    return
  }
  func.func @transform_0(%arg0: i32) -> (i32, i32) {
    %c0_i32 = arith.constant 0 : i32
    %c0_i32_0 = arith.constant 0 : i32
    return %arg0, %c0_i32 : i32, i32
  }
  func.func @transform_1(%arg0: i32) -> (i32, i32) {
    %c0_i32 = arith.constant 0 : i32
    %c0_i32_0 = arith.constant 0 : i32
    %c0_i32_1 = arith.constant 0 : i32
    return %c0_i32, %c0_i32_0 : i32, i32
  }
  func.func @transform_2(%arg0: i32) -> (i32, i32) {
    %c0_i32 = arith.constant 0 : i32
    %c0_i32_0 = arith.constant 0 : i32
    %c0_i32_1 = arith.constant 0 : i32
    return %c0_i32, %c0_i32_0 : i32, i32
  }
  func.func @transform_3(%arg0: i32) -> (i32, i32) {
    %c0_i32 = arith.constant 0 : i32
    %c0_i32_0 = arith.constant 0 : i32
    %c0_i32_1 = arith.constant 0 : i32
    return %c0_i32, %c0_i32_0 : i32, i32
  }
  func.func @transform_4(%arg0: i32) -> (i32, i32) {
    %c0_i32 = arith.constant 0 : i32
    %c0_i32_0 = arith.constant 0 : i32
    return %arg0, %c0_i32 : i32, i32
  }
}

module attributes {stable_mosaic.version = 11 : i64} {
  func.func @_head_kernel(%arg0: i32, %arg1: memref<8x64x196xf32, #tpu.memory_space<vmem>>, %arg2: memref<64x16xf32, #tpu.memory_space<vmem>>, %arg3: memref<1x16xf32, #tpu.memory_space<vmem>>, %arg4: memref<8x128xf32, #tpu.memory_space<vmem>>) attributes {dimension_semantics = [#tpu.dimension_semantics<parallel>], iteration_bounds = array<i64: 1>, scalar_prefetch = 0 : i64, scratch_operands = 0 : i64, tpu.core_type = #tpu.core_type<tc>, window_params = [{transform_indices = @transform_0, window_bounds = array<i64: 8, 64, 196>}, {pipeline_mode = #tpu.pipeline_mode<synchronous>, transform_indices = @transform_1, window_bounds = array<i64: 64, 16>}, {pipeline_mode = #tpu.pipeline_mode<synchronous>, transform_indices = @transform_2, window_bounds = array<i64: 1, 16>}, {transform_indices = @transform_3, window_bounds = array<i64: 8, 128>}]} {
    %c0 = arith.constant 0 : index
    %c0_0 = arith.constant 0 : index
    %c0_1 = arith.constant 0 : index
    %0 = vector.load %arg1[%c0, %c0_0, %c0_1] : memref<8x64x196xf32, #tpu.memory_space<vmem>>, vector<8x64x196xf32>
    %cst = arith.constant dense<0.000000e+00> : vector<8x64xf32>
    %1 = vector.multi_reduction <add>, %0, %cst [2] : vector<8x64x196xf32> to vector<8x64xf32>
    %cst_2 = arith.constant 1.960000e+02 : f32
    %2 = vector.broadcast %cst_2 : f32 to vector<8x64xf32>
    %3 = arith.divf %1, %2 : vector<8x64xf32>
    %c0_3 = arith.constant 0 : index
    %c0_4 = arith.constant 0 : index
    %4 = vector.load %arg2[%c0_3, %c0_4] : memref<64x16xf32, #tpu.memory_space<vmem>>, vector<64x16xf32>
    %cst_5 = arith.constant dense<0.000000e+00> : vector<8x16xf32>
    %5 = tpu.matmul %3, %4, %cst_5 {dimension_numbers = #tpu.dot_dimension_numbers<[1], [0], [0], [1], [0, 0, 1, 1], [], []>} : vector<8x64xf32>, vector<64x16xf32>, vector<8x16xf32> -> vector<8x16xf32>
    %c0_6 = arith.constant 0 : index
    %c0_7 = arith.constant 0 : index
    %6 = vector.load %arg3[%c0_6, %c0_7] : memref<1x16xf32, #tpu.memory_space<vmem>>, vector<1x16xf32>
    %7 = vector.broadcast %6 : vector<1x16xf32> to vector<8x16xf32>
    %8 = arith.addf %5, %7 : vector<8x16xf32>
    %cst_8 = arith.constant 0.000000e+00 : f32
    %9 = vector.broadcast %cst_8 : f32 to vector<8x16xf32>
    %10 = arith.subf %9, %8 : vector<8x16xf32>
    %11 = math.exp %10 : vector<8x16xf32>
    %cst_9 = arith.constant 1.000000e+00 : f32
    %12 = vector.broadcast %cst_9 : f32 to vector<8x16xf32>
    %13 = arith.addf %12, %11 : vector<8x16xf32>
    %cst_10 = arith.constant 1.000000e+00 : f32
    %14 = vector.broadcast %cst_10 : f32 to vector<8x16xf32>
    %15 = arith.divf %14, %13 : vector<8x16xf32>
    %cst_11 = arith.constant 0.000000e+00 : f32
    %16 = vector.broadcast %cst_11 : f32 to vector<8x112xf32>
    %17 = tpu.concatenate %15, %16 in 1 : vector<8x16xf32>, vector<8x112xf32> -> vector<8x128xf32>
    %c0_12 = arith.constant 0 : index
    %c0_13 = arith.constant 0 : index
    %18 = vector.load %arg4[%c0_12, %c0_13] : memref<8x128xf32, #tpu.memory_space<vmem>>, vector<8x128xf32>
    tpu.vector_store %arg4[%c0_12, %c0_13], %17 {strides = array<i32>} : memref<8x128xf32, #tpu.memory_space<vmem>>, vector<8x128xf32>,
    return
  }
  func.func @transform_0(%arg0: i32) -> (i32, i32, i32) {
    %c0_i32 = arith.constant 0 : i32
    %c0_i32_0 = arith.constant 0 : i32
    %c0_i32_1 = arith.constant 0 : i32
    return %arg0, %c0_i32, %c0_i32_0 : i32, i32, i32
  }
  func.func @transform_1(%arg0: i32) -> (i32, i32) {
    %c0_i32 = arith.constant 0 : i32
    %c0_i32_0 = arith.constant 0 : i32
    %c0_i32_1 = arith.constant 0 : i32
    return %c0_i32, %c0_i32_0 : i32, i32
  }
  func.func @transform_2(%arg0: i32) -> (i32, i32) {
    %c0_i32 = arith.constant 0 : i32
    %c0_i32_0 = arith.constant 0 : i32
    %c0_i32_1 = arith.constant 0 : i32
    return %c0_i32, %c0_i32_0 : i32, i32
  }
  func.func @transform_3(%arg0: i32) -> (i32, i32) {
    %c0_i32 = arith.constant 0 : i32
    %c0_i32_0 = arith.constant 0 : i32
    return %arg0, %c0_i32 : i32, i32
  }
}

</mosaic_0001>

<bundles_post_ra>
// kernel: adapted_inception_forward.4
= control target key start
LH: loop header
LB: loop body
LE: loop exit
PB: predicated region body
PF: predicated region fallthrough
CT: control target
= control target key end

     0   :  { %s959_s15 = smov 0   ;;  %s1208_s0 = inlined_call_operand.vmem [shape: f32[512,36], index: 0, kind: input, shape index: {}]   ;;  %s1209_s1 = inlined_call_operand.vmem [shape: f32[36,32], index: 1, kind: input, shape index: {}]   ;;  %s1210_s2 = inlined_call_operand.vmem [shape: f32[1,32], index: 2, kind: input, shape index: {}]   ;;  %s1211_s3 = inlined_call_operand.vmem [shape: f32[1,32], index: 3, kind: input, shape index: {}]   ;;  %s1212_s4 = inlined_call_operand.vmem [shape: f32[512,32], index: 4, kind: output, shape index: {}]  }
   0x1 LB: > { %s763_s16 = sadd.s32 4294967295, %s932_s15   ;;  %p767_p0 = scmp.ge.s32.totalorder %s932_s15, 1  ;;  %s932_s15 = sphi %s959_s15, %s14_s15  }
   0x2   : > { %p163_p1 = scmp.lt.s32.totalorder %s932_s15, 3 }
   0x4   : > { %p164_p2 = pnand %p767_p0, %p163_p1 }
   0x5   : > { %v233_v0 = vld [vmem:[%s1209_s1] sm:$0xff] (!%p164_p2)  ;;  %v234_v1 = vld [vmem:[%s1209_s1 + $0x8] sm:$0xff] (!%p164_p2)  ;;  %v235_v2 = vld [vmem:[%s1209_s1 + $0x10] sm:$0xff] (!%p164_p2)  ;;  %s768_s23 = sshll.u32 (!%p164_p2), %s763_s16, 5  ;;  %vm335_vm0 = vcmask (!%p164_p2), 1043456   ;;  %vm238_vm1 = vcmask (!%p164_p2), 293888  }
   0x6   : > { %167 = sbr.rel (%p164_p2) target bundleno = 267 (0x10b), region = 36  ;;  %v904_v3 = vpack.c.bf16 (!%p164_p2), %v234_v1, %v233_v0  ;;  %v236_v4 = vld [vmem:[%s1209_s1 + $0x18] sm:$0xff] (!%p164_p2)  ;;  %p190_p3 = scmp.lt.s32.totalorder (!%p164_p2), %s768_s23, 63  ;;  %v237_v6 = vld [vmem:[%s1209_s1 + $0x20] sm:$0xf] (!%p164_p2)  ;;  %vm674_vm2 = vcmask (!%p164_p2), 261120  }
   0x7   : > { %v908_v5 = vpack.c.bf16 (!%p164_p2), %v236_v4, %v235_v2  ;;  %v1063_v39 = vld [vmem:[%s1210_s2] ss:$0 sm:$0xff] (!%p164_p2) }
   0x8   : > { %905 = vmatprep.subr.bf16.mxu0 (!%p164_p2), %v904_v3  ;;  %912 = vmatprep.subr.bf16.mxu1 (!%p164_p2), %v904_v3  ;;  %v1068_v41 = vld [vmem:[%s1211_s3] ss:$0 sm:$0xff] (!%p164_p2) }
   0x9   : > { %907 = vmatpush3.bf16.msra.mxu0 (!%p164_p2), %v904_v3  ;;  %915 = vmatpush3.bf16.msra.mxu1 (!%p164_p2), %v904_v3 }
   0xa   : > { %909 = vmatprep.subr.bf16.mxu0 (!%p164_p2), %v908_v5  ;;  %913 = vmatprep.subr.bf16.mxu1 (!%p164_p2), %v908_v5 }
   0xd   : > { %s1214_s23 = smov (!%p190_p3, %s768_s23), 63  ;;  %911 = vmatpush3.bf16.msra.mxu0 %v908_v5  ;;  %916 = vmatpush3.bf16.msra.mxu1 %v908_v5 }
   0xe   : > { %s769_s26 = sshll.u32 %s1214_s23, 3  ;;  %854 = vmatprep.subr.msk.mxu0 %vm335_vm0, %v237_v6  ;;  %914 = vmatprep.subr.msk.mxu1 %vm335_vm0, %v237_v6 }
   0xf   : > { %s990_s5 = scalar_lea.vmem %s1208_s0, %s769_s26  ;;  %s1081_s12 = scalar_lea.vmem %s1212_s4, %s769_s26 }
  0x10   : > { %v201_v7 = vld [vmem:[%s990_s5] sm:$0xff]  ;;  %v202_v9 = vld [vmem:[%s990_s5 + $0x8] sm:$0xff]  ;;  %v203_v11 = vld [vmem:[%s990_s5 + $0x10] sm:$0xff] }
  0x11   : > { %v217_v8 = vld [vmem:[%s990_s5 + $0x80] sm:$0xff]  ;;  %856 = vmatprep.mubr.msk.f32.mxu0 %vm238_vm1, %v201_v7  ;;  %v218_v10 = vld [vmem:[%s990_s5 + $0x88] sm:$0xff]  ;;  %v219_v12 = vld [vmem:[%s990_s5 + $0x90] sm:$0xff]  ;;  %855 = vmatpush3.msk.msra.mxu0 %vm335_vm0, %v237_v6 }
  0x12   : > { %880 = vmatprep.mubr.msk.f32.mxu1 %vm238_vm1, %v217_v8  ;;  %917 = vmatpush3.msk.msra.mxu1 %vm335_vm0, %v237_v6  ;;  %v204_v13 = vld [vmem:[%s990_s5 + $0x18] sm:$0xff]  ;;  %v205_v15 = vld [vmem:[%s990_s5 + $0x20] sm:$0xff]  ;;  %v206_v17 = vld [vmem:[%s990_s5 + $0x28] sm:$0xff] }
  0x13   : > { %857 = vmatmul.mubr.msk.f32.vlgmr.msra.gmra.mrb[0].mxu0 %vm238_vm1, %v202_v9  ;;  %881 = vmatmul.mubr.msk.f32.vlgmr.msra.gmra.mrb[0].mxu1 %vm238_vm1, %v218_v10  ;;  %v220_v14 = vld [vmem:[%s990_s5 + $0x98] sm:$0xff]  ;;  %v221_v16 = vld [vmem:[%s990_s5 + $0xa0] sm:$0xff]  ;;  %v222_v18 = vld [vmem:[%s990_s5 + $0xa8] sm:$0xff] }
  0x14   : > { %859 = vmatprep.mubr.msk.f32.mxu0 %vm238_vm1, %v203_v11  ;;  %883 = vmatprep.mubr.msk.f32.mxu1 %vm238_vm1, %v219_v12  ;;  %v207_v19 = vld [vmem:[%s990_s5 + $0x30] sm:$0xff]  ;;  %v208_v21 = vld [vmem:[%s990_s5 + $0x38] sm:$0xff]  ;;  %v209_v23 = vld [vmem:[%s990_s5 + $0x40] sm:$0xff] }
  0x15   : > { %v223_v20 = vld [vmem:[%s990_s5 + $0xb0] sm:$0xff]  ;;  %v224_v22 = vld [vmem:[%s990_s5 + $0xb8] sm:$0xff]  ;;  %v225_v24 = vld [vmem:[%s990_s5 + $0xc0] sm:$0xff] }
  0x16   : > { %v210_v25 = vld [vmem:[%s990_s5 + $0x48] sm:$0xff]  ;;  %v211_v27 = vld [vmem:[%s990_s5 + $0x50] sm:$0xff]  ;;  %v212_v29 = vld [vmem:[%s990_s5 + $0x58] sm:$0xff] }
  0x17   : > { %860 = vmatmul.mubr.msk.f32.gmra.mrb[2].mxu0 %vm238_vm1, %v204_v13  ;;  %884 = vmatmul.mubr.msk.f32.gmra.mrb[2].mxu1 %vm238_vm1, %v220_v14  ;;  %v226_v26 = vld [vmem:[%s990_s5 + $0xc8] sm:$0xff]  ;;  %v227_v28 = vld [vmem:[%s990_s5 + $0xd0] sm:$0xff]  ;;  %v228_v30 = vld [vmem:[%s990_s5 + $0xd8] sm:$0xff] }
  0x18   : > { %862 = vmatprep.mubr.msk.f32.mxu0 %vm238_vm1, %v205_v15  ;;  %886 = vmatprep.mubr.msk.f32.mxu1 %vm238_vm1, %v221_v16  ;;  %v213_v31 = vld [vmem:[%s990_s5 + $0x60] sm:$0xff]  ;;  %v214_v33 = vld [vmem:[%s990_s5 + $0x68] sm:$0xff]  ;;  %v215_v35 = vld [vmem:[%s990_s5 + $0x70] sm:$0xff] }
  0x19   : > { %v229_v32 = vld [vmem:[%s990_s5 + $0xe0] sm:$0xff]  ;;  %v230_v34 = vld [vmem:[%s990_s5 + $0xe8] sm:$0xff]  ;;  %v231_v36 = vld [vmem:[%s990_s5 + $0xf0] sm:$0xff] }
  0x1a   : > { %v216_v37 = vld [vmem:[%s990_s5 + $0x78] sm:$0xff] }
  0x1b   : > { %863 = vmatmul.mubr.msk.f32.gmra.mrb[4].mxu0 %vm238_vm1, %v206_v17  ;;  %887 = vmatmul.mubr.msk.f32.gmra.mrb[4].mxu1 %vm238_vm1, %v222_v18  ;;  %v232_v38 = vld [vmem:[%s990_s5 + $0xf8] sm:$0xff] }
  0x1c   : > { %865 = vmatprep.mubr.msk.f32.mxu0 %vm238_vm1, %v207_v19  ;;  %889 = vmatprep.mubr.msk.f32.mxu1 %vm238_vm1, %v223_v20 }
  0x1f   : > { %866 = vmatmul.mubr.msk.f32.gmra.mrb[6].mxu0 %vm238_vm1, %v208_v21  ;;  %890 = vmatmul.mubr.msk.f32.gmra.mrb[6].mxu1 %vm238_vm1, %v224_v22 }
  0x20   : > { %868 = vmatprep.mubr.msk.f32.mxu0 %vm238_vm1, %v209_v23  ;;  %892 = vmatprep.mubr.msk.f32.mxu1 %vm238_vm1, %v225_v24 }
  0x23   : > { %869 = vmatmul.mubr.msk.f32.gmra.mrb[8].mxu0 %vm238_vm1, %v210_v25  ;;  %893 = vmatmul.mubr.msk.f32.gmra.mrb[8].mxu1 %vm238_vm1, %v226_v26 }
  0x24   : > { %871 = vmatprep.mubr.msk.f32.mxu0 %vm238_vm1, %v211_v27  ;;  %895 = vmatprep.mubr.msk.f32.mxu1 %vm238_vm1, %v227_v28 }
  0x27   : > { %872 = vmatmul.mubr.msk.f32.gmra.mrb[10].mxu0 %vm238_vm1, %v212_v29  ;;  %896 = vmatmul.mubr.msk.f32.gmra.mrb[10].mxu1 %vm238_vm1, %v228_v30 }
  0x28   : > { %874 = vmatprep.mubr.msk.f32.mxu0 %vm238_vm1, %v213_v31  ;;  %898 = vmatprep.mubr.msk.f32.mxu1 %vm238_vm1, %v229_v32 }
  0x2b   : > { %875 = vmatmul.mubr.msk.f32.gmra.mrb[12].mxu0 %vm238_vm1, %v214_v33  ;;  %899 = vmatmul.mubr.msk.f32.gmra.mrb[12].mxu1 %vm238_vm1, %v230_v34 }
  0x2c   : > { %877 = vmatprep.mubr.msk.f32.mxu0 %vm238_vm1, %v215_v35  ;;  %901 = vmatprep.mubr.msk.f32.mxu1 %vm238_vm1, %v231_v36 }
  0x2f   : > { %878 = vmatmul.mubr.msk.f32.gmra.mrb[14].mxu0 %vm238_vm1, %v216_v37  ;;  %902 = vmatmul.mubr.msk.f32.gmra.mrb[14].mxu1 %vm238_vm1, %v232_v38 }
  0xe6   : > { %v858_v40 = vpop.f32.mrb[0].mxu0  ;;  %v882_v42 = vpop.f32.mrb[0].mxu1 }
  0xe7   : > { %v572_v43 = vmul.f32 %v858_v40, %v1063_v39  ;;  %v588_v44 = vmul.f32 %v882_v42, %v1063_v39  ;;  %v405_v45 = vpop.f32.mrb[1].mxu0  ;;  %v485_v46 = vpop.f32.mrb[1].mxu1 }
  0xe8   : > { %v571_v47 = vmul.f32 %v1063_v39, %v405_v45  ;;  %v587_v48 = vmul.f32 %v1063_v39, %v485_v46 }
  0xe9   : > { %v611_v49 = vadd.f32 %v1068_v41, %v572_v43  ;;  %v627_v50 = vadd.f32 %v1068_v41, %v588_v44 }
  0xea   : > { %v610_v51 = vadd.f32 %v1068_v41, %v571_v47  ;;  %v626_v52 = vadd.f32 %v1068_v41, %v587_v48  ;;  %v861_v53 = vpop.f32.mrb[2].mxu0  ;;  %v885_v54 = vpop.f32.mrb[2].mxu1 }
  0xeb   : > { %v643_v55 = vmax.f32 %v611_v49, 0.0  ;;  %v659_v56 = vmax.f32 %v627_v50, 0.0  ;;  %v574_v57 = vmul.f32 %v861_v53, %v1063_v39  ;;  %v590_v58 = vmul.f32 %v885_v54, %v1063_v39  ;;  %v415_v59 = vpop.f32.mrb[3].mxu0  ;;  %v495_v60 = vpop.f32.mrb[3].mxu1 }
  0xec   : > { %v642_v61 = vmax.f32 %v610_v51, 0.0  ;;  %v658_v62 = vmax.f32 %v626_v52, 0.0  ;;  %v573_v63 = vmul.f32 %v1063_v39, %v415_v59  ;;  %v589_v0 = vmul.f32 %v1063_v39, %v495_v60 }
  0xed   : > { %676 = vst.msk [vmem:[%s1081_s12 + $0x8] sm:$0xff] %vm674_vm2, %v643_v55  ;;  %692 = vst.msk [vmem:[%s1081_s12 + $0x88] sm:$0xff] %vm674_vm2, %v659_v56  ;;  %v613_v1 = vadd.f32 %v1068_v41, %v574_v57  ;;  %v629_v2 = vadd.f32 %v1068_v41, %v590_v58 }
  0xee   : > { %675 = vst.msk [vmem:[%s1081_s12] sm:$0xff] %vm674_vm2, %v642_v61  ;;  %691 = vst.msk [vmem:[%s1081_s12 + $0x80] sm:$0xff] %vm674_vm2, %v658_v62  ;;  %v612_v3 = vadd.f32 %v1068_v41, %v573_v63  ;;  %v628_v4 = vadd.f32 %v1068_v41, %v589_v0  ;;  %v864_v5 = vpop.f32.mrb[4].mxu0  ;;  %v888_v6 = vpop.f32.mrb[4].mxu1 }
  0xef   : > { %v645_v7 = vmax.f32 %v613_v1, 0.0  ;;  %v661_v8 = vmax.f32 %v629_v2, 0.0  ;;  %v576_v9 = vmul.f32 %v864_v5, %v1063_v39  ;;  %v592_v10 = vmul.f32 %v888_v6, %v1063_v39  ;;  %v425_v11 = vpop.f32.mrb[5].mxu0  ;;  %v505_v12 = vpop.f32.mrb[5].mxu1 }
  0xf0   : > { %v644_v13 = vmax.f32 %v612_v3, 0.0  ;;  %v660_v14 = vmax.f32 %v628_v4, 0.0  ;;  %v575_v15 = vmul.f32 %v1063_v39, %v425_v11  ;;  %v591_v16 = vmul.f32 %v1063_v39, %v505_v12 }
  0xf1   : > { %678 = vst.msk [vmem:[%s1081_s12 + $0x18] sm:$0xff] %vm674_vm2, %v645_v7  ;;  %694 = vst.msk [vmem:[%s1081_s12 + $0x98] sm:$0xff] %vm674_vm2, %v661_v8  ;;  %v615_v17 = vadd.f32 %v1068_v41, %v576_v9  ;;  %v631_v18 = vadd.f32 %v1068_v41, %v592_v10 }
  0xf2   : > { %677 = vst.msk [vmem:[%s1081_s12 + $0x10] sm:$0xff] %vm674_vm2, %v644_v13  ;;  %693 = vst.msk [vmem:[%s1081_s12 + $0x90] sm:$0xff] %vm674_vm2, %v660_v14  ;;  %v614_v19 = vadd.f32 %v1068_v41, %v575_v15  ;;  %v630_v20 = vadd.f32 %v1068_v41, %v591_v16  ;;  %v867_v21 = vpop.f32.mrb[6].mxu0  ;;  %v891_v22 = vpop.f32.mrb[6].mxu1 }
  0xf3   : > { %v647_v23 = vmax.f32 %v615_v17, 0.0  ;;  %v663_v24 = vmax.f32 %v631_v18, 0.0  ;;  %v578_v25 = vmul.f32 %v867_v21, %v1063_v39  ;;  %v594_v26 = vmul.f32 %v891_v22, %v1063_v39  ;;  %v435_v27 = vpop.f32.mrb[7].mxu0  ;;  %v515_v28 = vpop.f32.mrb[7].mxu1 }
  0xf4   : > { %v646_v29 = vmax.f32 %v614_v19, 0.0  ;;  %v662_v30 = vmax.f32 %v630_v20, 0.0  ;;  %v577_v31 = vmul.f32 %v1063_v39, %v435_v27  ;;  %v593_v32 = vmul.f32 %v1063_v39, %v515_v28 }
  0xf5   : > { %680 = vst.msk [vmem:[%s1081_s12 + $0x28] sm:$0xff] %vm674_vm2, %v647_v23  ;;  %696 = vst.msk [vmem:[%s1081_s12 + $0xa8] sm:$0xff] %vm674_vm2, %v663_v24  ;;  %v617_v33 = vadd.f32 %v1068_v41, %v578_v25  ;;  %v633_v34 = vadd.f32 %v1068_v41, %v594_v26 }
  0xf6   : > { %679 = vst.msk [vmem:[%s1081_s12 + $0x20] sm:$0xff] %vm674_vm2, %v646_v29  ;;  %695 = vst.msk [vmem:[%s1081_s12 + $0xa0] sm:$0xff] %vm674_vm2, %v662_v30  ;;  %v616_v35 = vadd.f32 %v1068_v41, %v577_v31  ;;  %v632_v36 = vadd.f32 %v1068_v41, %v593_v32  ;;  %v870_v37 = vpop.f32.mrb[8].mxu0  ;;  %v894_v38 = vpop.f32.mrb[8].mxu1 }
  0xf7   : > { %v649_v40 = vmax.f32 %v617_v33, 0.0  ;;  %v665_v42 = vmax.f32 %v633_v34, 0.0  ;;  %v580_v43 = vmul.f32 %v870_v37, %v1063_v39  ;;  %v596_v44 = vmul.f32 %v894_v38, %v1063_v39  ;;  %v445_v45 = vpop.f32.mrb[9].mxu0  ;;  %v525_v46 = vpop.f32.mrb[9].mxu1 }
  0xf8   : > { %v648_v47 = vmax.f32 %v616_v35, 0.0  ;;  %v664_v48 = vmax.f32 %v632_v36, 0.0  ;;  %v579_v49 = vmul.f32 %v1063_v39, %v445_v45  ;;  %v595_v50 = vmul.f32 %v1063_v39, %v525_v46 }
  0xf9   : > { %682 = vst.msk [vmem:[%s1081_s12 + $0x38] sm:$0xff] %vm674_vm2, %v649_v40  ;;  %698 = vst.msk [vmem:[%s1081_s12 + $0xb8] sm:$0xff] %vm674_vm2, %v665_v42  ;;  %v619_v51 = vadd.f32 %v1068_v41, %v580_v43  ;;  %v635_v52 = vadd.f32 %v1068_v41, %v596_v44 }
  0xfa   : > { %681 = vst.msk [vmem:[%s1081_s12 + $0x30] sm:$0xff] %vm674_vm2, %v648_v47  ;;  %697 = vst.msk [vmem:[%s1081_s12 + $0xb0] sm:$0xff] %vm674_vm2, %v664_v48  ;;  %v618_v53 = vadd.f32 %v1068_v41, %v579_v49  ;;  %v634_v54 = vadd.f32 %v1068_v41, %v595_v50  ;;  %v873_v55 = vpop.f32.mrb[10].mxu0  ;;  %v897_v56 = vpop.f32.mrb[10].mxu1 }
  0xfb   : > { %v651_v57 = vmax.f32 %v619_v51, 0.0  ;;  %v667_v58 = vmax.f32 %v635_v52, 0.0  ;;  %v582_v59 = vmul.f32 %v873_v55, %v1063_v39  ;;  %v598_v60 = vmul.f32 %v897_v56, %v1063_v39  ;;  %v455_v61 = vpop.f32.mrb[11].mxu0  ;;  %v535_v62 = vpop.f32.mrb[11].mxu1 }
  0xfc   : > { %v650_v63 = vmax.f32 %v618_v53, 0.0  ;;  %v666_v0 = vmax.f32 %v634_v54, 0.0  ;;  %v581_v1 = vmul.f32 %v1063_v39, %v455_v61  ;;  %v597_v2 = vmul.f32 %v1063_v39, %v535_v62 }
  0xfd   : > { %684 = vst.msk [vmem:[%s1081_s12 + $0x48] sm:$0xff] %vm674_vm2, %v651_v57  ;;  %700 = vst.msk [vmem:[%s1081_s12 + $0xc8] sm:$0xff] %vm674_vm2, %v667_v58  ;;  %v621_v3 = vadd.f32 %v1068_v41, %v582_v59  ;;  %v637_v4 = vadd.f32 %v1068_v41, %v598_v60 }
  0xfe   : > { %683 = vst.msk [vmem:[%s1081_s12 + $0x40] sm:$0xff] %vm674_vm2, %v650_v63  ;;  %699 = vst.msk [vmem:[%s1081_s12 + $0xc0] sm:$0xff] %vm674_vm2, %v666_v0  ;;  %v620_v5 = vadd.f32 %v1068_v41, %v581_v1  ;;  %v636_v6 = vadd.f32 %v1068_v41, %v597_v2  ;;  %v876_v7 = vpop.f32.mrb[12].mxu0  ;;  %v900_v8 = vpop.f32.mrb[12].mxu1 }
  0xff   : > { %v653_v9 = vmax.f32 %v621_v3, 0.0  ;;  %v669_v10 = vmax.f32 %v637_v4, 0.0  ;;  %v584_v11 = vmul.f32 %v876_v7, %v1063_v39  ;;  %v600_v12 = vmul.f32 %v900_v8, %v1063_v39  ;;  %v465_v13 = vpop.f32.mrb[13].mxu0  ;;  %v545_v14 = vpop.f32.mrb[13].mxu1 }
 0x100   : > { %v652_v15 = vmax.f32 %v620_v5, 0.0  ;;  %v668_v16 = vmax.f32 %v636_v6, 0.0  ;;  %v583_v17 = vmul.f32 %v1063_v39, %v465_v13  ;;  %v599_v18 = vmul.f32 %v1063_v39, %v545_v14 }
 0x101   : > { %686 = vst.msk [vmem:[%s1081_s12 + $0x58] sm:$0xff] %vm674_vm2, %v653_v9  ;;  %702 = vst.msk [vmem:[%s1081_s12 + $0xd8] sm:$0xff] %vm674_vm2, %v669_v10  ;;  %v623_v19 = vadd.f32 %v1068_v41, %v584_v11  ;;  %v639_v20 = vadd.f32 %v1068_v41, %v600_v12 }
 0x102   : > { %685 = vst.msk [vmem:[%s1081_s12 + $0x50] sm:$0xff] %vm674_vm2, %v652_v15  ;;  %701 = vst.msk [vmem:[%s1081_s12 + $0xd0] sm:$0xff] %vm674_vm2, %v668_v16  ;;  %v622_v21 = vadd.f32 %v1068_v41, %v583_v17  ;;  %v638_v22 = vadd.f32 %v1068_v41, %v599_v18  ;;  %v879_v23 = vpop.f32.mrb[14].mxu0  ;;  %v903_v24 = vpop.f32.mrb[14].mxu1 }
 0x103   : > { %v655_v25 = vmax.f32 %v623_v19, 0.0  ;;  %v671_v26 = vmax.f32 %v639_v20, 0.0  ;;  %v586_v27 = vmul.f32 %v879_v23, %v1063_v39  ;;  %v602_v28 = vmul.f32 %v903_v24, %v1063_v39  ;;  %v475_v29 = vpop.f32.mrb[15].mxu0  ;;  %v555_v30 = vpop.f32.mrb[15].mxu1 }
 0x104   : > { %v654_v31 = vmax.f32 %v622_v21, 0.0  ;;  %v670_v32 = vmax.f32 %v638_v22, 0.0  ;;  %v585_v33 = vmul.f32 %v1063_v39, %v475_v29  ;;  %v601_v34 = vmul.f32 %v1063_v39, %v555_v30 }
 0x105   : > { %688 = vst.msk [vmem:[%s1081_s12 + $0x68] sm:$0xff] %vm674_vm2, %v655_v25  ;;  %704 = vst.msk [vmem:[%s1081_s12 + $0xe8] sm:$0xff] %vm674_vm2, %v671_v26  ;;  %v625_v35 = vadd.f32 %v1068_v41, %v586_v27  ;;  %v641_v36 = vadd.f32 %v1068_v41, %v602_v28 }
 0x106   : > { %687 = vst.msk [vmem:[%s1081_s12 + $0x60] sm:$0xff] %vm674_vm2, %v654_v31  ;;  %703 = vst.msk [vmem:[%s1081_s12 + $0xe0] sm:$0xff] %vm674_vm2, %v670_v32  ;;  %v624_v37 = vadd.f32 %v1068_v41, %v585_v33  ;;  %v640_v38 = vadd.f32 %v1068_v41, %v601_v34 }
 0x107   : > { %v657_v40 = vmax.f32 %v625_v35, 0.0  ;;  %v673_v42 = vmax.f32 %v641_v36, 0.0 }
 0x108   : > { %v656_v39 = vmax.f32 %v624_v37, 0.0  ;;  %v672_v43 = vmax.f32 %v640_v38, 0.0 }
 0x109   : > { %690 = vst.msk [vmem:[%s1081_s12 + $0x78] sm:$0xff] %vm674_vm2, %v657_v40  ;;  %706 = vst.msk [vmem:[%s1081_s12 + $0xf8] sm:$0xff] %vm674_vm2, %v673_v42 }
 0x10a   : > { %689 = vst.msk [vmem:[%s1081_s12 + $0x70] sm:$0xff] %vm674_vm2, %v656_v39  ;;  %705 = vst.msk [vmem:[%s1081_s12 + $0xf0] sm:$0xff] %vm674_vm2, %v672_v43 }
 0x10b PF: > { %s14_s15 = sadd.s32 1, %s932_s15  }
 0x10c   : > { %p11_p4 = scmp.ge.s32.totalorder %s14_s15, 4  }
 0x10e   :  { %13 = sbr.rel (!%p11_p4) target bundleno = 1 (0x1), region = 66 }

// kernel: adapted_inception_forward.5
= control target key start
LH: loop header
LB: loop body
LE: loop exit
PB: predicated region body
PF: predicated region fallthrough
CT: control target
= control target key end

     0   :  { %s1350_s15 = smov 0   ;;  %s1808_s0 = inlined_call_operand.vmem [shape: f32[512,288], index: 0, kind: input, shape index: {}]   ;;  %s1809_s1 = inlined_call_operand.vmem [shape: f32[288,32], index: 1, kind: input, shape index: {}]   ;;  %s1810_s2 = inlined_call_operand.vmem [shape: f32[1,32], index: 2, kind: input, shape index: {}]   ;;  %s1811_s3 = inlined_call_operand.vmem [shape: f32[1,32], index: 3, kind: input, shape index: {}]   ;;  %s1812_s4 = inlined_call_operand.vmem [shape: f32[512,32], index: 4, kind: output, shape index: {}]  }
   0x1 LB: > { %s1081_s16 = sadd.s32 4294967295, %s1322_s15   ;;  %p1085_p0 = scmp.ge.s32.totalorder %s1322_s15, 1  ;;  %s1322_s15 = sphi %s1350_s15, %s14_s15  }
   0x2   : > { %p164_p1 = scmp.lt.s32.totalorder %s1322_s15, 3 }
   0x4   : > { %p165_p2 = pnand %p1085_p0, %p164_p1 }
   0x5   : > { %v300_v0 = vld [vmem:[%s1809_s1] sm:$0xff] (!%p165_p2)  ;;  %v301_v1 = vld [vmem:[%s1809_s1 + $0x8] sm:$0xff] (!%p165_p2)  ;;  %v302_v2 = vld [vmem:[%s1809_s1 + $0x10] sm:$0xff] (!%p165_p2)  ;;  %s1086_s23 = sshll.u32 (!%p165_p2), %s1081_s16, 5  ;;  %v1324_v3 = vmov (!%p165_p2), 0.0|0.0   ;;  %vm336_vm0 = vcmask (!%p165_p2), 261120  }
   0x6   : > { %168 = sbr.rel (%p165_p2) target bundleno = 385 (0x181), region = 36  ;;  %1218 = vmatprep.subr.bf16.mxu0 (!%p165_p2), %v1324_v3  ;;  %1274 = vmatprep.subr.bf16.mxu1 (!%p165_p2), %v1324_v3  ;;  %v1219_v4 = vpack.c.bf16 (!%p165_p2), %v301_v1, %v300_v0  ;;  %v303_v5 = vld [vmem:[%s1809_s1 + $0x18] sm:$0xff] (!%p165_p2)  ;;  %p192_p3 = scmp.lt.s32.totalorder (!%p165_p2), %s1086_s23, 63  ;;  %v304_v7 = vld [vmem:[%s1809_s1 + $0x20] sm:$0xff] (!%p165_p2)  ;;  %v305_v8 = vld [vmem:[%s1809_s1 + $0x28] sm:$0xff] (!%p165_p2) }
   0x7   : > { %v1222_v6 = vpack.c.bf16 (!%p165_p2), %v303_v5, %v302_v2  ;;  %v1225_v9 = vpack.c.bf16 (!%p165_p2), %v305_v8, %v304_v7  ;;  %v306_v10 = vld [vmem:[%s1809_s1 + $0x30] sm:$0xff] (!%p165_p2)  ;;  %v307_v11 = vld [vmem:[%s1809_s1 + $0x38] sm:$0xff] (!%p165_p2)  ;;  %v308_v15 = vld [vmem:[%s1809_s1 + $0x40] sm:$0xff] (!%p165_p2) }
   0x8   : > { %1220 = vmatpush1.bf16.msra.mxu0 (!%p165_p2), %v1219_v4  ;;  %1290 = vmatpush1.bf16.msra.mxu1 (!%p165_p2), %v1219_v4  ;;  %v1228_v13 = vpack.c.bf16 (!%p165_p2), %v307_v11, %v306_v10  ;;  %v309_v16 = vld [vmem:[%s1809_s1 + $0x48] sm:$0xff] (!%p165_p2)  ;;  %v310_v18 = vld [vmem:[%s1809_s1 + $0x50] sm:$0xff] (!%p165_p2)  ;;  %v311_v19 = vld [vmem:[%s1809_s1 + $0x58] sm:$0xff] (!%p165_p2) }
   0x9   : > { %1221 = vmatprep.subr.bf16.mxu0 (!%p165_p2), %v1324_v3  ;;  %1275 = vmatprep.subr.bf16.mxu1 (!%p165_p2), %v1324_v3  ;;  %v1231_v17 = vpack.c.bf16 (!%p165_p2), %v309_v16, %v308_v15  ;;  %v1234_v20 = vpack.c.bf16 (!%p165_p2), %v311_v19, %v310_v18  ;;  %v312_v21 = vld [vmem:[%s1809_s1 + $0x60] sm:$0xff] (!%p165_p2)  ;;  %v313_v22 = vld [vmem:[%s1809_s1 + $0x68] sm:$0xff] (!%p165_p2)  ;;  %v314_v24 = vld [vmem:[%s1809_s1 + $0x70] sm:$0xff] (!%p165_p2) }
   0xa   : > { %v1237_v23 = vpack.c.bf16 (!%p165_p2), %v313_v22, %v312_v21  ;;  %v315_v25 = vld [vmem:[%s1809_s1 + $0x78] sm:$0xff] (!%p165_p2)  ;;  %v316_v27 = vld [vmem:[%s1809_s1 + $0x80] sm:$0xff] (!%p165_p2)  ;;  %v317_v28 = vld [vmem:[%s1809_s1 + $0x88] sm:$0xff] (!%p165_p2) }
   0xb   : > { %v1240_v26 = vpack.c.bf16 (!%p165_p2), %v315_v25, %v314_v24  ;;  %v1243_v29 = vpack.c.bf16 (!%p165_p2), %v317_v28, %v316_v27  ;;  %v318_v30 = vld [vmem:[%s1809_s1 + $0x90] sm:$0xff] (!%p165_p2)  ;;  %v319_v31 = vld [vmem:[%s1809_s1 + $0x98] sm:$0xff] (!%p165_p2)  ;;  %v320_v33 = vld [vmem:[%s1809_s1 + $0xa0] sm:$0xff] (!%p165_p2) }
   0xc   : > { %1223 = vmatpush1.bf16.msra.mxu0 (!%p165_p2), %v1222_v6  ;;  %1291 = vmatpush1.bf16.msra.mxu1 (!%p165_p2), %v1222_v6  ;;  %v1246_v32 = vpack.c.bf16 (!%p165_p2), %v319_v31, %v318_v30  ;;  %v321_v34 = vld [vmem:[%s1809_s1 + $0xa8] sm:$0xff] (!%p165_p2)  ;;  %v322_v36 = vld [vmem:[%s1809_s1 + $0xb0] sm:$0xff] (!%p165_p2)  ;;  %v323_v37 = vld [vmem:[%s1809_s1 + $0xb8] sm:$0xff] (!%p165_p2) }
   0xd   : > { %s1814_s23 = smov (!%p192_p3, %s1086_s23), 63  ;;  %1224 = vmatprep.subr.bf16.mxu0 %v1324_v3  ;;  %1276 = vmatprep.subr.bf16.mxu1 %v1324_v3  ;;  %v1249_v35 = vpack.c.bf16 %v321_v34, %v320_v33  ;;  %v1252_v38 = vpack.c.bf16 %v323_v37, %v322_v36  ;;  %v324_v39 = vld [vmem:[%s1809_s1 + $0xc0] sm:$0xff]  ;;  %v325_v40 = vld [vmem:[%s1809_s1 + $0xc8] sm:$0xff]  ;;  %v326_v42 = vld [vmem:[%s1809_s1 + $0xd0] sm:$0xff] }
   0xe   : > { %s1306_s30 = smul.u32 24, %s1814_s23  ;;  %v1255_v41 = vpack.c.bf16 %v325_v40, %v324_v39  ;;  %v327_v43 = vld [vmem:[%s1809_s1 + $0xd8] sm:$0xff]  ;;  %v328_v45 = vld [vmem:[%s1809_s1 + $0xe0] sm:$0xff]  ;;  %v329_v46 = vld [vmem:[%s1809_s1 + $0xe8] sm:$0xff]  ;;  %s1089_s27 = sshll.u32 %s1814_s23, 3 }
   0xf   : > { %v1258_v44 = vpack.c.bf16 %v327_v43, %v326_v42  ;;  %v1261_v47 = vpack.c.bf16 %v329_v46, %v328_v45  ;;  %v330_v48 = vld [vmem:[%s1809_s1 + $0xf0] sm:$0xff]  ;;  %v331_v49 = vld [vmem:[%s1809_s1 + $0xf8] sm:$0xff]  ;;  %v332_v50 = vld [vmem:[%s1809_s1 + $0x100] sm:$0xff] }
  0x10   : > { %s1386_s7 = scalar_lea.vmem %s1808_s0, %s1306_s30  ;;  %1226 = vmatpush1.bf16.msra.mxu0 %v1225_v9  ;;  %1292 = vmatpush1.bf16.msra.mxu1 %v1225_v9  ;;  %v333_v51 = vld [vmem:[%s1809_s1 + $0x108] sm:$0xff]  ;;  %v1264_v52 = vpack.c.bf16 %v331_v49, %v330_v48  ;;  %v334_v54 = vld [vmem:[%s1809_s1 + $0x110] sm:$0xff]  ;;  %v335_v55 = vld [vmem:[%s1809_s1 + $0x118] sm:$0xff]  ;;  %s1667_s30 = scalar_lea.vmem %s1812_s4, %s1089_s27 }
  0x11   : > { %v205_v12 = vld [vmem:[%s1386_s7 + $0x8] sm:$0xff]  ;;  %1227 = vmatprep.subr.bf16.mxu0 %v1324_v3  ;;  %1277 = vmatprep.subr.bf16.mxu1 %v1324_v3  ;;  %v1266_v53 = vpack.c.bf16 %v333_v51, %v332_v50  ;;  %v204_v56 = vld [vmem:[%s1386_s7] sm:$0xff]  ;;  %v1270_v59 = vpack.c.bf16 %v335_v55, %v334_v54  ;;  %v207_v61 = vld [vmem:[%s1386_s7 + $0x18] sm:$0xff] }
  0x12   : > { %v277_v14 = vld [vmem:[%s1386_s7 + $0x248] sm:$0xff]  ;;  %497 = vmatprep.mubr.f32.mxu0 %v205_v12  ;;  %v276_v57 = vld [vmem:[%s1386_s7 + $0x240] sm:$0xff]  ;;  %v279_v62 = vld [vmem:[%s1386_s7 + $0x258] sm:$0xff] }
  0x13   : > { %617 = vmatprep.mubr.f32.mxu1 %v277_v14  ;;  %v208_v58 = vld [vmem:[%s1386_s7 + $0x20] sm:$0xff]  ;;  %v211_v63 = vld [vmem:[%s1386_s7 + $0x38] sm:$0xff]  ;;  %v210_v1 = vld [vmem:[%s1386_s7 + $0x30] sm:$0xff] }
  0x14   : > { %1229 = vmatpush1.bf16.msra.mxu0 %v1228_v13  ;;  %1293 = vmatpush1.bf16.msra.mxu1 %v1228_v13  ;;  %v280_v60 = vld [vmem:[%s1386_s7 + $0x260] sm:$0xff]  ;;  %v283_v0 = vld [vmem:[%s1386_s7 + $0x278] sm:$0xff]  ;;  %v282_v2 = vld [vmem:[%s1386_s7 + $0x270] sm:$0xff] }
  0x15   : > { %1230 = vmatprep.subr.bf16.mxu0 %v1324_v3  ;;  %1278 = vmatprep.subr.bf16.mxu1 %v1324_v3  ;;  %v286_v4 = vld [vmem:[%s1386_s7 + $0x290] sm:$0xff]  ;;  %v213_v5 = vld [vmem:[%s1386_s7 + $0x48] sm:$0xff]  ;;  %v216_v9 = vld [vmem:[%s1386_s7 + $0x60] sm:$0xff] }
  0x16   : > { %v285_v6 = vld [vmem:[%s1386_s7 + $0x288] sm:$0xff]  ;;  %v288_v10 = vld [vmem:[%s1386_s7 + $0x2a0] sm:$0xff]  ;;  %v219_v13 = vld [vmem:[%s1386_s7 + $0x78] sm:$0xff] }
  0x17   : > { %v217_v7 = vld [vmem:[%s1386_s7 + $0x68] sm:$0xff]  ;;  %v220_v11 = vld [vmem:[%s1386_s7 + $0x80] sm:$0xff]  ;;  %v291_v14 = vld [vmem:[%s1386_s7 + $0x2b8] sm:$0xff] }
  0x18   : > { %1232 = vmatpush1.bf16.msra.mxu0 %v1231_v17  ;;  %1294 = vmatpush1.bf16.msra.mxu1 %v1231_v17  ;;  %v289_v8 = vld [vmem:[%s1386_s7 + $0x2a8] sm:$0xff]  ;;  %v292_v12 = vld [vmem:[%s1386_s7 + $0x2c0] sm:$0xff]  ;;  %v223_v15 = vld [vmem:[%s1386_s7 + $0x98] sm:$0xff] }
  0x19   : > { %1233 = vmatprep.subr.bf16.mxu0 %v1324_v3  ;;  %1279 = vmatprep.subr.bf16.mxu1 %v1324_v3  ;;  %v295_v16 = vld [vmem:[%s1386_s7 + $0x2d8] sm:$0xff]  ;;  %v222_v17 = vld [vmem:[%s1386_s7 + $0x90] sm:$0xff]  ;;  %v225_v21 = vld [vmem:[%s1386_s7 + $0xa8] sm:$0xff] }
  0x1a   : > { %v294_v18 = vld [vmem:[%s1386_s7 + $0x2d0] sm:$0xff]  ;;  %v297_v22 = vld [vmem:[%s1386_s7 + $0x2e8] sm:$0xff]  ;;  %v228_v25 = vld [vmem:[%s1386_s7 + $0xc0] sm:$0xff] }
  0x1b   : > { %v226_v19 = vld [vmem:[%s1386_s7 + $0xb0] sm:$0xff]  ;;  %v232_v27 = vld [vmem:[%s1386_s7 + $0xe0] sm:$0xff]  ;;  %v215_v30 = vld [vmem:[%s1386_s7 + $0x58] sm:$0xff] }
  0x1c   : > { %1235 = vmatpush1.bf16.msra.mxu0 %v1234_v20  ;;  %1295 = vmatpush1.bf16.msra.mxu1 %v1234_v20  ;;  %v298_v20 = vld [vmem:[%s1386_s7 + $0x2f0] sm:$0xff]  ;;  %v212_v28 = vld [vmem:[%s1386_s7 + $0x40] sm:$0xff]  ;;  %v235_v31 = vld [vmem:[%s1386_s7 + $0xf8] sm:$0xff] }
  0x1d   : > { %1236 = vmatprep.subr.bf16.mxu0 %v1324_v3  ;;  %1280 = vmatprep.subr.bf16.mxu1 %v1324_v3  ;;  %v206_v24 = vld [vmem:[%s1386_s7 + $0x10] sm:$0xff]  ;;  %v221_v34 = vld [vmem:[%s1386_s7 + $0x88] sm:$0xff]  ;;  %v224_v36 = vld [vmem:[%s1386_s7 + $0xa0] sm:$0xff] }
  0x1e   : > { %v234_v33 = vld [vmem:[%s1386_s7 + $0xf0] sm:$0xff]  ;;  %v237_v37 = vld [vmem:[%s1386_s7 + $0x108] sm:$0xff]  ;;  %v244_v43 = vld [vmem:[%s1386_s7 + $0x140] sm:$0xff] }
  0x1f   : > { %v241_v39 = vld [vmem:[%s1386_s7 + $0x128] sm:$0xff]  ;;  %v230_v40 = vld [vmem:[%s1386_s7 + $0xd0] sm:$0xff]  ;;  %v243_v45 = vld [vmem:[%s1386_s7 + $0x138] sm:$0xff] }
  0x20   : > { %1238 = vmatpush1.bf16.msra.mxu0 %v1237_v23  ;;  %1296 = vmatpush1.bf16.msra.mxu1 %v1237_v23  ;;  %v229_v23 = vld [vmem:[%s1386_s7 + $0xc8] sm:$0xff]  ;;  %v239_v46 = vld [vmem:[%s1386_s7 + $0x118] sm:$0xff]  ;;  %v242_v48 = vld [vmem:[%s1386_s7 + $0x130] sm:$0xff] }
  0x21   : > { %1239 = vmatprep.subr.bf16.mxu0 %v1324_v3  ;;  %1281 = vmatprep.subr.bf16.mxu1 %v1324_v3  ;;  %v233_v42 = vld [vmem:[%s1386_s7 + $0xe8] sm:$0xff]  ;;  %v246_v49 = vld [vmem:[%s1386_s7 + $0x150] sm:$0xff]  ;;  %v251_v54 = vld [vmem:[%s1386_s7 + $0x178] sm:$0xff] }
  0x22   : > { %v245_v50 = vld [vmem:[%s1386_s7 + $0x148] sm:$0xff]  ;;  %v250_v51 = vld [vmem:[%s1386_s7 + $0x170] sm:$0xff] }
  0x23   : > { %v253_v55 = vld [vmem:[%s1386_s7 + $0x188] sm:$0xff] }
  0x24   : > { %1241 = vmatpush1.bf16.msra.mxu0 %v1240_v26  ;;  %1297 = vmatpush1.bf16.msra.mxu1 %v1240_v26  ;;  %v209_v26 = vld [vmem:[%s1386_s7 + $0x28] sm:$0xff] }
  0x25   : > { %1242 = vmatprep.subr.bf16.mxu0 %v1324_v3  ;;  %1282 = vmatprep.subr.bf16.mxu1 %v1324_v3 }
  0x28   : > { %1244 = vmatpush1.bf16.msra.mxu0 %v1243_v29  ;;  %1298 = vmatpush1.bf16.msra.mxu1 %v1243_v29  ;;  %v231_v29 = vld [vmem:[%s1386_s7 + $0xd8] sm:$0xff] }
  0x29   : > { %1245 = vmatprep.subr.bf16.mxu0 %v1324_v3  ;;  %1283 = vmatprep.subr.bf16.mxu1 %v1324_v3 }
  0x2c   : > { %1247 = vmatpush1.bf16.msra.mxu0 %v1246_v32  ;;  %1299 = vmatpush1.bf16.msra.mxu1 %v1246_v32  ;;  %v218_v32 = vld [vmem:[%s1386_s7 + $0x70] sm:$0xff] }
  0x2d   : > { %1248 = vmatprep.subr.bf16.mxu0 %v1324_v3  ;;  %1284 = vmatprep.subr.bf16.mxu1 %v1324_v3 }
  0x30   : > { %1250 = vmatpush1.bf16.msra.mxu0 %v1249_v35  ;;  %1300 = vmatpush1.bf16.msra.mxu1 %v1249_v35  ;;  %v238_v35 = vld [vmem:[%s1386_s7 + $0x110] sm:$0xff] }
  0x31   : > { %1251 = vmatprep.subr.bf16.mxu0 %v1324_v3  ;;  %1285 = vmatprep.subr.bf16.mxu1 %v1324_v3 }
  0x34   : > { %1253 = vmatpush1.bf16.msra.mxu0 %v1252_v38  ;;  %1301 = vmatpush1.bf16.msra.mxu1 %v1252_v38  ;;  %v227_v38 = vld [vmem:[%s1386_s7 + $0xb8] sm:$0xff] }
  0x35   : > { %1254 = vmatprep.subr.bf16.mxu0 %v1324_v3  ;;  %1286 = vmatprep.subr.bf16.mxu1 %v1324_v3 }
  0x38   : > { %1256 = vmatpush1.bf16.msra.mxu0 %v1255_v41  ;;  %1302 = vmatpush1.bf16.msra.mxu1 %v1255_v41  ;;  %v240_v41 = vld [vmem:[%s1386_s7 + $0x120] sm:$0xff] }
  0x39   : > { %1257 = vmatprep.subr.bf16.mxu0 %v1324_v3  ;;  %1287 = vmatprep.subr.bf16.mxu1 %v1324_v3 }
  0x3c   : > { %1259 = vmatpush1.bf16.msra.mxu0 %v1258_v44  ;;  %1303 = vmatpush1.bf16.msra.mxu1 %v1258_v44  ;;  %v236_v44 = vld [vmem:[%s1386_s7 + $0x100] sm:$0xff] }
  0x3d   : > { %1260 = vmatprep.subr.bf16.mxu0 %v1324_v3  ;;  %1288 = vmatprep.subr.bf16.mxu1 %v1324_v3 }
  0x40   : > { %1262 = vmatpush1.bf16.msra.mxu0 %v1261_v47  ;;  %1304 = vmatpush1.bf16.msra.mxu1 %v1261_v47  ;;  %v247_v47 = vld [vmem:[%s1386_s7 + $0x158] sm:$0xff] }
  0x41   : > { %1263 = vmatprep.subr.bf16.mxu0 %v1324_v3  ;;  %1289 = vmatprep.subr.bf16.mxu1 %v1324_v3  ;;  %v214_v3 = vld [vmem:[%s1386_s7 + $0x50] sm:$0xff] }
  0x44   : > { %1265 = vmatpush1.bf16.msra.mxu0 %v1264_v52  ;;  %1305 = vmatpush1.bf16.msra.mxu1 %v1264_v52  ;;  %v248_v52 = vld [vmem:[%s1386_s7 + $0x160] sm:$0xff] }
  0x45   : > { %1267 = vmatprep.subr.bf16.mxu1 %v1266_v53 }
  0x47   : > { %498 = vmatmul.mubr.f32.vlgmr.msra.gmra.mrb[0].mxu0 %v204_v56  ;;  %618 = vmatmul.mubr.f32.vlgmr.msra.gmra.mrb[0].mxu1 %v276_v57  ;;  %v254_v56 = vld [vmem:[%s1386_s7 + $0x190] sm:$0xff]  ;;  %v252_v57 = vld [vmem:[%s1386_s7 + $0x180] sm:$0xff] }
  0x48   : > { %1269 = vmatpush3.bf16.msra.mxu1 %v1266_v53  ;;  %502 = vmatprep.mubr.f32.mxu0 %v208_v58  ;;  %v249_v53 = vld [vmem:[%s1386_s7 + $0x168] sm:$0xff] }
  0x49   : > { %622 = vmatprep.mubr.f32.mxu1 %v280_v60  ;;  %1271 = vmatprep.subr.bf16.mxu1 %v1270_v59  ;;  %v257_v58 = vld [vmem:[%s1386_s7 + $0x1a8] sm:$0xff]  ;;  %v260_v60 = vld [vmem:[%s1386_s7 + $0x1c0] sm:$0xff] }
  0x4b   : > { %503 = vmatmul.mubr.f32.gmra.mrb[2].mxu0 %v207_v61  ;;  %623 = vmatmul.mubr.f32.gmra.mrb[2].mxu1 %v279_v62  ;;  %v255_v61 = vld [vmem:[%s1386_s7 + $0x198] sm:$0xff] }
  0x4c   : > { %507 = vmatprep.mubr.f32.mxu0 %v211_v63  ;;  %627 = vmatprep.mubr.f32.mxu1 %v283_v0  ;;  %v263_v62 = vld [vmem:[%s1386_s7 + $0x1d8] sm:$0xff]  ;;  %v266_v0 = vld [vmem:[%s1386_s7 + $0x1f0] sm:$0xff] }
  0x4d   : > { %1273 = vmatpush3.bf16.msra.mxu1 %v1270_v59  ;;  %v256_v59 = vld [vmem:[%s1386_s7 + $0x1a0] sm:$0xff]  ;;  %v259_v63 = vld [vmem:[%s1386_s7 + $0x1b8] sm:$0xff] }
  0x4f   : > { %508 = vmatmul.mubr.f32.gmra.mrb[4].mxu0 %v210_v1  ;;  %628 = vmatmul.mubr.f32.gmra.mrb[4].mxu1 %v282_v2  ;;  %v258_v1 = vld [vmem:[%s1386_s7 + $0x1b0] sm:$0xff]  ;;  %v269_v2 = vld [vmem:[%s1386_s7 + $0x208] sm:$0xff] }
  0x50   : > { %512 = vmatprep.mubr.f32.mxu0 %v214_v3  ;;  %632 = vmatprep.mubr.f32.mxu1 %v286_v4  ;;  %v262_v3 = vld [vmem:[%s1386_s7 + $0x1d0] sm:$0xff]  ;;  %v272_v4 = vld [vmem:[%s1386_s7 + $0x220] sm:$0xff] }
  0x53   : > { %513 = vmatmul.mubr.f32.gmra.mrb[6].mxu0 %v213_v5  ;;  %633 = vmatmul.mubr.f32.gmra.mrb[6].mxu1 %v285_v6  ;;  %v261_v5 = vld [vmem:[%s1386_s7 + $0x1c8] sm:$0xff]  ;;  %v275_v6 = vld [vmem:[%s1386_s7 + $0x238] sm:$0xff] }
  0x54   : > { %517 = vmatprep.mubr.f32.mxu0 %v217_v7  ;;  %637 = vmatprep.mubr.f32.mxu1 %v289_v8  ;;  %v265_v7 = vld [vmem:[%s1386_s7 + $0x1e8] sm:$0xff]  ;;  %v278_v8 = vld [vmem:[%s1386_s7 + $0x250] sm:$0xff] }
  0x57   : > { %518 = vmatmul.mubr.f32.gmra.mrb[8].mxu0 %v216_v9  ;;  %638 = vmatmul.mubr.f32.gmra.mrb[8].mxu1 %v288_v10  ;;  %v264_v9 = vld [vmem:[%s1386_s7 + $0x1e0] sm:$0xff]  ;;  %v281_v10 = vld [vmem:[%s1386_s7 + $0x268] sm:$0xff] }
  0x58   : > { %522 = vmatprep.mubr.f32.mxu0 %v220_v11  ;;  %642 = vmatprep.mubr.f32.mxu1 %v292_v12  ;;  %v268_v11 = vld [vmem:[%s1386_s7 + $0x200] sm:$0xff] }
  0x59   : > { %v284_v12 = vld [vmem:[%s1386_s7 + $0x280] sm:$0xff] }
  0x5b   : > { %523 = vmatmul.mubr.f32.gmra.mrb[10].mxu0 %v219_v13  ;;  %643 = vmatmul.mubr.f32.gmra.mrb[10].mxu1 %v291_v14  ;;  %v267_v13 = vld [vmem:[%s1386_s7 + $0x1f8] sm:$0xff] }
  0x5c   : > { %527 = vmatprep.mubr.f32.mxu0 %v223_v15  ;;  %647 = vmatprep.mubr.f32.mxu1 %v295_v16  ;;  %v287_v14 = vld [vmem:[%s1386_s7 + $0x298] sm:$0xff]  ;;  %v290_v16 = vld [vmem:[%s1386_s7 + $0x2b0] sm:$0xff] }
  0x5d   : > { %v271_v15 = vld [vmem:[%s1386_s7 + $0x218] sm:$0xff] }
  0x5f   : > { %528 = vmatmul.mubr.f32.gmra.mrb[12].mxu0 %v222_v17  ;;  %648 = vmatmul.mubr.f32.gmra.mrb[12].mxu1 %v294_v18  ;;  %v270_v17 = vld [vmem:[%s1386_s7 + $0x210] sm:$0xff]  ;;  %v293_v18 = vld [vmem:[%s1386_s7 + $0x2c8] sm:$0xff] }
  0x60   : > { %532 = vmatprep.mubr.f32.mxu0 %v226_v19  ;;  %652 = vmatprep.mubr.f32.mxu1 %v298_v20  ;;  %v274_v19 = vld [vmem:[%s1386_s7 + $0x230] sm:$0xff]  ;;  %v296_v20 = vld [vmem:[%s1386_s7 + $0x2e0] sm:$0xff] }
  0x63   : > { %533 = vmatmul.mubr.f32.gmra.mrb[14].mxu0 %v225_v21  ;;  %653 = vmatmul.mubr.f32.gmra.mrb[14].mxu1 %v297_v22  ;;  %v273_v21 = vld [vmem:[%s1386_s7 + $0x228] sm:$0xff]  ;;  %v299_v22 = vld [vmem:[%s1386_s7 + $0x2f8] sm:$0xff] }
  0x64   : > { %537 = vmatprep.mubr.f32.mxu0 %v229_v23  ;;  %1170 = vmatprep.mubr.msk.f32.mxu1 %vm336_vm0, %v206_v24 }
  0x67   : > { %538 = vmatmul.mubr.f32.gmra.mrb[16].mxu0 %v228_v25  ;;  %1171 = vmatmul.mubr.msk.f32.vlgmr.msra.gmra.mrb[16].mxu1 %vm336_vm0, %v209_v26 }
  0x68   : > { %542 = vmatprep.mubr.f32.mxu0 %v232_v27  ;;  %1173 = vmatprep.mubr.msk.f32.mxu1 %vm336_vm0, %v212_v28 }
  0x6b   : > { %543 = vmatmul.mubr.f32.gmra.mrb[18].mxu0 %v231_v29  ;;  %1174 = vmatmul.mubr.msk.f32.gmra.mrb[18].mxu1 %vm336_vm0, %v215_v30 }
  0x6c   : > { %547 = vmatprep.mubr.f32.mxu0 %v235_v31  ;;  %1176 = vmatprep.mubr.msk.f32.mxu1 %vm336_vm0, %v218_v32 }
  0x6f   : > { %548 = vmatmul.mubr.f32.gmra.mrb[20].mxu0 %v234_v33  ;;  %1177 = vmatmul.mubr.msk.f32.gmra.mrb[20].mxu1 %vm336_vm0, %v221_v34 }
  0x70   : > { %552 = vmatprep.mubr.f32.mxu0 %v238_v35  ;;  %1179 = vmatprep.mubr.msk.f32.mxu1 %vm336_vm0, %v224_v36 }
  0x73   : > { %553 = vmatmul.mubr.f32.gmra.mrb[22].mxu0 %v237_v37  ;;  %1180 = vmatmul.mubr.msk.f32.gmra.mrb[22].mxu1 %vm336_vm0, %v227_v38 }
  0x74   : > { %557 = vmatprep.mubr.f32.mxu0 %v241_v39  ;;  %1182 = vmatprep.mubr.msk.f32.mxu1 %vm336_vm0, %v230_v40 }
  0x77   : > { %558 = vmatmul.mubr.f32.gmra.mrb[24].mxu0 %v240_v41  ;;  %1183 = vmatmul.mubr.msk.f32.gmra.mrb[24].mxu1 %vm336_vm0, %v233_v42 }
  0x78   : > { %562 = vmatprep.mubr.f32.mxu0 %v244_v43  ;;  %1185 = vmatprep.mubr.msk.f32.mxu1 %vm336_vm0, %v236_v44 }
  0x7b   : > { %563 = vmatmul.mubr.f32.gmra.mrb[26].mxu0 %v243_v45  ;;  %1186 = vmatmul.mubr.msk.f32.gmra.mrb[26].mxu1 %vm336_vm0, %v239_v46 }
  0x7c   : > { %567 = vmatprep.mubr.f32.mxu0 %v247_v47  ;;  %1188 = vmatprep.mubr.msk.f32.mxu1 %vm336_vm0, %v242_v48 }
  0x7f   : > { %568 = vmatmul.mubr.f32.gmra.mrb[28].mxu0 %v246_v49  ;;  %1189 = vmatmul.mubr.msk.f32.gmra.mrb[28].mxu1 %vm336_vm0, %v245_v50 }
  0x80   : > { %572 = vmatprep.mubr.f32.mxu0 %v250_v51  ;;  %1191 = vmatprep.mubr.msk.f32.mxu1 %vm336_vm0, %v248_v52 }
  0x83   : > { %573 = vmatmul.mubr.f32.gmra.mrb[30].mxu0 %v249_v53  ;;  %1192 = vmatmul.mubr.msk.f32.gmra.mrb[30].mxu1 %vm336_vm0, %v251_v54 }
  0x84   : > { %577 = vmatprep.mubr.f32.mxu0 %v253_v55  ;;  %1194 = vmatprep.mubr.msk.f32.mxu1 %vm336_vm0, %v254_v56  ;;  %v1653_v56 = vld [vmem:[%s1810_s2] ss:$0 sm:$0xff] }
  0x87   : > { %578 = vmatmul.mubr.f32.gmra.mrb[32].mxu0 %v252_v57  ;;  %1195 = vmatmul.mubr.msk.f32.gmra.mrb[32].mxu1 %vm336_vm0, %v257_v58 }
  0x88   : > { %582 = vmatprep.mubr.f32.mxu0 %v256_v59  ;;  %1197 = vmatprep.mubr.msk.f32.mxu1 %vm336_vm0, %v260_v60 }
  0x8b   : > { %583 = vmatmul.mubr.f32.gmra.mrb[34].mxu0 %v255_v61  ;;  %1198 = vmatmul.mubr.msk.f32.gmra.mrb[34].mxu1 %vm336_vm0, %v263_v62  ;;  %v1658_v61 = vld [vmem:[%s1811_s3] ss:$0 sm:$0xff] }
  0x8c   : > { %587 = vmatprep.mubr.f32.mxu0 %v259_v63  ;;  %1200 = vmatprep.mubr.msk.f32.mxu1 %vm336_vm0, %v266_v0 }
  0x8f   : > { %588 = vmatmul.mubr.f32.gmra.mrb[36].mxu0 %v258_v1  ;;  %1201 = vmatmul.mubr.msk.f32.gmra.mrb[36].mxu1 %vm336_vm0, %v269_v2 }
  0x90   : > { %592 = vmatprep.mubr.f32.mxu0 %v262_v3  ;;  %1203 = vmatprep.mubr.msk.f32.mxu1 %vm336_vm0, %v272_v4 }
  0x93   : > { %593 = vmatmul.mubr.f32.gmra.mrb[38].mxu0 %v261_v5  ;;  %1204 = vmatmul.mubr.msk.f32.gmra.mrb[38].mxu1 %vm336_vm0, %v275_v6 }
  0x94   : > { %597 = vmatprep.mubr.f32.mxu0 %v265_v7  ;;  %1206 = vmatprep.mubr.msk.f32.mxu1 %vm336_vm0, %v278_v8 }
  0x97   : > { %598 = vmatmul.mubr.f32.gmra.mrb[40].mxu0 %v264_v9  ;;  %1207 = vmatmul.mubr.msk.f32.gmra.mrb[40].mxu1 %vm336_vm0, %v281_v10 }
  0x98   : > { %602 = vmatprep.mubr.f32.mxu0 %v268_v11  ;;  %1209 = vmatprep.mubr.msk.f32.mxu1 %vm336_vm0, %v284_v12 }
  0x9b   : > { %603 = vmatmul.mubr.f32.gmra.mrb[42].mxu0 %v267_v13  ;;  %1210 = vmatmul.mubr.msk.f32.gmra.mrb[42].mxu1 %vm336_vm0, %v287_v14 }
  0x9c   : > { %607 = vmatprep.mubr.f32.mxu0 %v271_v15  ;;  %1212 = vmatprep.mubr.msk.f32.mxu1 %vm336_vm0, %v290_v16 }
  0x9f   : > { %608 = vmatmul.mubr.f32.gmra.mrb[44].mxu0 %v270_v17  ;;  %1213 = vmatmul.mubr.msk.f32.gmra.mrb[44].mxu1 %vm336_vm0, %v293_v18 }
  0xa0   : > { %612 = vmatprep.mubr.f32.mxu0 %v274_v19  ;;  %1215 = vmatprep.mubr.msk.f32.mxu1 %vm336_vm0, %v296_v20 }
  0xa3   : > { %613 = vmatmul.mubr.f32.gmra.mrb[46].mxu0 %v273_v21  ;;  %1216 = vmatmul.mubr.msk.f32.gmra.mrb[46].mxu1 %vm336_vm0, %v299_v22 }
 0x11a   : > { %v1634_v23 = vpop.f32.mrb[0].mxu1  ;;  %v499_v24 = vpop.f32.mrb[0].mxu0 }
 0x11b   : > { %v621_v25 = vpop.f32.mrb[1].mxu1  ;;  %v501_v26 = vpop.f32.mrb[1].mxu0 }
 0x11e   : > { %v1636_v27 = vpop.f32.mrb[2].mxu1  ;;  %v504_v28 = vpop.f32.mrb[2].mxu0 }
 0x11f   : > { %v626_v29 = vpop.f32.mrb[3].mxu1  ;;  %v506_v30 = vpop.f32.mrb[3].mxu0 }
 0x122   : > { %v1638_v31 = vpop.f32.mrb[4].mxu1  ;;  %v509_v32 = vpop.f32.mrb[4].mxu0 }
 0x123   : > { %v631_v33 = vpop.f32.mrb[5].mxu1  ;;  %v511_v34 = vpop.f32.mrb[5].mxu0 }
 0x126   : > { %v1640_v35 = vpop.f32.mrb[6].mxu1  ;;  %v514_v36 = vpop.f32.mrb[6].mxu0 }
 0x127   : > { %v636_v37 = vpop.f32.mrb[7].mxu1  ;;  %v516_v38 = vpop.f32.mrb[7].mxu0 }
 0x12a   : > { %v1642_v39 = vpop.f32.mrb[8].mxu1  ;;  %v519_v40 = vpop.f32.mrb[8].mxu0 }
 0x12b   : > { %v641_v41 = vpop.f32.mrb[9].mxu1  ;;  %v521_v42 = vpop.f32.mrb[9].mxu0 }
 0x12e   : > { %v1644_v43 = vpop.f32.mrb[10].mxu1  ;;  %v524_v44 = vpop.f32.mrb[10].mxu0 }
 0x12f   : > { %v646_v45 = vpop.f32.mrb[11].mxu1  ;;  %v526_v46 = vpop.f32.mrb[11].mxu0 }
 0x132   : > { %v1646_v47 = vpop.f32.mrb[12].mxu1  ;;  %v529_v48 = vpop.f32.mrb[12].mxu0 }
 0x133   : > { %v651_v49 = vpop.f32.mrb[13].mxu1  ;;  %v531_v50 = vpop.f32.mrb[13].mxu0 }
 0x136   : > { %v1648_v51 = vpop.f32.mrb[14].mxu1  ;;  %v534_v52 = vpop.f32.mrb[14].mxu0 }
 0x137   : > { %v656_v53 = vpop.f32.mrb[15].mxu1  ;;  %v536_v54 = vpop.f32.mrb[15].mxu0 }
 0x13a   : > { %v1172_v55 = vpop.f32.mrb[16].mxu1  ;;  %v539_v57 = vpop.f32.mrb[16].mxu0 }
 0x13b   : > { %v730_v58 = vadd.f32 %v1172_v55, %v504_v28  ;;  %v724_v59 = vpop.f32.mrb[17].mxu1  ;;  %v541_v60 = vpop.f32.mrb[17].mxu0 }
 0x13c   : > { %v725_v62 = vadd.f32 %v724_v59, %v499_v24 }
 0x13d   : > { %v891_v63 = vmul.f32 %v1653_v56, %v730_v58 }
 0x13e   : > { %v890_v0 = vmul.f32 %v1653_v56, %v725_v62  ;;  %v1175_v1 = vpop.f32.mrb[18].mxu1  ;;  %v544_v2 = vpop.f32.mrb[18].mxu0 }
 0x13f   : > { %v930_v3 = vadd.f32 %v1658_v61, %v891_v63  ;;  %v740_v4 = vadd.f32 %v1175_v1, %v514_v36  ;;  %v734_v5 = vpop.f32.mrb[19].mxu1  ;;  %v546_v6 = vpop.f32.mrb[19].mxu0 }
 0x140   : > { %v929_v7 = vadd.f32 %v1658_v61, %v890_v0  ;;  %v735_v8 = vadd.f32 %v734_v5, %v509_v32 }
 0x141   : > { %v962_v9 = vmax.f32 %v930_v3, 0.0  ;;  %v893_v10 = vmul.f32 %v1653_v56, %v740_v4 }
 0x142   : > { %v961_v11 = vmax.f32 %v929_v7, 0.0  ;;  %v892_v12 = vmul.f32 %v1653_v56, %v735_v8  ;;  %v1178_v13 = vpop.f32.mrb[20].mxu1  ;;  %v549_v14 = vpop.f32.mrb[20].mxu0 }
 0x143   : > { %994 = vst.msk [vmem:[%s1667_s30 + $0x8] sm:$0xff] %vm336_vm0, %v962_v9  ;;  %v932_v15 = vadd.f32 %v1658_v61, %v893_v10  ;;  %v750_v16 = vadd.f32 %v1178_v13, %v524_v44  ;;  %v744_v17 = vpop.f32.mrb[21].mxu1  ;;  %v551_v18 = vpop.f32.mrb[21].mxu0 }
 0x144   : > { %993 = vst.msk [vmem:[%s1667_s30] sm:$0xff] %vm336_vm0, %v961_v11  ;;  %v931_v19 = vadd.f32 %v1658_v61, %v892_v12  ;;  %v745_v20 = vadd.f32 %v744_v17, %v519_v40 }
 0x145   : > { %v964_v21 = vmax.f32 %v932_v15, 0.0  ;;  %v895_v22 = vmul.f32 %v1653_v56, %v750_v16 }
 0x146   : > { %v963_v24 = vmax.f32 %v931_v19, 0.0  ;;  %v894_v25 = vmul.f32 %v1653_v56, %v745_v20  ;;  %v1181_v26 = vpop.f32.mrb[22].mxu1  ;;  %v554_v28 = vpop.f32.mrb[22].mxu0 }
 0x147   : > { %996 = vst.msk [vmem:[%s1667_s30 + $0x18] sm:$0xff] %vm336_vm0, %v964_v21  ;;  %v934_v29 = vadd.f32 %v1658_v61, %v895_v22  ;;  %v760_v30 = vadd.f32 %v1181_v26, %v534_v52  ;;  %v754_v32 = vpop.f32.mrb[23].mxu1  ;;  %v556_v33 = vpop.f32.mrb[23].mxu0 }
 0x148   : > { %995 = vst.msk [vmem:[%s1667_s30 + $0x10] sm:$0xff] %vm336_vm0, %v963_v24  ;;  %v933_v34 = vadd.f32 %v1658_v61, %v894_v25  ;;  %v755_v36 = vadd.f32 %v754_v32, %v529_v48 }
 0x149   : > { %v966_v37 = vmax.f32 %v934_v29, 0.0  ;;  %v897_v38 = vmul.f32 %v1653_v56, %v760_v30 }
 0x14a   : > { %v965_v40 = vmax.f32 %v933_v34, 0.0  ;;  %v896_v41 = vmul.f32 %v1653_v56, %v755_v36  ;;  %v1184_v42 = vpop.f32.mrb[24].mxu1  ;;  %v559_v44 = vpop.f32.mrb[24].mxu0 }
 0x14b   : > { %998 = vst.msk [vmem:[%s1667_s30 + $0x28] sm:$0xff] %vm336_vm0, %v966_v37  ;;  %v936_v45 = vadd.f32 %v1658_v61, %v897_v38  ;;  %v770_v46 = vadd.f32 %v1184_v42, %v544_v2  ;;  %v764_v49 = vpop.f32.mrb[25].mxu1  ;;  %v561_v50 = vpop.f32.mrb[25].mxu0 }
 0x14c   : > { %997 = vst.msk [vmem:[%s1667_s30 + $0x20] sm:$0xff] %vm336_vm0, %v965_v40  ;;  %v935_v48 = vadd.f32 %v1658_v61, %v896_v41  ;;  %v765_v52 = vadd.f32 %v764_v49, %v539_v57 }
 0x14d   : > { %v968_v53 = vmax.f32 %v936_v45, 0.0  ;;  %v899_v54 = vmul.f32 %v1653_v56, %v770_v46 }
 0x14e   : > { %v967_v55 = vmax.f32 %v935_v48, 0.0  ;;  %v898_v58 = vmul.f32 %v1653_v56, %v765_v52  ;;  %v1187_v59 = vpop.f32.mrb[26].mxu1  ;;  %v564_v60 = vpop.f32.mrb[26].mxu0 }
 0x14f   : > { %1000 = vst.msk [vmem:[%s1667_s30 + $0x38] sm:$0xff] %vm336_vm0, %v968_v53  ;;  %v938_v62 = vadd.f32 %v1658_v61, %v899_v54  ;;  %v780_v63 = vadd.f32 %v1187_v59, %v554_v28  ;;  %v774_v0 = vpop.f32.mrb[27].mxu1  ;;  %v566_v1 = vpop.f32.mrb[27].mxu0 }
 0x150   : > { %999 = vst.msk [vmem:[%s1667_s30 + $0x30] sm:$0xff] %vm336_vm0, %v967_v55  ;;  %v937_v57 = vadd.f32 %v1658_v61, %v898_v58  ;;  %v775_v2 = vadd.f32 %v774_v0, %v549_v14 }
 0x151   : > { %v970_v3 = vmax.f32 %v938_v62, 0.0  ;;  %v901_v4 = vmul.f32 %v1653_v56, %v780_v63 }
 0x152   : > { %v969_v5 = vmax.f32 %v937_v57, 0.0  ;;  %v900_v6 = vmul.f32 %v1653_v56, %v775_v2  ;;  %v1190_v7 = vpop.f32.mrb[28].mxu1  ;;  %v569_v8 = vpop.f32.mrb[28].mxu0 }
 0x153   : > { %1002 = vst.msk [vmem:[%s1667_s30 + $0x48] sm:$0xff] %vm336_vm0, %v970_v3  ;;  %v940_v9 = vadd.f32 %v1658_v61, %v901_v4  ;;  %v790_v10 = vadd.f32 %v1190_v7, %v564_v60  ;;  %v784_v11 = vpop.f32.mrb[29].mxu1  ;;  %v571_v12 = vpop.f32.mrb[29].mxu0 }
 0x154   : > { %1001 = vst.msk [vmem:[%s1667_s30 + $0x40] sm:$0xff] %vm336_vm0, %v969_v5  ;;  %v939_v13 = vadd.f32 %v1658_v61, %v900_v6  ;;  %v785_v14 = vadd.f32 %v784_v11, %v559_v44 }
 0x155   : > { %v972_v15 = vmax.f32 %v940_v9, 0.0  ;;  %v903_v16 = vmul.f32 %v1653_v56, %v790_v10 }
 0x156   : > { %v971_v17 = vmax.f32 %v939_v13, 0.0  ;;  %v902_v18 = vmul.f32 %v1653_v56, %v785_v14  ;;  %v1193_v19 = vpop.f32.mrb[30].mxu1  ;;  %v574_v20 = vpop.f32.mrb[30].mxu0 }
 0x157   : > { %1004 = vst.msk [vmem:[%s1667_s30 + $0x58] sm:$0xff] %vm336_vm0, %v972_v15  ;;  %v942_v21 = vadd.f32 %v1658_v61, %v903_v16  ;;  %v800_v22 = vadd.f32 %v1193_v19, %v574_v20  ;;  %v794_v24 = vpop.f32.mrb[31].mxu1  ;;  %v576_v25 = vpop.f32.mrb[31].mxu0 }
 0x158   : > { %1003 = vst.msk [vmem:[%s1667_s30 + $0x50] sm:$0xff] %vm336_vm0, %v971_v17  ;;  %v941_v26 = vadd.f32 %v1658_v61, %v902_v18  ;;  %v795_v28 = vadd.f32 %v794_v24, %v569_v8 }
 0x159   : > { %v974_v29 = vmax.f32 %v942_v21, 0.0  ;;  %v905_v30 = vmul.f32 %v1653_v56, %v800_v22 }
 0x15a   : > { %v973_v32 = vmax.f32 %v941_v26, 0.0  ;;  %v904_v33 = vmul.f32 %v1653_v56, %v795_v28  ;;  %v1196_v34 = vpop.f32.mrb[32].mxu1  ;;  %v579_v36 = vpop.f32.mrb[32].mxu0 }
 0x15b   : > { %1006 = vst.msk [vmem:[%s1667_s30 + $0x68] sm:$0xff] %vm336_vm0, %v974_v29  ;;  %v944_v37 = vadd.f32 %v1658_v61, %v905_v30  ;;  %v804_v38 = vpop.f32.mrb[33].mxu1  ;;  %v581_v40 = vpop.f32.mrb[33].mxu0 }
 0x15c   : > { %1005 = vst.msk [vmem:[%s1667_s30 + $0x60] sm:$0xff] %vm336_vm0, %v973_v32  ;;  %v943_v41 = vadd.f32 %v1658_v61, %v904_v33  ;;  %v805_v42 = vadd.f32 %v804_v38, %v579_v36 }
 0x15d   : > { %v976_v44 = vmax.f32 %v944_v37, 0.0 }
 0x15e   : > { %v975_v45 = vmax.f32 %v943_v41, 0.0  ;;  %v906_v46 = vmul.f32 %v1653_v56, %v805_v42  ;;  %v584_v49 = vpop.f32.mrb[34].mxu0  ;;  %v1199_v50 = vpop.f32.mrb[34].mxu1 }
 0x15f   : > { %1008 = vst.msk [vmem:[%s1667_s30 + $0x78] sm:$0xff] %vm336_vm0, %v976_v44  ;;  %v810_v48 = vadd.f32 %v1196_v34, %v584_v49  ;;  %v814_v52 = vpop.f32.mrb[35].mxu1  ;;  %v586_v53 = vpop.f32.mrb[35].mxu0 }
 0x160   : > { %1007 = vst.msk [vmem:[%s1667_s30 + $0x70] sm:$0xff] %vm336_vm0, %v975_v45  ;;  %v945_v54 = vadd.f32 %v1658_v61, %v906_v46 }
 0x161   : > { %v907_v55 = vmul.f32 %v1653_v56, %v810_v48 }
 0x162   : > { %v977_v58 = vmax.f32 %v945_v54, 0.0  ;;  %v589_v59 = vpop.f32.mrb[36].mxu0  ;;  %v1202_v60 = vpop.f32.mrb[36].mxu1 }
 0x163   : > { %v946_v62 = vadd.f32 %v1658_v61, %v907_v55  ;;  %v815_v63 = vadd.f32 %v814_v52, %v589_v59  ;;  %v824_v0 = vpop.f32.mrb[37].mxu1  ;;  %v591_v1 = vpop.f32.mrb[37].mxu0 }
 0x164   : > { %1009 = vst.msk [vmem:[%s1667_s30 + $0x80] sm:$0xff] %vm336_vm0, %v977_v58 }
 0x165   : > { %v978_v57 = vmax.f32 %v946_v62, 0.0  ;;  %v908_v2 = vmul.f32 %v1653_v56, %v815_v63 }
 0x166   : > { %v594_v3 = vpop.f32.mrb[38].mxu0  ;;  %v1737_v4 = vpop.f32.mrb[38].mxu1 }
 0x167   : > { %1010 = vst.msk [vmem:[%s1667_s30 + $0x88] sm:$0xff] %vm336_vm0, %v978_v57  ;;  %v947_v5 = vadd.f32 %v1658_v61, %v908_v2  ;;  %v820_v6 = vadd.f32 %v1199_v50, %v594_v3  ;;  %v834_v7 = vpop.f32.mrb[39].mxu1  ;;  %v596_v8 = vpop.f32.mrb[39].mxu0 }
 0x169   : > { %v979_v9 = vmax.f32 %v947_v5, 0.0  ;;  %v909_v10 = vmul.f32 %v1653_v56, %v820_v6 }
 0x16a   : > { %v599_v11 = vpop.f32.mrb[40].mxu0  ;;  %v1208_v12 = vpop.f32.mrb[40].mxu1 }
 0x16b   : > { %1011 = vst.msk [vmem:[%s1667_s30 + $0x90] sm:$0xff] %vm336_vm0, %v979_v9  ;;  %v948_v13 = vadd.f32 %v1658_v61, %v909_v10  ;;  %v825_v14 = vadd.f32 %v824_v0, %v599_v11  ;;  %v850_v15 = vadd.f32 %v1208_v12, %v1636_v27  ;;  %v844_v16 = vpop.f32.mrb[41].mxu1  ;;  %v601_v17 = vpop.f32.mrb[41].mxu0 }
 0x16c   : > { %v845_v18 = vadd.f32 %v844_v16, %v1634_v23 }
 0x16d   : > { %v980_v19 = vmax.f32 %v948_v13, 0.0  ;;  %v910_v20 = vmul.f32 %v1653_v56, %v825_v14  ;;  %v915_v21 = vmul.f32 %v1653_v56, %v850_v15 }
 0x16e   : > { %v914_v22 = vmul.f32 %v1653_v56, %v845_v18  ;;  %v604_v24 = vpop.f32.mrb[42].mxu0  ;;  %v1211_v25 = vpop.f32.mrb[42].mxu1 }
 0x16f   : > { %1012 = vst.msk [vmem:[%s1667_s30 + $0x98] sm:$0xff] %vm336_vm0, %v980_v19  ;;  %v949_v26 = vadd.f32 %v1658_v61, %v910_v20  ;;  %v954_v27 = vadd.f32 %v1658_v61, %v915_v21  ;;  %v830_v28 = vadd.f32 %v1202_v60, %v604_v24  ;;  %v860_v23 = vadd.f32 %v1211_v25, %v1640_v35  ;;  %v854_v29 = vpop.f32.mrb[43].mxu1  ;;  %v606_v30 = vpop.f32.mrb[43].mxu0 }
 0x170   : > { %v953_v32 = vadd.f32 %v1658_v61, %v914_v22  ;;  %v855_v33 = vadd.f32 %v854_v29, %v1638_v31 }
 0x171   : > { %v981_v34 = vmax.f32 %v949_v26, 0.0  ;;  %v986_v36 = vmax.f32 %v954_v27, 0.0  ;;  %v911_v37 = vmul.f32 %v1653_v56, %v830_v28  ;;  %v917_v38 = vmul.f32 %v1653_v56, %v860_v23 }
 0x172   : > { %v985_v40 = vmax.f32 %v953_v32, 0.0  ;;  %v916_v41 = vmul.f32 %v1653_v56, %v855_v33  ;;  %v609_v42 = vpop.f32.mrb[44].mxu0  ;;  %v1214_v44 = vpop.f32.mrb[44].mxu1 }
 0x173   : > { %1013 = vst.msk [vmem:[%s1667_s30 + $0xa0] sm:$0xff] %vm336_vm0, %v981_v34  ;;  %1018 = vst.msk [vmem:[%s1667_s30 + $0xc8] sm:$0xff] %vm336_vm0, %v986_v36  ;;  %v950_v35 = vadd.f32 %v1658_v61, %v911_v37  ;;  %v956_v31 = vadd.f32 %v1658_v61, %v917_v38  ;;  %v835_v45 = vadd.f32 %v834_v7, %v609_v42  ;;  %v864_v49 = vpop.f32.mrb[45].mxu1  ;;  %v611_v50 = vpop.f32.mrb[45].mxu0 }
 0x174   : > { %v870_v46 = vadd.f32 %v1214_v44, %v1644_v43  ;;  %1017 = vst.msk [vmem:[%s1667_s30 + $0xc0] sm:$0xff] %vm336_vm0, %v985_v40  ;;  %v955_v48 = vadd.f32 %v1658_v61, %v916_v41  ;;  %v865_v52 = vadd.f32 %v864_v49, %v1642_v39 }
 0x175   : > { %v982_v53 = vmax.f32 %v950_v35, 0.0  ;;  %v988_v54 = vmax.f32 %v956_v31, 0.0  ;;  %v912_v55 = vmul.f32 %v1653_v56, %v835_v45 }
 0x176   : > { %v919_v58 = vmul.f32 %v1653_v56, %v870_v46  ;;  %v987_v59 = vmax.f32 %v955_v48, 0.0  ;;  %v918_v60 = vmul.f32 %v1653_v56, %v865_v52  ;;  %v614_v62 = vpop.f32.mrb[46].mxu0  ;;  %v1217_v43 = vpop.f32.mrb[46].mxu1 }
 0x177   : > { %1014 = vst.msk [vmem:[%s1667_s30 + $0xa8] sm:$0xff] %vm336_vm0, %v982_v53  ;;  %1020 = vst.msk [vmem:[%s1667_s30 + $0xd8] sm:$0xff] %vm336_vm0, %v988_v54  ;;  %v951_v63 = vadd.f32 %v1658_v61, %v912_v55  ;;  %v840_v0 = vadd.f32 %v1737_v4, %v614_v62  ;;  %v880_v1 = vadd.f32 %v1217_v43, %v1648_v51  ;;  %v874_v57 = vpop.f32.mrb[47].mxu1  ;;  %v616_v2 = vpop.f32.mrb[47].mxu0 }
 0x178   : > { %v958_v39 = vadd.f32 %v1658_v61, %v919_v58  ;;  %1019 = vst.msk [vmem:[%s1667_s30 + $0xd0] sm:$0xff] %vm336_vm0, %v987_v59  ;;  %v957_v3 = vadd.f32 %v1658_v61, %v918_v60  ;;  %v875_v5 = vadd.f32 %v874_v57, %v1646_v47 }
 0x179   : > { %v983_v6 = vmax.f32 %v951_v63, 0.0  ;;  %v913_v8 = vmul.f32 %v1653_v56, %v840_v0  ;;  %v921_v4 = vmul.f32 %v1653_v56, %v880_v1 }
 0x17a   : > { %v990_v7 = vmax.f32 %v958_v39, 0.0  ;;  %v989_v9 = vmax.f32 %v957_v3, 0.0  ;;  %v920_v51 = vmul.f32 %v1653_v56, %v875_v5 }
 0x17b   : > { %1015 = vst.msk [vmem:[%s1667_s30 + $0xb0] sm:$0xff] %vm336_vm0, %v983_v6  ;;  %v952_v10 = vadd.f32 %v1658_v61, %v913_v8  ;;  %v960_v47 = vadd.f32 %v1658_v61, %v921_v4 }
 0x17c   : > { %1022 = vst.msk [vmem:[%s1667_s30 + $0xe8] sm:$0xff] %vm336_vm0, %v990_v7  ;;  %1021 = vst.msk [vmem:[%s1667_s30 + $0xe0] sm:$0xff] %vm336_vm0, %v989_v9  ;;  %v959_v11 = vadd.f32 %v1658_v61, %v920_v51 }
 0x17d   : > { %v984_v12 = vmax.f32 %v952_v10, 0.0  ;;  %v992_v13 = vmax.f32 %v960_v47, 0.0 }
 0x17e   : > { %v991_v14 = vmax.f32 %v959_v11, 0.0 }
 0x17f   : > { %1016 = vst.msk [vmem:[%s1667_s30 + $0xb8] sm:$0xff] %vm336_vm0, %v984_v12  ;;  %1024 = vst.msk [vmem:[%s1667_s30 + $0xf8] sm:$0xff] %vm336_vm0, %v992_v13 }
 0x180   : > { %1023 = vst.msk [vmem:[%s1667_s30 + $0xf0] sm:$0xff] %vm336_vm0, %v991_v14 }
 0x181 PF: > { %s14_s15 = sadd.s32 1, %s1322_s15  }
 0x182   : > { %p11_p4 = scmp.ge.s32.totalorder %s14_s15, 4  }
 0x184   :  { %13 = sbr.rel (!%p11_p4) target bundleno = 1 (0x1), region = 66 }

// kernel: adapted_inception_forward.6
= control target key start
LH: loop header
LB: loop body
LE: loop exit
PB: predicated region body
PF: predicated region fallthrough
CT: control target
= control target key end

     0   :  { %s1351_s15 = smov 0   ;;  %s1809_s0 = inlined_call_operand.vmem [shape: f32[512,288], index: 0, kind: input, shape index: {}]   ;;  %s1810_s1 = inlined_call_operand.vmem [shape: f32[288,64], index: 1, kind: input, shape index: {}]   ;;  %s1811_s2 = inlined_call_operand.vmem [shape: f32[1,64], index: 2, kind: input, shape index: {}]   ;;  %s1812_s3 = inlined_call_operand.vmem [shape: f32[1,64], index: 3, kind: input, shape index: {}]   ;;  %s1813_s4 = inlined_call_operand.vmem [shape: f32[512,64], index: 4, kind: output, shape index: {}]  }
   0x1 LB: > { %s1082_s16 = sadd.s32 4294967295, %s1323_s15   ;;  %p1086_p0 = scmp.ge.s32.totalorder %s1323_s15, 1  ;;  %s1323_s15 = sphi %s1351_s15, %s14_s15  }
   0x2   : > { %p164_p1 = scmp.lt.s32.totalorder %s1323_s15, 3 }
   0x4   : > { %p165_p2 = pnand %p1086_p0, %p164_p1 }
   0x5   : > { %v300_v0 = vld [vmem:[%s1810_s1] sm:$0xff] (!%p165_p2)  ;;  %v301_v1 = vld [vmem:[%s1810_s1 + $0x8] sm:$0xff] (!%p165_p2)  ;;  %v302_v2 = vld [vmem:[%s1810_s1 + $0x10] sm:$0xff] (!%p165_p2)  ;;  %s1087_s23 = sshll.u32 (!%p165_p2), %s1082_s16, 5  ;;  %v1325_v3 = vmov (!%p165_p2), 0.0|0.0   ;;  %vm336_vm0 = vcmask (!%p165_p2), 261120  }
   0x6   : > { %168 = sbr.rel (%p165_p2) target bundleno = 385 (0x181), region = 36  ;;  %1219 = vmatprep.subr.bf16.mxu0 (!%p165_p2), %v1325_v3  ;;  %1275 = vmatprep.subr.bf16.mxu1 (!%p165_p2), %v1325_v3  ;;  %v1220_v4 = vpack.c.bf16 (!%p165_p2), %v301_v1, %v300_v0  ;;  %v303_v5 = vld [vmem:[%s1810_s1 + $0x18] sm:$0xff] (!%p165_p2)  ;;  %p192_p3 = scmp.lt.s32.totalorder (!%p165_p2), %s1087_s23, 63  ;;  %v304_v7 = vld [vmem:[%s1810_s1 + $0x20] sm:$0xff] (!%p165_p2)  ;;  %v305_v8 = vld [vmem:[%s1810_s1 + $0x28] sm:$0xff] (!%p165_p2)  ;;  %vm993_vm1 = vcmask (!%p165_p2), 523264  }
   0x7   : > { %v1223_v6 = vpack.c.bf16 (!%p165_p2), %v303_v5, %v302_v2  ;;  %v1226_v9 = vpack.c.bf16 (!%p165_p2), %v305_v8, %v304_v7  ;;  %v306_v10 = vld [vmem:[%s1810_s1 + $0x30] sm:$0xff] (!%p165_p2)  ;;  %v307_v11 = vld [vmem:[%s1810_s1 + $0x38] sm:$0xff] (!%p165_p2)  ;;  %v308_v15 = vld [vmem:[%s1810_s1 + $0x40] sm:$0xff] (!%p165_p2) }
   0x8   : > { %1221 = vmatpush1.bf16.msra.mxu0 (!%p165_p2), %v1220_v4  ;;  %1291 = vmatpush1.bf16.msra.mxu1 (!%p165_p2), %v1220_v4  ;;  %v1229_v13 = vpack.c.bf16 (!%p165_p2), %v307_v11, %v306_v10  ;;  %v309_v16 = vld [vmem:[%s1810_s1 + $0x48] sm:$0xff] (!%p165_p2)  ;;  %v310_v18 = vld [vmem:[%s1810_s1 + $0x50] sm:$0xff] (!%p165_p2)  ;;  %v311_v19 = vld [vmem:[%s1810_s1 + $0x58] sm:$0xff] (!%p165_p2) }
   0x9   : > { %1222 = vmatprep.subr.bf16.mxu0 (!%p165_p2), %v1325_v3  ;;  %1276 = vmatprep.subr.bf16.mxu1 (!%p165_p2), %v1325_v3  ;;  %v1232_v17 = vpack.c.bf16 (!%p165_p2), %v309_v16, %v308_v15  ;;  %v1235_v20 = vpack.c.bf16 (!%p165_p2), %v311_v19, %v310_v18  ;;  %v312_v21 = vld [vmem:[%s1810_s1 + $0x60] sm:$0xff] (!%p165_p2)  ;;  %v313_v22 = vld [vmem:[%s1810_s1 + $0x68] sm:$0xff] (!%p165_p2)  ;;  %v314_v24 = vld [vmem:[%s1810_s1 + $0x70] sm:$0xff] (!%p165_p2) }
   0xa   : > { %v1238_v23 = vpack.c.bf16 (!%p165_p2), %v313_v22, %v312_v21  ;;  %v315_v25 = vld [vmem:[%s1810_s1 + $0x78] sm:$0xff] (!%p165_p2)  ;;  %v316_v27 = vld [vmem:[%s1810_s1 + $0x80] sm:$0xff] (!%p165_p2)  ;;  %v317_v28 = vld [vmem:[%s1810_s1 + $0x88] sm:$0xff] (!%p165_p2) }
   0xb   : > { %v1241_v26 = vpack.c.bf16 (!%p165_p2), %v315_v25, %v314_v24  ;;  %v1244_v29 = vpack.c.bf16 (!%p165_p2), %v317_v28, %v316_v27  ;;  %v318_v30 = vld [vmem:[%s1810_s1 + $0x90] sm:$0xff] (!%p165_p2)  ;;  %v319_v31 = vld [vmem:[%s1810_s1 + $0x98] sm:$0xff] (!%p165_p2)  ;;  %v320_v33 = vld [vmem:[%s1810_s1 + $0xa0] sm:$0xff] (!%p165_p2) }
   0xc   : > { %1224 = vmatpush1.bf16.msra.mxu0 (!%p165_p2), %v1223_v6  ;;  %1292 = vmatpush1.bf16.msra.mxu1 (!%p165_p2), %v1223_v6  ;;  %v1247_v32 = vpack.c.bf16 (!%p165_p2), %v319_v31, %v318_v30  ;;  %v321_v34 = vld [vmem:[%s1810_s1 + $0xa8] sm:$0xff] (!%p165_p2)  ;;  %v322_v36 = vld [vmem:[%s1810_s1 + $0xb0] sm:$0xff] (!%p165_p2)  ;;  %v323_v37 = vld [vmem:[%s1810_s1 + $0xb8] sm:$0xff] (!%p165_p2) }
   0xd   : > { %s1815_s23 = smov (!%p192_p3, %s1087_s23), 63  ;;  %1225 = vmatprep.subr.bf16.mxu0 %v1325_v3  ;;  %1277 = vmatprep.subr.bf16.mxu1 %v1325_v3  ;;  %v1250_v35 = vpack.c.bf16 %v321_v34, %v320_v33  ;;  %v1253_v38 = vpack.c.bf16 %v323_v37, %v322_v36  ;;  %v324_v39 = vld [vmem:[%s1810_s1 + $0xc0] sm:$0xff]  ;;  %v325_v40 = vld [vmem:[%s1810_s1 + $0xc8] sm:$0xff]  ;;  %v326_v42 = vld [vmem:[%s1810_s1 + $0xd0] sm:$0xff] }
   0xe   : > { %s1307_s30 = smul.u32 24, %s1815_s23  ;;  %v1256_v41 = vpack.c.bf16 %v325_v40, %v324_v39  ;;  %v327_v43 = vld [vmem:[%s1810_s1 + $0xd8] sm:$0xff]  ;;  %v328_v45 = vld [vmem:[%s1810_s1 + $0xe0] sm:$0xff]  ;;  %v329_v46 = vld [vmem:[%s1810_s1 + $0xe8] sm:$0xff]  ;;  %s1090_s27 = sshll.u32 %s1815_s23, 3 }
   0xf   : > { %v1259_v44 = vpack.c.bf16 %v327_v43, %v326_v42  ;;  %v1262_v47 = vpack.c.bf16 %v329_v46, %v328_v45  ;;  %v330_v48 = vld [vmem:[%s1810_s1 + $0xf0] sm:$0xff]  ;;  %v331_v49 = vld [vmem:[%s1810_s1 + $0xf8] sm:$0xff]  ;;  %v332_v50 = vld [vmem:[%s1810_s1 + $0x100] sm:$0xff] }
  0x10   : > { %s1387_s7 = scalar_lea.vmem %s1809_s0, %s1307_s30  ;;  %1227 = vmatpush1.bf16.msra.mxu0 %v1226_v9  ;;  %1293 = vmatpush1.bf16.msra.mxu1 %v1226_v9  ;;  %v333_v51 = vld [vmem:[%s1810_s1 + $0x108] sm:$0xff]  ;;  %v1265_v52 = vpack.c.bf16 %v331_v49, %v330_v48  ;;  %v334_v54 = vld [vmem:[%s1810_s1 + $0x110] sm:$0xff]  ;;  %v335_v55 = vld [vmem:[%s1810_s1 + $0x118] sm:$0xff]  ;;  %s1668_s30 = scalar_lea.vmem %s1813_s4, %s1090_s27 }
  0x11   : > { %v205_v12 = vld [vmem:[%s1387_s7 + $0x8] sm:$0xff]  ;;  %1228 = vmatprep.subr.bf16.mxu0 %v1325_v3  ;;  %1278 = vmatprep.subr.bf16.mxu1 %v1325_v3  ;;  %v1267_v53 = vpack.c.bf16 %v333_v51, %v332_v50  ;;  %v204_v56 = vld [vmem:[%s1387_s7] sm:$0xff]  ;;  %v1271_v59 = vpack.c.bf16 %v335_v55, %v334_v54  ;;  %v207_v61 = vld [vmem:[%s1387_s7 + $0x18] sm:$0xff] }
  0x12   : > { %v277_v14 = vld [vmem:[%s1387_s7 + $0x248] sm:$0xff]  ;;  %497 = vmatprep.mubr.f32.mxu0 %v205_v12  ;;  %v276_v57 = vld [vmem:[%s1387_s7 + $0x240] sm:$0xff]  ;;  %v279_v62 = vld [vmem:[%s1387_s7 + $0x258] sm:$0xff] }
  0x13   : > { %617 = vmatprep.mubr.f32.mxu1 %v277_v14  ;;  %v208_v58 = vld [vmem:[%s1387_s7 + $0x20] sm:$0xff]  ;;  %v211_v63 = vld [vmem:[%s1387_s7 + $0x38] sm:$0xff]  ;;  %v210_v1 = vld [vmem:[%s1387_s7 + $0x30] sm:$0xff] }
  0x14   : > { %1230 = vmatpush1.bf16.msra.mxu0 %v1229_v13  ;;  %1294 = vmatpush1.bf16.msra.mxu1 %v1229_v13  ;;  %v280_v60 = vld [vmem:[%s1387_s7 + $0x260] sm:$0xff]  ;;  %v283_v0 = vld [vmem:[%s1387_s7 + $0x278] sm:$0xff]  ;;  %v282_v2 = vld [vmem:[%s1387_s7 + $0x270] sm:$0xff] }
  0x15   : > { %1231 = vmatprep.subr.bf16.mxu0 %v1325_v3  ;;  %1279 = vmatprep.subr.bf16.mxu1 %v1325_v3  ;;  %v286_v4 = vld [vmem:[%s1387_s7 + $0x290] sm:$0xff]  ;;  %v213_v5 = vld [vmem:[%s1387_s7 + $0x48] sm:$0xff]  ;;  %v216_v9 = vld [vmem:[%s1387_s7 + $0x60] sm:$0xff] }
  0x16   : > { %v285_v6 = vld [vmem:[%s1387_s7 + $0x288] sm:$0xff]  ;;  %v288_v10 = vld [vmem:[%s1387_s7 + $0x2a0] sm:$0xff]  ;;  %v219_v13 = vld [vmem:[%s1387_s7 + $0x78] sm:$0xff] }
  0x17   : > { %v217_v7 = vld [vmem:[%s1387_s7 + $0x68] sm:$0xff]  ;;  %v220_v11 = vld [vmem:[%s1387_s7 + $0x80] sm:$0xff]  ;;  %v291_v14 = vld [vmem:[%s1387_s7 + $0x2b8] sm:$0xff] }
  0x18   : > { %1233 = vmatpush1.bf16.msra.mxu0 %v1232_v17  ;;  %1295 = vmatpush1.bf16.msra.mxu1 %v1232_v17  ;;  %v289_v8 = vld [vmem:[%s1387_s7 + $0x2a8] sm:$0xff]  ;;  %v292_v12 = vld [vmem:[%s1387_s7 + $0x2c0] sm:$0xff]  ;;  %v223_v15 = vld [vmem:[%s1387_s7 + $0x98] sm:$0xff] }
  0x19   : > { %1234 = vmatprep.subr.bf16.mxu0 %v1325_v3  ;;  %1280 = vmatprep.subr.bf16.mxu1 %v1325_v3  ;;  %v295_v16 = vld [vmem:[%s1387_s7 + $0x2d8] sm:$0xff]  ;;  %v222_v17 = vld [vmem:[%s1387_s7 + $0x90] sm:$0xff]  ;;  %v225_v21 = vld [vmem:[%s1387_s7 + $0xa8] sm:$0xff] }
  0x1a   : > { %v294_v18 = vld [vmem:[%s1387_s7 + $0x2d0] sm:$0xff]  ;;  %v297_v22 = vld [vmem:[%s1387_s7 + $0x2e8] sm:$0xff]  ;;  %v228_v25 = vld [vmem:[%s1387_s7 + $0xc0] sm:$0xff] }
  0x1b   : > { %v226_v19 = vld [vmem:[%s1387_s7 + $0xb0] sm:$0xff]  ;;  %v232_v27 = vld [vmem:[%s1387_s7 + $0xe0] sm:$0xff]  ;;  %v215_v30 = vld [vmem:[%s1387_s7 + $0x58] sm:$0xff] }
  0x1c   : > { %1236 = vmatpush1.bf16.msra.mxu0 %v1235_v20  ;;  %1296 = vmatpush1.bf16.msra.mxu1 %v1235_v20  ;;  %v298_v20 = vld [vmem:[%s1387_s7 + $0x2f0] sm:$0xff]  ;;  %v212_v28 = vld [vmem:[%s1387_s7 + $0x40] sm:$0xff]  ;;  %v235_v31 = vld [vmem:[%s1387_s7 + $0xf8] sm:$0xff] }
  0x1d   : > { %1237 = vmatprep.subr.bf16.mxu0 %v1325_v3  ;;  %1281 = vmatprep.subr.bf16.mxu1 %v1325_v3  ;;  %v206_v24 = vld [vmem:[%s1387_s7 + $0x10] sm:$0xff]  ;;  %v221_v34 = vld [vmem:[%s1387_s7 + $0x88] sm:$0xff]  ;;  %v224_v36 = vld [vmem:[%s1387_s7 + $0xa0] sm:$0xff] }
  0x1e   : > { %v234_v33 = vld [vmem:[%s1387_s7 + $0xf0] sm:$0xff]  ;;  %v237_v37 = vld [vmem:[%s1387_s7 + $0x108] sm:$0xff]  ;;  %v244_v43 = vld [vmem:[%s1387_s7 + $0x140] sm:$0xff] }
  0x1f   : > { %v241_v39 = vld [vmem:[%s1387_s7 + $0x128] sm:$0xff]  ;;  %v230_v40 = vld [vmem:[%s1387_s7 + $0xd0] sm:$0xff]  ;;  %v243_v45 = vld [vmem:[%s1387_s7 + $0x138] sm:$0xff] }
  0x20   : > { %1239 = vmatpush1.bf16.msra.mxu0 %v1238_v23  ;;  %1297 = vmatpush1.bf16.msra.mxu1 %v1238_v23  ;;  %v229_v23 = vld [vmem:[%s1387_s7 + $0xc8] sm:$0xff]  ;;  %v239_v46 = vld [vmem:[%s1387_s7 + $0x118] sm:$0xff]  ;;  %v242_v48 = vld [vmem:[%s1387_s7 + $0x130] sm:$0xff] }
  0x21   : > { %1240 = vmatprep.subr.bf16.mxu0 %v1325_v3  ;;  %1282 = vmatprep.subr.bf16.mxu1 %v1325_v3  ;;  %v233_v42 = vld [vmem:[%s1387_s7 + $0xe8] sm:$0xff]  ;;  %v246_v49 = vld [vmem:[%s1387_s7 + $0x150] sm:$0xff]  ;;  %v251_v54 = vld [vmem:[%s1387_s7 + $0x178] sm:$0xff] }
  0x22   : > { %v245_v50 = vld [vmem:[%s1387_s7 + $0x148] sm:$0xff]  ;;  %v250_v51 = vld [vmem:[%s1387_s7 + $0x170] sm:$0xff] }
  0x23   : > { %v253_v55 = vld [vmem:[%s1387_s7 + $0x188] sm:$0xff] }
  0x24   : > { %1242 = vmatpush1.bf16.msra.mxu0 %v1241_v26  ;;  %1298 = vmatpush1.bf16.msra.mxu1 %v1241_v26  ;;  %v209_v26 = vld [vmem:[%s1387_s7 + $0x28] sm:$0xff] }
  0x25   : > { %1243 = vmatprep.subr.bf16.mxu0 %v1325_v3  ;;  %1283 = vmatprep.subr.bf16.mxu1 %v1325_v3 }
  0x28   : > { %1245 = vmatpush1.bf16.msra.mxu0 %v1244_v29  ;;  %1299 = vmatpush1.bf16.msra.mxu1 %v1244_v29  ;;  %v231_v29 = vld [vmem:[%s1387_s7 + $0xd8] sm:$0xff] }
  0x29   : > { %1246 = vmatprep.subr.bf16.mxu0 %v1325_v3  ;;  %1284 = vmatprep.subr.bf16.mxu1 %v1325_v3 }
  0x2c   : > { %1248 = vmatpush1.bf16.msra.mxu0 %v1247_v32  ;;  %1300 = vmatpush1.bf16.msra.mxu1 %v1247_v32  ;;  %v218_v32 = vld [vmem:[%s1387_s7 + $0x70] sm:$0xff] }
  0x2d   : > { %1249 = vmatprep.subr.bf16.mxu0 %v1325_v3  ;;  %1285 = vmatprep.subr.bf16.mxu1 %v1325_v3 }
  0x30   : > { %1251 = vmatpush1.bf16.msra.mxu0 %v1250_v35  ;;  %1301 = vmatpush1.bf16.msra.mxu1 %v1250_v35  ;;  %v238_v35 = vld [vmem:[%s1387_s7 + $0x110] sm:$0xff] }
  0x31   : > { %1252 = vmatprep.subr.bf16.mxu0 %v1325_v3  ;;  %1286 = vmatprep.subr.bf16.mxu1 %v1325_v3 }
  0x34   : > { %1254 = vmatpush1.bf16.msra.mxu0 %v1253_v38  ;;  %1302 = vmatpush1.bf16.msra.mxu1 %v1253_v38  ;;  %v227_v38 = vld [vmem:[%s1387_s7 + $0xb8] sm:$0xff] }
  0x35   : > { %1255 = vmatprep.subr.bf16.mxu0 %v1325_v3  ;;  %1287 = vmatprep.subr.bf16.mxu1 %v1325_v3 }
  0x38   : > { %1257 = vmatpush1.bf16.msra.mxu0 %v1256_v41  ;;  %1303 = vmatpush1.bf16.msra.mxu1 %v1256_v41  ;;  %v240_v41 = vld [vmem:[%s1387_s7 + $0x120] sm:$0xff] }
  0x39   : > { %1258 = vmatprep.subr.bf16.mxu0 %v1325_v3  ;;  %1288 = vmatprep.subr.bf16.mxu1 %v1325_v3 }
  0x3c   : > { %1260 = vmatpush1.bf16.msra.mxu0 %v1259_v44  ;;  %1304 = vmatpush1.bf16.msra.mxu1 %v1259_v44  ;;  %v236_v44 = vld [vmem:[%s1387_s7 + $0x100] sm:$0xff] }
  0x3d   : > { %1261 = vmatprep.subr.bf16.mxu0 %v1325_v3  ;;  %1289 = vmatprep.subr.bf16.mxu1 %v1325_v3 }
  0x40   : > { %1263 = vmatpush1.bf16.msra.mxu0 %v1262_v47  ;;  %1305 = vmatpush1.bf16.msra.mxu1 %v1262_v47  ;;  %v247_v47 = vld [vmem:[%s1387_s7 + $0x158] sm:$0xff] }
  0x41   : > { %1264 = vmatprep.subr.bf16.mxu0 %v1325_v3  ;;  %1290 = vmatprep.subr.bf16.mxu1 %v1325_v3  ;;  %v214_v3 = vld [vmem:[%s1387_s7 + $0x50] sm:$0xff] }
  0x44   : > { %1266 = vmatpush1.bf16.msra.mxu0 %v1265_v52  ;;  %1306 = vmatpush1.bf16.msra.mxu1 %v1265_v52  ;;  %v248_v52 = vld [vmem:[%s1387_s7 + $0x160] sm:$0xff] }
  0x45   : > { %1268 = vmatprep.subr.bf16.mxu1 %v1267_v53 }
  0x47   : > { %498 = vmatmul.mubr.f32.vlgmr.msra.gmra.mrb[0].mxu0 %v204_v56  ;;  %618 = vmatmul.mubr.f32.vlgmr.msra.gmra.mrb[0].mxu1 %v276_v57  ;;  %v254_v56 = vld [vmem:[%s1387_s7 + $0x190] sm:$0xff]  ;;  %v252_v57 = vld [vmem:[%s1387_s7 + $0x180] sm:$0xff] }
  0x48   : > { %1270 = vmatpush3.bf16.msra.mxu1 %v1267_v53  ;;  %502 = vmatprep.mubr.f32.mxu0 %v208_v58  ;;  %v249_v53 = vld [vmem:[%s1387_s7 + $0x168] sm:$0xff] }
  0x49   : > { %622 = vmatprep.mubr.f32.mxu1 %v280_v60  ;;  %1272 = vmatprep.subr.bf16.mxu1 %v1271_v59  ;;  %v257_v58 = vld [vmem:[%s1387_s7 + $0x1a8] sm:$0xff]  ;;  %v260_v60 = vld [vmem:[%s1387_s7 + $0x1c0] sm:$0xff] }
  0x4b   : > { %503 = vmatmul.mubr.f32.gmra.mrb[2].mxu0 %v207_v61  ;;  %623 = vmatmul.mubr.f32.gmra.mrb[2].mxu1 %v279_v62  ;;  %v255_v61 = vld [vmem:[%s1387_s7 + $0x198] sm:$0xff] }
  0x4c   : > { %507 = vmatprep.mubr.f32.mxu0 %v211_v63  ;;  %627 = vmatprep.mubr.f32.mxu1 %v283_v0  ;;  %v263_v62 = vld [vmem:[%s1387_s7 + $0x1d8] sm:$0xff]  ;;  %v266_v0 = vld [vmem:[%s1387_s7 + $0x1f0] sm:$0xff] }
  0x4d   : > { %1274 = vmatpush3.bf16.msra.mxu1 %v1271_v59  ;;  %v256_v59 = vld [vmem:[%s1387_s7 + $0x1a0] sm:$0xff]  ;;  %v259_v63 = vld [vmem:[%s1387_s7 + $0x1b8] sm:$0xff] }
  0x4f   : > { %508 = vmatmul.mubr.f32.gmra.mrb[4].mxu0 %v210_v1  ;;  %628 = vmatmul.mubr.f32.gmra.mrb[4].mxu1 %v282_v2  ;;  %v258_v1 = vld [vmem:[%s1387_s7 + $0x1b0] sm:$0xff]  ;;  %v269_v2 = vld [vmem:[%s1387_s7 + $0x208] sm:$0xff] }
  0x50   : > { %512 = vmatprep.mubr.f32.mxu0 %v214_v3  ;;  %632 = vmatprep.mubr.f32.mxu1 %v286_v4  ;;  %v262_v3 = vld [vmem:[%s1387_s7 + $0x1d0] sm:$0xff]  ;;  %v272_v4 = vld [vmem:[%s1387_s7 + $0x220] sm:$0xff] }
  0x53   : > { %513 = vmatmul.mubr.f32.gmra.mrb[6].mxu0 %v213_v5  ;;  %633 = vmatmul.mubr.f32.gmra.mrb[6].mxu1 %v285_v6  ;;  %v261_v5 = vld [vmem:[%s1387_s7 + $0x1c8] sm:$0xff]  ;;  %v275_v6 = vld [vmem:[%s1387_s7 + $0x238] sm:$0xff] }
  0x54   : > { %517 = vmatprep.mubr.f32.mxu0 %v217_v7  ;;  %637 = vmatprep.mubr.f32.mxu1 %v289_v8  ;;  %v265_v7 = vld [vmem:[%s1387_s7 + $0x1e8] sm:$0xff]  ;;  %v278_v8 = vld [vmem:[%s1387_s7 + $0x250] sm:$0xff] }
  0x57   : > { %518 = vmatmul.mubr.f32.gmra.mrb[8].mxu0 %v216_v9  ;;  %638 = vmatmul.mubr.f32.gmra.mrb[8].mxu1 %v288_v10  ;;  %v264_v9 = vld [vmem:[%s1387_s7 + $0x1e0] sm:$0xff]  ;;  %v281_v10 = vld [vmem:[%s1387_s7 + $0x268] sm:$0xff] }
  0x58   : > { %522 = vmatprep.mubr.f32.mxu0 %v220_v11  ;;  %642 = vmatprep.mubr.f32.mxu1 %v292_v12  ;;  %v268_v11 = vld [vmem:[%s1387_s7 + $0x200] sm:$0xff] }
  0x59   : > { %v284_v12 = vld [vmem:[%s1387_s7 + $0x280] sm:$0xff] }
  0x5b   : > { %523 = vmatmul.mubr.f32.gmra.mrb[10].mxu0 %v219_v13  ;;  %643 = vmatmul.mubr.f32.gmra.mrb[10].mxu1 %v291_v14  ;;  %v267_v13 = vld [vmem:[%s1387_s7 + $0x1f8] sm:$0xff] }
  0x5c   : > { %527 = vmatprep.mubr.f32.mxu0 %v223_v15  ;;  %647 = vmatprep.mubr.f32.mxu1 %v295_v16  ;;  %v287_v14 = vld [vmem:[%s1387_s7 + $0x298] sm:$0xff]  ;;  %v290_v16 = vld [vmem:[%s1387_s7 + $0x2b0] sm:$0xff] }
  0x5d   : > { %v271_v15 = vld [vmem:[%s1387_s7 + $0x218] sm:$0xff] }
  0x5f   : > { %528 = vmatmul.mubr.f32.gmra.mrb[12].mxu0 %v222_v17  ;;  %648 = vmatmul.mubr.f32.gmra.mrb[12].mxu1 %v294_v18  ;;  %v270_v17 = vld [vmem:[%s1387_s7 + $0x210] sm:$0xff]  ;;  %v293_v18 = vld [vmem:[%s1387_s7 + $0x2c8] sm:$0xff] }
  0x60   : > { %532 = vmatprep.mubr.f32.mxu0 %v226_v19  ;;  %652 = vmatprep.mubr.f32.mxu1 %v298_v20  ;;  %v274_v19 = vld [vmem:[%s1387_s7 + $0x230] sm:$0xff]  ;;  %v296_v20 = vld [vmem:[%s1387_s7 + $0x2e0] sm:$0xff] }
  0x63   : > { %533 = vmatmul.mubr.f32.gmra.mrb[14].mxu0 %v225_v21  ;;  %653 = vmatmul.mubr.f32.gmra.mrb[14].mxu1 %v297_v22  ;;  %v273_v21 = vld [vmem:[%s1387_s7 + $0x228] sm:$0xff]  ;;  %v299_v22 = vld [vmem:[%s1387_s7 + $0x2f8] sm:$0xff] }
  0x64   : > { %537 = vmatprep.mubr.f32.mxu0 %v229_v23  ;;  %1171 = vmatprep.mubr.msk.f32.mxu1 %vm336_vm0, %v206_v24 }
  0x67   : > { %538 = vmatmul.mubr.f32.gmra.mrb[16].mxu0 %v228_v25  ;;  %1172 = vmatmul.mubr.msk.f32.vlgmr.msra.gmra.mrb[16].mxu1 %vm336_vm0, %v209_v26 }
  0x68   : > { %542 = vmatprep.mubr.f32.mxu0 %v232_v27  ;;  %1174 = vmatprep.mubr.msk.f32.mxu1 %vm336_vm0, %v212_v28 }
  0x6b   : > { %543 = vmatmul.mubr.f32.gmra.mrb[18].mxu0 %v231_v29  ;;  %1175 = vmatmul.mubr.msk.f32.gmra.mrb[18].mxu1 %vm336_vm0, %v215_v30 }
  0x6c   : > { %547 = vmatprep.mubr.f32.mxu0 %v235_v31  ;;  %1177 = vmatprep.mubr.msk.f32.mxu1 %vm336_vm0, %v218_v32 }
  0x6f   : > { %548 = vmatmul.mubr.f32.gmra.mrb[20].mxu0 %v234_v33  ;;  %1178 = vmatmul.mubr.msk.f32.gmra.mrb[20].mxu1 %vm336_vm0, %v221_v34 }
  0x70   : > { %552 = vmatprep.mubr.f32.mxu0 %v238_v35  ;;  %1180 = vmatprep.mubr.msk.f32.mxu1 %vm336_vm0, %v224_v36 }
  0x73   : > { %553 = vmatmul.mubr.f32.gmra.mrb[22].mxu0 %v237_v37  ;;  %1181 = vmatmul.mubr.msk.f32.gmra.mrb[22].mxu1 %vm336_vm0, %v227_v38 }
  0x74   : > { %557 = vmatprep.mubr.f32.mxu0 %v241_v39  ;;  %1183 = vmatprep.mubr.msk.f32.mxu1 %vm336_vm0, %v230_v40 }
  0x77   : > { %558 = vmatmul.mubr.f32.gmra.mrb[24].mxu0 %v240_v41  ;;  %1184 = vmatmul.mubr.msk.f32.gmra.mrb[24].mxu1 %vm336_vm0, %v233_v42 }
  0x78   : > { %562 = vmatprep.mubr.f32.mxu0 %v244_v43  ;;  %1186 = vmatprep.mubr.msk.f32.mxu1 %vm336_vm0, %v236_v44 }
  0x7b   : > { %563 = vmatmul.mubr.f32.gmra.mrb[26].mxu0 %v243_v45  ;;  %1187 = vmatmul.mubr.msk.f32.gmra.mrb[26].mxu1 %vm336_vm0, %v239_v46 }
  0x7c   : > { %567 = vmatprep.mubr.f32.mxu0 %v247_v47  ;;  %1189 = vmatprep.mubr.msk.f32.mxu1 %vm336_vm0, %v242_v48 }
  0x7f   : > { %568 = vmatmul.mubr.f32.gmra.mrb[28].mxu0 %v246_v49  ;;  %1190 = vmatmul.mubr.msk.f32.gmra.mrb[28].mxu1 %vm336_vm0, %v245_v50 }
  0x80   : > { %572 = vmatprep.mubr.f32.mxu0 %v250_v51  ;;  %1192 = vmatprep.mubr.msk.f32.mxu1 %vm336_vm0, %v248_v52 }
  0x83   : > { %573 = vmatmul.mubr.f32.gmra.mrb[30].mxu0 %v249_v53  ;;  %1193 = vmatmul.mubr.msk.f32.gmra.mrb[30].mxu1 %vm336_vm0, %v251_v54 }
  0x84   : > { %577 = vmatprep.mubr.f32.mxu0 %v253_v55  ;;  %1195 = vmatprep.mubr.msk.f32.mxu1 %vm336_vm0, %v254_v56  ;;  %v1654_v56 = vld [vmem:[%s1811_s2] ss:$0 sm:$0xff] }
  0x87   : > { %578 = vmatmul.mubr.f32.gmra.mrb[32].mxu0 %v252_v57  ;;  %1196 = vmatmul.mubr.msk.f32.gmra.mrb[32].mxu1 %vm336_vm0, %v257_v58 }
  0x88   : > { %582 = vmatprep.mubr.f32.mxu0 %v256_v59  ;;  %1198 = vmatprep.mubr.msk.f32.mxu1 %vm336_vm0, %v260_v60 }
  0x8b   : > { %583 = vmatmul.mubr.f32.gmra.mrb[34].mxu0 %v255_v61  ;;  %1199 = vmatmul.mubr.msk.f32.gmra.mrb[34].mxu1 %vm336_vm0, %v263_v62  ;;  %v1659_v61 = vld [vmem:[%s1812_s3] ss:$0 sm:$0xff] }
  0x8c   : > { %587 = vmatprep.mubr.f32.mxu0 %v259_v63  ;;  %1201 = vmatprep.mubr.msk.f32.mxu1 %vm336_vm0, %v266_v0 }
  0x8f   : > { %588 = vmatmul.mubr.f32.gmra.mrb[36].mxu0 %v258_v1  ;;  %1202 = vmatmul.mubr.msk.f32.gmra.mrb[36].mxu1 %vm336_vm0, %v269_v2 }
  0x90   : > { %592 = vmatprep.mubr.f32.mxu0 %v262_v3  ;;  %1204 = vmatprep.mubr.msk.f32.mxu1 %vm336_vm0, %v272_v4 }
  0x93   : > { %593 = vmatmul.mubr.f32.gmra.mrb[38].mxu0 %v261_v5  ;;  %1205 = vmatmul.mubr.msk.f32.gmra.mrb[38].mxu1 %vm336_vm0, %v275_v6 }
  0x94   : > { %597 = vmatprep.mubr.f32.mxu0 %v265_v7  ;;  %1207 = vmatprep.mubr.msk.f32.mxu1 %vm336_vm0, %v278_v8 }
  0x97   : > { %598 = vmatmul.mubr.f32.gmra.mrb[40].mxu0 %v264_v9  ;;  %1208 = vmatmul.mubr.msk.f32.gmra.mrb[40].mxu1 %vm336_vm0, %v281_v10 }
  0x98   : > { %602 = vmatprep.mubr.f32.mxu0 %v268_v11  ;;  %1210 = vmatprep.mubr.msk.f32.mxu1 %vm336_vm0, %v284_v12 }
  0x9b   : > { %603 = vmatmul.mubr.f32.gmra.mrb[42].mxu0 %v267_v13  ;;  %1211 = vmatmul.mubr.msk.f32.gmra.mrb[42].mxu1 %vm336_vm0, %v287_v14 }
  0x9c   : > { %607 = vmatprep.mubr.f32.mxu0 %v271_v15  ;;  %1213 = vmatprep.mubr.msk.f32.mxu1 %vm336_vm0, %v290_v16 }
  0x9f   : > { %608 = vmatmul.mubr.f32.gmra.mrb[44].mxu0 %v270_v17  ;;  %1214 = vmatmul.mubr.msk.f32.gmra.mrb[44].mxu1 %vm336_vm0, %v293_v18 }
  0xa0   : > { %612 = vmatprep.mubr.f32.mxu0 %v274_v19  ;;  %1216 = vmatprep.mubr.msk.f32.mxu1 %vm336_vm0, %v296_v20 }
  0xa3   : > { %613 = vmatmul.mubr.f32.gmra.mrb[46].mxu0 %v273_v21  ;;  %1217 = vmatmul.mubr.msk.f32.gmra.mrb[46].mxu1 %vm336_vm0, %v299_v22 }
 0x11a   : > { %v1635_v23 = vpop.f32.mrb[0].mxu1  ;;  %v499_v24 = vpop.f32.mrb[0].mxu0 }
 0x11b   : > { %v621_v25 = vpop.f32.mrb[1].mxu1  ;;  %v501_v26 = vpop.f32.mrb[1].mxu0 }
 0x11e   : > { %v1637_v27 = vpop.f32.mrb[2].mxu1  ;;  %v504_v28 = vpop.f32.mrb[2].mxu0 }
 0x11f   : > { %v626_v29 = vpop.f32.mrb[3].mxu1  ;;  %v506_v30 = vpop.f32.mrb[3].mxu0 }
 0x122   : > { %v1639_v31 = vpop.f32.mrb[4].mxu1  ;;  %v509_v32 = vpop.f32.mrb[4].mxu0 }
 0x123   : > { %v631_v33 = vpop.f32.mrb[5].mxu1  ;;  %v511_v34 = vpop.f32.mrb[5].mxu0 }
 0x126   : > { %v1641_v35 = vpop.f32.mrb[6].mxu1  ;;  %v514_v36 = vpop.f32.mrb[6].mxu0 }
 0x127   : > { %v636_v37 = vpop.f32.mrb[7].mxu1  ;;  %v516_v38 = vpop.f32.mrb[7].mxu0 }
 0x12a   : > { %v1643_v39 = vpop.f32.mrb[8].mxu1  ;;  %v519_v40 = vpop.f32.mrb[8].mxu0 }
 0x12b   : > { %v641_v41 = vpop.f32.mrb[9].mxu1  ;;  %v521_v42 = vpop.f32.mrb[9].mxu0 }
 0x12e   : > { %v1645_v43 = vpop.f32.mrb[10].mxu1  ;;  %v524_v44 = vpop.f32.mrb[10].mxu0 }
 0x12f   : > { %v646_v45 = vpop.f32.mrb[11].mxu1  ;;  %v526_v46 = vpop.f32.mrb[11].mxu0 }
 0x132   : > { %v1647_v47 = vpop.f32.mrb[12].mxu1  ;;  %v529_v48 = vpop.f32.mrb[12].mxu0 }
 0x133   : > { %v651_v49 = vpop.f32.mrb[13].mxu1  ;;  %v531_v50 = vpop.f32.mrb[13].mxu0 }
 0x136   : > { %v1649_v51 = vpop.f32.mrb[14].mxu1  ;;  %v534_v52 = vpop.f32.mrb[14].mxu0 }
 0x137   : > { %v656_v53 = vpop.f32.mrb[15].mxu1  ;;  %v536_v54 = vpop.f32.mrb[15].mxu0 }
 0x13a   : > { %v1173_v55 = vpop.f32.mrb[16].mxu1  ;;  %v539_v57 = vpop.f32.mrb[16].mxu0 }
 0x13b   : > { %v730_v58 = vadd.f32 %v1173_v55, %v504_v28  ;;  %v724_v59 = vpop.f32.mrb[17].mxu1  ;;  %v541_v60 = vpop.f32.mrb[17].mxu0 }
 0x13c   : > { %v725_v62 = vadd.f32 %v724_v59, %v499_v24 }
 0x13d   : > { %v891_v63 = vmul.f32 %v1654_v56, %v730_v58 }
 0x13e   : > { %v890_v0 = vmul.f32 %v1654_v56, %v725_v62  ;;  %v1176_v1 = vpop.f32.mrb[18].mxu1  ;;  %v544_v2 = vpop.f32.mrb[18].mxu0 }
 0x13f   : > { %v930_v3 = vadd.f32 %v1659_v61, %v891_v63  ;;  %v740_v4 = vadd.f32 %v1176_v1, %v514_v36  ;;  %v734_v5 = vpop.f32.mrb[19].mxu1  ;;  %v546_v6 = vpop.f32.mrb[19].mxu0 }
 0x140   : > { %v929_v7 = vadd.f32 %v1659_v61, %v890_v0  ;;  %v735_v8 = vadd.f32 %v734_v5, %v509_v32 }
 0x141   : > { %v962_v9 = vmax.f32 %v930_v3, 0.0  ;;  %v893_v10 = vmul.f32 %v1654_v56, %v740_v4 }
 0x142   : > { %v961_v11 = vmax.f32 %v929_v7, 0.0  ;;  %v892_v12 = vmul.f32 %v1654_v56, %v735_v8  ;;  %v1179_v13 = vpop.f32.mrb[20].mxu1  ;;  %v549_v14 = vpop.f32.mrb[20].mxu0 }
 0x143   : > { %995 = vst.msk [vmem:[%s1668_s30 + $0x8] sm:$0xff] %vm993_vm1, %v962_v9  ;;  %v932_v15 = vadd.f32 %v1659_v61, %v893_v10  ;;  %v750_v16 = vadd.f32 %v1179_v13, %v524_v44  ;;  %v744_v17 = vpop.f32.mrb[21].mxu1  ;;  %v551_v18 = vpop.f32.mrb[21].mxu0 }
 0x144   : > { %994 = vst.msk [vmem:[%s1668_s30] sm:$0xff] %vm993_vm1, %v961_v11  ;;  %v931_v19 = vadd.f32 %v1659_v61, %v892_v12  ;;  %v745_v20 = vadd.f32 %v744_v17, %v519_v40 }
 0x145   : > { %v964_v21 = vmax.f32 %v932_v15, 0.0  ;;  %v895_v22 = vmul.f32 %v1654_v56, %v750_v16 }
 0x146   : > { %v963_v24 = vmax.f32 %v931_v19, 0.0  ;;  %v894_v25 = vmul.f32 %v1654_v56, %v745_v20  ;;  %v1182_v26 = vpop.f32.mrb[22].mxu1  ;;  %v554_v28 = vpop.f32.mrb[22].mxu0 }
 0x147   : > { %997 = vst.msk [vmem:[%s1668_s30 + $0x18] sm:$0xff] %vm993_vm1, %v964_v21  ;;  %v934_v29 = vadd.f32 %v1659_v61, %v895_v22  ;;  %v760_v30 = vadd.f32 %v1182_v26, %v534_v52  ;;  %v754_v32 = vpop.f32.mrb[23].mxu1  ;;  %v556_v33 = vpop.f32.mrb[23].mxu0 }
 0x148   : > { %996 = vst.msk [vmem:[%s1668_s30 + $0x10] sm:$0xff] %vm993_vm1, %v963_v24  ;;  %v933_v34 = vadd.f32 %v1659_v61, %v894_v25  ;;  %v755_v36 = vadd.f32 %v754_v32, %v529_v48 }
 0x149   : > { %v966_v37 = vmax.f32 %v934_v29, 0.0  ;;  %v897_v38 = vmul.f32 %v1654_v56, %v760_v30 }
 0x14a   : > { %v965_v40 = vmax.f32 %v933_v34, 0.0  ;;  %v896_v41 = vmul.f32 %v1654_v56, %v755_v36  ;;  %v1185_v42 = vpop.f32.mrb[24].mxu1  ;;  %v559_v44 = vpop.f32.mrb[24].mxu0 }
 0x14b   : > { %999 = vst.msk [vmem:[%s1668_s30 + $0x28] sm:$0xff] %vm993_vm1, %v966_v37  ;;  %v936_v45 = vadd.f32 %v1659_v61, %v897_v38  ;;  %v770_v46 = vadd.f32 %v1185_v42, %v544_v2  ;;  %v764_v49 = vpop.f32.mrb[25].mxu1  ;;  %v561_v50 = vpop.f32.mrb[25].mxu0 }
 0x14c   : > { %998 = vst.msk [vmem:[%s1668_s30 + $0x20] sm:$0xff] %vm993_vm1, %v965_v40  ;;  %v935_v48 = vadd.f32 %v1659_v61, %v896_v41  ;;  %v765_v52 = vadd.f32 %v764_v49, %v539_v57 }
 0x14d   : > { %v968_v53 = vmax.f32 %v936_v45, 0.0  ;;  %v899_v54 = vmul.f32 %v1654_v56, %v770_v46 }
 0x14e   : > { %v967_v55 = vmax.f32 %v935_v48, 0.0  ;;  %v898_v58 = vmul.f32 %v1654_v56, %v765_v52  ;;  %v1188_v59 = vpop.f32.mrb[26].mxu1  ;;  %v564_v60 = vpop.f32.mrb[26].mxu0 }
 0x14f   : > { %1001 = vst.msk [vmem:[%s1668_s30 + $0x38] sm:$0xff] %vm993_vm1, %v968_v53  ;;  %v938_v62 = vadd.f32 %v1659_v61, %v899_v54  ;;  %v780_v63 = vadd.f32 %v1188_v59, %v554_v28  ;;  %v774_v0 = vpop.f32.mrb[27].mxu1  ;;  %v566_v1 = vpop.f32.mrb[27].mxu0 }
 0x150   : > { %1000 = vst.msk [vmem:[%s1668_s30 + $0x30] sm:$0xff] %vm993_vm1, %v967_v55  ;;  %v937_v57 = vadd.f32 %v1659_v61, %v898_v58  ;;  %v775_v2 = vadd.f32 %v774_v0, %v549_v14 }
 0x151   : > { %v970_v3 = vmax.f32 %v938_v62, 0.0  ;;  %v901_v4 = vmul.f32 %v1654_v56, %v780_v63 }
 0x152   : > { %v969_v5 = vmax.f32 %v937_v57, 0.0  ;;  %v900_v6 = vmul.f32 %v1654_v56, %v775_v2  ;;  %v1191_v7 = vpop.f32.mrb[28].mxu1  ;;  %v569_v8 = vpop.f32.mrb[28].mxu0 }
 0x153   : > { %1003 = vst.msk [vmem:[%s1668_s30 + $0x48] sm:$0xff] %vm993_vm1, %v970_v3  ;;  %v940_v9 = vadd.f32 %v1659_v61, %v901_v4  ;;  %v790_v10 = vadd.f32 %v1191_v7, %v564_v60  ;;  %v784_v11 = vpop.f32.mrb[29].mxu1  ;;  %v571_v12 = vpop.f32.mrb[29].mxu0 }
 0x154   : > { %1002 = vst.msk [vmem:[%s1668_s30 + $0x40] sm:$0xff] %vm993_vm1, %v969_v5  ;;  %v939_v13 = vadd.f32 %v1659_v61, %v900_v6  ;;  %v785_v14 = vadd.f32 %v784_v11, %v559_v44 }
 0x155   : > { %v972_v15 = vmax.f32 %v940_v9, 0.0  ;;  %v903_v16 = vmul.f32 %v1654_v56, %v790_v10 }
 0x156   : > { %v971_v17 = vmax.f32 %v939_v13, 0.0  ;;  %v902_v18 = vmul.f32 %v1654_v56, %v785_v14  ;;  %v1194_v19 = vpop.f32.mrb[30].mxu1  ;;  %v574_v20 = vpop.f32.mrb[30].mxu0 }
 0x157   : > { %1005 = vst.msk [vmem:[%s1668_s30 + $0x58] sm:$0xff] %vm993_vm1, %v972_v15  ;;  %v942_v21 = vadd.f32 %v1659_v61, %v903_v16  ;;  %v800_v22 = vadd.f32 %v1194_v19, %v574_v20  ;;  %v794_v24 = vpop.f32.mrb[31].mxu1  ;;  %v576_v25 = vpop.f32.mrb[31].mxu0 }
 0x158   : > { %1004 = vst.msk [vmem:[%s1668_s30 + $0x50] sm:$0xff] %vm993_vm1, %v971_v17  ;;  %v941_v26 = vadd.f32 %v1659_v61, %v902_v18  ;;  %v795_v28 = vadd.f32 %v794_v24, %v569_v8 }
 0x159   : > { %v974_v29 = vmax.f32 %v942_v21, 0.0  ;;  %v905_v30 = vmul.f32 %v1654_v56, %v800_v22 }
 0x15a   : > { %v973_v32 = vmax.f32 %v941_v26, 0.0  ;;  %v904_v33 = vmul.f32 %v1654_v56, %v795_v28  ;;  %v1197_v34 = vpop.f32.mrb[32].mxu1  ;;  %v579_v36 = vpop.f32.mrb[32].mxu0 }
 0x15b   : > { %1007 = vst.msk [vmem:[%s1668_s30 + $0x68] sm:$0xff] %vm993_vm1, %v974_v29  ;;  %v944_v37 = vadd.f32 %v1659_v61, %v905_v30  ;;  %v804_v38 = vpop.f32.mrb[33].mxu1  ;;  %v581_v40 = vpop.f32.mrb[33].mxu0 }
 0x15c   : > { %1006 = vst.msk [vmem:[%s1668_s30 + $0x60] sm:$0xff] %vm993_vm1, %v973_v32  ;;  %v943_v41 = vadd.f32 %v1659_v61, %v904_v33  ;;  %v805_v42 = vadd.f32 %v804_v38, %v579_v36 }
 0x15d   : > { %v976_v44 = vmax.f32 %v944_v37, 0.0 }
 0x15e   : > { %v975_v45 = vmax.f32 %v943_v41, 0.0  ;;  %v906_v46 = vmul.f32 %v1654_v56, %v805_v42  ;;  %v584_v49 = vpop.f32.mrb[34].mxu0  ;;  %v1200_v50 = vpop.f32.mrb[34].mxu1 }
 0x15f   : > { %1009 = vst.msk [vmem:[%s1668_s30 + $0x78] sm:$0xff] %vm993_vm1, %v976_v44  ;;  %v810_v48 = vadd.f32 %v1197_v34, %v584_v49  ;;  %v814_v52 = vpop.f32.mrb[35].mxu1  ;;  %v586_v53 = vpop.f32.mrb[35].mxu0 }
 0x160   : > { %1008 = vst.msk [vmem:[%s1668_s30 + $0x70] sm:$0xff] %vm993_vm1, %v975_v45  ;;  %v945_v54 = vadd.f32 %v1659_v61, %v906_v46 }
 0x161   : > { %v907_v55 = vmul.f32 %v1654_v56, %v810_v48 }
 0x162   : > { %v977_v58 = vmax.f32 %v945_v54, 0.0  ;;  %v589_v59 = vpop.f32.mrb[36].mxu0  ;;  %v1203_v60 = vpop.f32.mrb[36].mxu1 }
 0x163   : > { %v946_v62 = vadd.f32 %v1659_v61, %v907_v55  ;;  %v815_v63 = vadd.f32 %v814_v52, %v589_v59  ;;  %v824_v0 = vpop.f32.mrb[37].mxu1  ;;  %v591_v1 = vpop.f32.mrb[37].mxu0 }
 0x164   : > { %1010 = vst.msk [vmem:[%s1668_s30 + $0x80] sm:$0xff] %vm993_vm1, %v977_v58 }
 0x165   : > { %v978_v57 = vmax.f32 %v946_v62, 0.0  ;;  %v908_v2 = vmul.f32 %v1654_v56, %v815_v63 }
 0x166   : > { %v594_v3 = vpop.f32.mrb[38].mxu0  ;;  %v1738_v4 = vpop.f32.mrb[38].mxu1 }
 0x167   : > { %1011 = vst.msk [vmem:[%s1668_s30 + $0x88] sm:$0xff] %vm993_vm1, %v978_v57  ;;  %v947_v5 = vadd.f32 %v1659_v61, %v908_v2  ;;  %v820_v6 = vadd.f32 %v1200_v50, %v594_v3  ;;  %v834_v7 = vpop.f32.mrb[39].mxu1  ;;  %v596_v8 = vpop.f32.mrb[39].mxu0 }
 0x169   : > { %v979_v9 = vmax.f32 %v947_v5, 0.0  ;;  %v909_v10 = vmul.f32 %v1654_v56, %v820_v6 }
 0x16a   : > { %v599_v11 = vpop.f32.mrb[40].mxu0  ;;  %v1209_v12 = vpop.f32.mrb[40].mxu1 }
 0x16b   : > { %1012 = vst.msk [vmem:[%s1668_s30 + $0x90] sm:$0xff] %vm993_vm1, %v979_v9  ;;  %v948_v13 = vadd.f32 %v1659_v61, %v909_v10  ;;  %v825_v14 = vadd.f32 %v824_v0, %v599_v11  ;;  %v850_v15 = vadd.f32 %v1209_v12, %v1637_v27  ;;  %v844_v16 = vpop.f32.mrb[41].mxu1  ;;  %v601_v17 = vpop.f32.mrb[41].mxu0 }
 0x16c   : > { %v845_v18 = vadd.f32 %v844_v16, %v1635_v23 }
 0x16d   : > { %v980_v19 = vmax.f32 %v948_v13, 0.0  ;;  %v910_v20 = vmul.f32 %v1654_v56, %v825_v14  ;;  %v915_v21 = vmul.f32 %v1654_v56, %v850_v15 }
 0x16e   : > { %v914_v22 = vmul.f32 %v1654_v56, %v845_v18  ;;  %v604_v24 = vpop.f32.mrb[42].mxu0  ;;  %v1212_v25 = vpop.f32.mrb[42].mxu1 }
 0x16f   : > { %1013 = vst.msk [vmem:[%s1668_s30 + $0x98] sm:$0xff] %vm993_vm1, %v980_v19  ;;  %v949_v26 = vadd.f32 %v1659_v61, %v910_v20  ;;  %v954_v27 = vadd.f32 %v1659_v61, %v915_v21  ;;  %v830_v28 = vadd.f32 %v1203_v60, %v604_v24  ;;  %v860_v23 = vadd.f32 %v1212_v25, %v1641_v35  ;;  %v854_v29 = vpop.f32.mrb[43].mxu1  ;;  %v606_v30 = vpop.f32.mrb[43].mxu0 }
 0x170   : > { %v953_v32 = vadd.f32 %v1659_v61, %v914_v22  ;;  %v855_v33 = vadd.f32 %v854_v29, %v1639_v31 }
 0x171   : > { %v981_v34 = vmax.f32 %v949_v26, 0.0  ;;  %v986_v36 = vmax.f32 %v954_v27, 0.0  ;;  %v911_v37 = vmul.f32 %v1654_v56, %v830_v28  ;;  %v917_v38 = vmul.f32 %v1654_v56, %v860_v23 }
 0x172   : > { %v985_v40 = vmax.f32 %v953_v32, 0.0  ;;  %v916_v41 = vmul.f32 %v1654_v56, %v855_v33  ;;  %v609_v42 = vpop.f32.mrb[44].mxu0  ;;  %v1215_v44 = vpop.f32.mrb[44].mxu1 }
 0x173   : > { %1014 = vst.msk [vmem:[%s1668_s30 + $0xa0] sm:$0xff] %vm993_vm1, %v981_v34  ;;  %1019 = vst.msk [vmem:[%s1668_s30 + $0xc8] sm:$0xff] %vm993_vm1, %v986_v36  ;;  %v950_v35 = vadd.f32 %v1659_v61, %v911_v37  ;;  %v956_v31 = vadd.f32 %v1659_v61, %v917_v38  ;;  %v835_v45 = vadd.f32 %v834_v7, %v609_v42  ;;  %v864_v49 = vpop.f32.mrb[45].mxu1  ;;  %v611_v50 = vpop.f32.mrb[45].mxu0 }
 0x174   : > { %v870_v46 = vadd.f32 %v1215_v44, %v1645_v43  ;;  %1018 = vst.msk [vmem:[%s1668_s30 + $0xc0] sm:$0xff] %vm993_vm1, %v985_v40  ;;  %v955_v48 = vadd.f32 %v1659_v61, %v916_v41  ;;  %v865_v52 = vadd.f32 %v864_v49, %v1643_v39 }
 0x175   : > { %v982_v53 = vmax.f32 %v950_v35, 0.0  ;;  %v988_v54 = vmax.f32 %v956_v31, 0.0  ;;  %v912_v55 = vmul.f32 %v1654_v56, %v835_v45 }
 0x176   : > { %v919_v58 = vmul.f32 %v1654_v56, %v870_v46  ;;  %v987_v59 = vmax.f32 %v955_v48, 0.0  ;;  %v918_v60 = vmul.f32 %v1654_v56, %v865_v52  ;;  %v614_v62 = vpop.f32.mrb[46].mxu0  ;;  %v1218_v43 = vpop.f32.mrb[46].mxu1 }
 0x177   : > { %1015 = vst.msk [vmem:[%s1668_s30 + $0xa8] sm:$0xff] %vm993_vm1, %v982_v53  ;;  %1021 = vst.msk [vmem:[%s1668_s30 + $0xd8] sm:$0xff] %vm993_vm1, %v988_v54  ;;  %v951_v63 = vadd.f32 %v1659_v61, %v912_v55  ;;  %v840_v0 = vadd.f32 %v1738_v4, %v614_v62  ;;  %v880_v1 = vadd.f32 %v1218_v43, %v1649_v51  ;;  %v874_v57 = vpop.f32.mrb[47].mxu1  ;;  %v616_v2 = vpop.f32.mrb[47].mxu0 }
 0x178   : > { %v958_v39 = vadd.f32 %v1659_v61, %v919_v58  ;;  %1020 = vst.msk [vmem:[%s1668_s30 + $0xd0] sm:$0xff] %vm993_vm1, %v987_v59  ;;  %v957_v3 = vadd.f32 %v1659_v61, %v918_v60  ;;  %v875_v5 = vadd.f32 %v874_v57, %v1647_v47 }
 0x179   : > { %v983_v6 = vmax.f32 %v951_v63, 0.0  ;;  %v913_v8 = vmul.f32 %v1654_v56, %v840_v0  ;;  %v921_v4 = vmul.f32 %v1654_v56, %v880_v1 }
 0x17a   : > { %v990_v7 = vmax.f32 %v958_v39, 0.0  ;;  %v989_v9 = vmax.f32 %v957_v3, 0.0  ;;  %v920_v51 = vmul.f32 %v1654_v56, %v875_v5 }
 0x17b   : > { %1016 = vst.msk [vmem:[%s1668_s30 + $0xb0] sm:$0xff] %vm993_vm1, %v983_v6  ;;  %v952_v10 = vadd.f32 %v1659_v61, %v913_v8  ;;  %v960_v47 = vadd.f32 %v1659_v61, %v921_v4 }
 0x17c   : > { %1023 = vst.msk [vmem:[%s1668_s30 + $0xe8] sm:$0xff] %vm993_vm1, %v990_v7  ;;  %1022 = vst.msk [vmem:[%s1668_s30 + $0xe0] sm:$0xff] %vm993_vm1, %v989_v9  ;;  %v959_v11 = vadd.f32 %v1659_v61, %v920_v51 }
 0x17d   : > { %v984_v12 = vmax.f32 %v952_v10, 0.0  ;;  %v992_v13 = vmax.f32 %v960_v47, 0.0 }
 0x17e   : > { %v991_v14 = vmax.f32 %v959_v11, 0.0 }
 0x17f   : > { %1017 = vst.msk [vmem:[%s1668_s30 + $0xb8] sm:$0xff] %vm993_vm1, %v984_v12  ;;  %1025 = vst.msk [vmem:[%s1668_s30 + $0xf8] sm:$0xff] %vm993_vm1, %v992_v13 }
 0x180   : > { %1024 = vst.msk [vmem:[%s1668_s30 + $0xf0] sm:$0xff] %vm993_vm1, %v991_v14 }
 0x181 PF: > { %s14_s15 = sadd.s32 1, %s1323_s15  }
 0x182   : > { %p11_p4 = scmp.ge.s32.totalorder %s14_s15, 4  }
 0x184   :  { %13 = sbr.rel (!%p11_p4) target bundleno = 1 (0x1), region = 66 }

// kernel: adapted_inception_forward.7
= control target key start
LH: loop header
LB: loop body
LE: loop exit
PB: predicated region body
PF: predicated region fallthrough
CT: control target
= control target key end

     0   :  { %vm142_vm0 = vcmask 556032   ;;  %vm1021_vm1 = vmmov 0   ;;  %vm554_vm2 = vcmask 130112   ;;  %vm561_vm3 = vcmask 195712   ;;  %s1799_s0 = inlined_call_operand.vmem [shape: f32[8,64,196], index: 0, kind: input, shape index: {}]   ;;  %s1800_s1 = inlined_call_operand.vmem [shape: f32[64,16], index: 1, kind: input, shape index: {}]   ;;  %s1801_s2 = inlined_call_operand.vmem [shape: f32[1,16], index: 2, kind: input, shape index: {}]   ;;  %s1802_s3 = inlined_call_operand.vmem [shape: f32[8,128], index: 3, kind: output, shape index: {}]  }
   0x1   :  { %v30_v0 = vld [vmem:[%s1799_s0 + $0x80] sm:$0xff]  ;;  %v31_v1 = vld [vmem:[%s1799_s0 + $0x88] sm:$0xff]  ;;  %v32_v5 = vld [vmem:[%s1799_s0 + $0x90] sm:$0xff]  ;;  %vm568_vm4 = vcmask 261312   ;;  %vm575_vm5 = vcmask 326912   ;;  %vm582_vm6 = vcmask 392512  }
   0x2   :  { %v14_v2 = vld [vmem:[%s1799_s0] sm:$0xff]  ;;  %v175_v3 = vsel %vm142_vm0, %v31_v1, 0.0  ;;  %v15_v4 = vld [vmem:[%s1799_s0 + $0x8] sm:$0xff]  ;;  %v33_v6 = vld [vmem:[%s1799_s0 + $0x98] sm:$0xff]  ;;  %vm589_vm7 = vcmask 458112   ;;  %vm596_vm8 = vcmask 523712  }
   0x3   :  { %v176_v7 = vadd.f32 %v175_v3, %v30_v0  ;;  %v143_v8 = vsel %vm142_vm0, %v15_v4, 0.0  ;;  %v179_v9 = vsel %vm142_vm0, %v33_v6, 0.0  ;;  %v16_v10 = vld [vmem:[%s1799_s0 + $0x10] sm:$0xff]  ;;  %v17_v11 = vld [vmem:[%s1799_s0 + $0x18] sm:$0xff]  ;;  %v35_v14 = vld [vmem:[%s1799_s0 + $0xa8] sm:$0xff]  ;;  %vm871_vm9 = vcmask 1041409  }
   0x4   :  { %v144_v12 = vadd.f32 %v143_v8, %v14_v2  ;;  %v147_v13 = vsel %vm142_vm0, %v17_v11, 0.0  ;;  %v19_v15 = vld [vmem:[%s1799_s0 + $0x28] sm:$0xff]  ;;  %v180_v16 = vadd.f32 %v179_v9, %v32_v5  ;;  %v34_v18 = vld [vmem:[%s1799_s0 + $0xa0] sm:$0xff]  ;;  %v183_v19 = vsel %vm142_vm0, %v35_v14, 0.0  ;;  %v49_v22 = vld [vmem:[%s1799_s0 + $0x118] sm:$0xff] }
   0x5   :  { %177 = vadd.xlane.f32.xlu1 %v176_v7  ;;  %v148_v17 = vadd.f32 %v147_v13, %v16_v10  ;;  %v18_v20 = vld [vmem:[%s1799_s0 + $0x20] sm:$0xff]  ;;  %v151_v21 = vsel %vm142_vm0, %v19_v15, 0.0  ;;  %v47_v23 = vld [vmem:[%s1799_s0 + $0x108] sm:$0xff]  ;;  %v184_v24 = vadd.f32 %v183_v19, %v34_v18  ;;  %v48_v26 = vld [vmem:[%s1799_s0 + $0x110] sm:$0xff]  ;;  %v211_v27 = vsel %vm142_vm0, %v49_v22, 0.0 }
   0x6   :  { %145 = vadd.xlane.f32.xlu0 %v144_v12  ;;  %v152_v25 = vadd.f32 %v151_v21, %v18_v20  ;;  %v46_v28 = vld [vmem:[%s1799_s0 + $0x100] sm:$0xff]  ;;  %v207_v29 = vsel %vm142_vm0, %v47_v23, 0.0  ;;  %v37_v30 = vld [vmem:[%s1799_s0 + $0xb8] sm:$0xff]  ;;  %v212_v32 = vadd.f32 %v211_v27, %v48_v26  ;;  %v36_v34 = vld [vmem:[%s1799_s0 + $0xb0] sm:$0xff]  ;;  %vm873_vm10 = vcmask 1042434  }
   0x7   :  { %v21_v31 = vld [vmem:[%s1799_s0 + $0x38] sm:$0xff]  ;;  %v208_v33 = vadd.f32 %v207_v29, %v46_v28  ;;  %v187_v35 = vsel %vm142_vm0, %v37_v30, 0.0  ;;  %v20_v36 = vld [vmem:[%s1799_s0 + $0x30] sm:$0xff]  ;;  %v63_v38 = vld [vmem:[%s1799_s0 + $0x188] sm:$0xff]  ;;  %vm875_vm11 = vcmask 1043459   ;;  %vm877_vm12 = vcmask 1044484  }
   0x8   :  { %v155_v37 = vsel %vm142_vm0, %v21_v31, 0.0  ;;  %v51_v39 = vld [vmem:[%s1799_s0 + $0x128] sm:$0xff]  ;;  %v188_v40 = vadd.f32 %v187_v35, %v36_v34  ;;  %v62_v42 = vld [vmem:[%s1799_s0 + $0x180] sm:$0xff]  ;;  %v239_v43 = vsel %vm142_vm0, %v63_v38, 0.0  ;;  %v65_v47 = vld [vmem:[%s1799_s0 + $0x198] sm:$0xff]  ;;  %vm879_vm13 = vcmask 1045509  }
   0x9   :  { %181 = vadd.xlane.f32.xlu1 %v180_v16  ;;  %v156_v41 = vadd.f32 %v155_v37, %v20_v36  ;;  %v23_v44 = vld [vmem:[%s1799_s0 + $0x48] sm:$0xff]  ;;  %v50_v45 = vld [vmem:[%s1799_s0 + $0x120] sm:$0xff]  ;;  %v215_v46 = vsel %vm142_vm0, %v51_v39, 0.0  ;;  %v240_v48 = vadd.f32 %v239_v43, %v62_v42  ;;  %v64_v51 = vld [vmem:[%s1799_s0 + $0x190] sm:$0xff]  ;;  %v243_v54 = vsel %vm142_vm0, %v65_v47, 0.0 }
   0xa   :  { %149 = vadd.xlane.f32.xlu0 %v148_v17  ;;  %v22_v49 = vld [vmem:[%s1799_s0 + $0x40] sm:$0xff]  ;;  %v159_v50 = vsel %vm142_vm0, %v23_v44, 0.0  ;;  %v53_v52 = vld [vmem:[%s1799_s0 + $0x138] sm:$0xff]  ;;  %v216_v53 = vadd.f32 %v215_v46, %v50_v45  ;;  %v52_v55 = vld [vmem:[%s1799_s0 + $0x130] sm:$0xff]  ;;  %v244_v8 = vadd.f32 %v243_v54, %v64_v51  ;;  %vm881_vm14 = vcmask 1046534  }
   0xb   :  { %v39_v56 = vld [vmem:[%s1799_s0 + $0xc8] sm:$0xff]  ;;  %v112_v57 = vld [vmem:[%s1799_s0 + $0x310] sm:$0xff]  ;;  %v113_v58 = vld [vmem:[%s1799_s0 + $0x318] sm:$0xff]  ;;  %v160_v0 = vadd.f32 %v159_v50, %v22_v49  ;;  %v219_v1 = vsel %vm142_vm0, %v53_v52, 0.0  ;;  %vm883_vm15 = vcmask 1047559  }
   0xc   :  { %v79_v59 = vld [vmem:[%s1799_s0 + $0x208] sm:$0xff]  ;;  %v339_v60 = vsel %vm142_vm0, %v113_v58, 0.0  ;;  %v110_v61 = vld [vmem:[%s1799_s0 + $0x300] sm:$0xff]  ;;  %v44_v63 = vld [vmem:[%s1799_s0 + $0xf0] sm:$0xff]  ;;  %v191_v16 = vsel %vm142_vm0, %v39_v56, 0.0 }
   0xd   :  { %185 = vadd.xlane.f32.xlu1 %v184_v24  ;;  %v111_v62 = vld [vmem:[%s1799_s0 + $0x308] sm:$0xff]  ;;  %v38_v2 = vld [vmem:[%s1799_s0 + $0xc0] sm:$0xff]  ;;  %v1173_v3 = vadd.f32 %v339_v60, %v112_v57  ;;  %v45_v5 = vld [vmem:[%s1799_s0 + $0xf8] sm:$0xff]  ;;  %v220_v24 = vadd.f32 %v219_v1, %v52_v55 }
   0xe   :  { %153 = vadd.xlane.f32.xlu0 %v152_v25  ;;  %v335_v4 = vsel %vm142_vm0, %v111_v62, 0.0  ;;  %v28_v6 = vld [vmem:[%s1799_s0 + $0x70] sm:$0xff]  ;;  %v29_v7 = vld [vmem:[%s1799_s0 + $0x78] sm:$0xff]  ;;  %v67_v9 = vld [vmem:[%s1799_s0 + $0x1a8] sm:$0xff]  ;;  %v203_v11 = vsel %vm142_vm0, %v45_v5, 0.0 }
   0xf   :  { %v1188_v10 = vadd.f32 %v335_v4, %v110_v61  ;;  %v171_v12 = vsel %vm142_vm0, %v29_v7, 0.0  ;;  %v72_v13 = vld [vmem:[%s1799_s0 + $0x1d0] sm:$0xff]  ;;  %v73_v14 = vld [vmem:[%s1799_s0 + $0x1d8] sm:$0xff]  ;;  %v58_v15 = vld [vmem:[%s1799_s0 + $0x160] sm:$0xff]  ;;  %v1205_v18 = vadd.f32 %v203_v11, %v44_v63 }
  0x10   :  { %v78_v17 = vld [vmem:[%s1799_s0 + $0x200] sm:$0xff]  ;;  %v1207_v19 = vadd.f32 %v171_v12, %v28_v6  ;;  %v259_v20 = vsel %vm142_vm0, %v73_v14, 0.0  ;;  %v59_v21 = vld [vmem:[%s1799_s0 + $0x168] sm:$0xff]  ;;  %v100_v22 = vld [vmem:[%s1799_s0 + $0x2b0] sm:$0xff] }
  0x11   :  { %213 = vadd.xlane.f32.xlu1 %v212_v32  ;;  %v101_v23 = vld [vmem:[%s1799_s0 + $0x2b8] sm:$0xff]  ;;  %v1222_v26 = vadd.f32 %v259_v20, %v72_v13  ;;  %v231_v27 = vsel %vm142_vm0, %v59_v21, 0.0  ;;  %v86_v29 = vld [vmem:[%s1799_s0 + $0x240] sm:$0xff]  ;;  %v87_v30 = vld [vmem:[%s1799_s0 + $0x248] sm:$0xff]  ;;  %v271_v32 = vsel %vm142_vm0, %v79_v59, 0.0 }
  0x12   :  { %209 = vadd.xlane.f32.xlu0 %v208_v33  ;;  %v25_v25 = vld [vmem:[%s1799_s0 + $0x58] sm:$0xff]  ;;  %v315_v28 = vsel %vm142_vm0, %v101_v23, 0.0  ;;  %v126_v31 = vld [vmem:[%s1799_s0 + $0x380] sm:$0xff]  ;;  %v1239_v34 = vadd.f32 %v231_v27, %v58_v15  ;;  %v287_v36 = vsel %vm142_vm0, %v87_v30, 0.0  ;;  %v127_v37 = vld [vmem:[%s1799_s0 + $0x388] sm:$0xff]  ;;  %v272_v56 = vadd.f32 %v271_v32, %v78_v17 }
  0x13   :  { %v66_v33 = vld [vmem:[%s1799_s0 + $0x1a0] sm:$0xff]  ;;  %v1241_v35 = vadd.f32 %v315_v28, %v100_v22  ;;  %v115_v39 = vld [vmem:[%s1799_s0 + $0x328] sm:$0xff]  ;;  %v1256_v42 = vadd.f32 %v287_v36, %v86_v29  ;;  %v367_v43 = vsel %vm142_vm0, %v127_v37, 0.0  ;;  %v60_v45 = vld [vmem:[%s1799_s0 + $0x170] sm:$0xff] }
  0x14   :  { %v114_v38 = vld [vmem:[%s1799_s0 + $0x320] sm:$0xff]  ;;  %v343_v44 = vsel %vm142_vm0, %v115_v39, 0.0  ;;  %v61_v46 = vld [vmem:[%s1799_s0 + $0x178] sm:$0xff]  ;;  %v128_v47 = vld [vmem:[%s1799_s0 + $0x390] sm:$0xff]  ;;  %v1273_v50 = vadd.f32 %v367_v43, %v126_v31 }
  0x15   :  { %189 = vadd.xlane.f32.xlu1 %v188_v40  ;;  %v192_v40 = vadd.f32 %v191_v16, %v38_v2  ;;  %v24_v49 = vld [vmem:[%s1799_s0 + $0x50] sm:$0xff]  ;;  %v1275_v51 = vadd.f32 %v343_v44, %v114_v38  ;;  %v235_v52 = vsel %vm142_vm0, %v61_v46, 0.0  ;;  %v89_v55 = vld [vmem:[%s1799_s0 + $0x258] sm:$0xff]  ;;  %v55_v57 = vld [vmem:[%s1799_s0 + $0x148] sm:$0xff] }
  0x16   :  { %157 = vadd.xlane.f32.xlu0 %v156_v41  ;;  %v81_v41 = vld [vmem:[%s1799_s0 + $0x218] sm:$0xff]  ;;  %v88_v54 = vld [vmem:[%s1799_s0 + $0x250] sm:$0xff]  ;;  %v1290_v58 = vadd.f32 %v235_v52, %v60_v45  ;;  %v291_v60 = vsel %vm142_vm0, %v89_v55, 0.0  ;;  %v74_v61 = vld [vmem:[%s1799_s0 + $0x1e0] sm:$0xff]  ;;  %v223_v38 = vsel %vm142_vm0, %v55_v57, 0.0 }
  0x17   :  { %v75_v62 = vld [vmem:[%s1799_s0 + $0x1e8] sm:$0xff]  ;;  %v116_v63 = vld [vmem:[%s1799_s0 + $0x330] sm:$0xff]  ;;  %v1309_v4 = vadd.f32 %v291_v60, %v88_v54  ;;  %v117_v6 = vld [vmem:[%s1799_s0 + $0x338] sm:$0xff]  ;;  %v275_v20 = vsel %vm142_vm0, %v81_v41, 0.0 }
  0x18   :  { %v80_v1 = vld [vmem:[%s1799_s0 + $0x210] sm:$0xff]  ;;  %v263_v5 = vsel %vm142_vm0, %v75_v62, 0.0  ;;  %v102_v7 = vld [vmem:[%s1799_s0 + $0x2c0] sm:$0xff]  ;;  %v41_v11 = vld [vmem:[%s1799_s0 + $0xd8] sm:$0xff]  ;;  %v347_v13 = vsel %vm142_vm0, %v117_v6, 0.0 }
  0x19   :  { %241 = vadd.xlane.f32.xlu1 %v240_v48  ;;  %v247_v48 = vsel %vm142_vm0, %v67_v9, 0.0  ;;  %v1324_v12 = vadd.f32 %v263_v5, %v74_v61  ;;  %v76_v15 = vld [vmem:[%s1799_s0 + $0x1f0] sm:$0xff]  ;;  %v77_v16 = vld [vmem:[%s1799_s0 + $0x1f8] sm:$0xff]  ;;  %v130_v17 = vld [vmem:[%s1799_s0 + $0x3a0] sm:$0xff]  ;;  %v1338_v21 = vadd.f32 %v347_v13, %v116_v63  ;;  %v195_v57 = vsel %vm142_vm0, %v41_v11, 0.0 }
  0x1a   :  { %217 = vadd.xlane.f32.xlu0 %v216_v53  ;;  %v129_v53 = vld [vmem:[%s1799_s0 + $0x398] sm:$0xff]  ;;  %v248_v9 = vadd.f32 %v247_v48, %v66_v33  ;;  %v267_v23 = vsel %vm142_vm0, %v77_v16, 0.0  ;;  %v54_v29 = vld [vmem:[%s1799_s0 + $0x140] sm:$0xff]  ;;  %v91_v36 = vld [vmem:[%s1799_s0 + $0x268] sm:$0xff] }
  0x1b   :  { %v371_v59 = vsel %vm142_vm0, %v129_v53, 0.0  ;;  %v105_v27 = vld [vmem:[%s1799_s0 + $0x2d8] sm:$0xff]  ;;  %v1355_v30 = vadd.f32 %v267_v23, %v76_v15  ;;  %v90_v33 = vld [vmem:[%s1799_s0 + $0x260] sm:$0xff]  ;;  %v132_v37 = vld [vmem:[%s1799_s0 + $0x3b0] sm:$0xff]  ;;  %v295_v43 = vsel %vm142_vm0, %v91_v36, 0.0  ;;  %v224_v13 = vadd.f32 %v223_v38, %v54_v29 }
  0x1c   :  { %v1307_v2 = vadd.f32 %v371_v59, %v128_v47  ;;  %v323_v32 = vsel %vm142_vm0, %v105_v27, 0.0  ;;  %v40_v39 = vld [vmem:[%s1799_s0 + $0xd0] sm:$0xff]  ;;  %v133_v44 = vld [vmem:[%s1799_s0 + $0x3b8] sm:$0xff]  ;;  %v118_v45 = vld [vmem:[%s1799_s0 + $0x340] sm:$0xff]  ;;  %v276_v47 = vadd.f32 %v275_v20, %v80_v1 }
  0x1d   :  { %161 = vadd.xlane.f32.xlu1 %v160_v0  ;;  %v163_v0 = vsel %vm142_vm0, %v25_v25, 0.0  ;;  %v104_v25 = vld [vmem:[%s1799_s0 + $0x2d0] sm:$0xff]  ;;  %v119_v46 = vld [vmem:[%s1799_s0 + $0x348] sm:$0xff]  ;;  %v379_v52 = vsel %vm142_vm0, %v133_v44, 0.0  ;;  %v106_v54 = vld [vmem:[%s1799_s0 + $0x2e0] sm:$0xff] }
  0x1e   :  { %245 = vadd.xlane.f32.xlu0 %v244_v8  ;;  %v103_v8 = vld [vmem:[%s1799_s0 + $0x2c8] sm:$0xff]  ;;  %v164_v28 = vadd.f32 %v163_v0, %v24_v49  ;;  %v1374_v41 = vadd.f32 %v323_v32, %v104_v25  ;;  %v1389_v49 = vadd.f32 %v295_v43, %v90_v33  ;;  %v351_v53 = vsel %vm142_vm0, %v119_v46, 0.0  ;;  %v69_v59 = vld [vmem:[%s1799_s0 + $0x1b8] sm:$0xff]  ;;  %v134_v0 = vld [vmem:[%s1799_s0 + $0x3c0] sm:$0xff] }
  0x1f   :  { %v319_v14 = vsel %vm142_vm0, %v103_v8, 0.0  ;;  %v83_v48 = vld [vmem:[%s1799_s0 + $0x228] sm:$0xff]  ;;  %v1406_v60 = vadd.f32 %v379_v52, %v132_v37  ;;  %v1408_v61 = vadd.f32 %v351_v53, %v118_v45  ;;  %v93_v63 = vld [vmem:[%s1799_s0 + $0x278] sm:$0xff]  ;;  %v120_v8 = vld [vmem:[%s1799_s0 + $0x350] sm:$0xff]  ;;  %v196_v25 = vadd.f32 %v195_v57, %v40_v39 }
  0x20   :  { %v1340_v22 = vadd.f32 %v319_v14, %v102_v7  ;;  %v107_v55 = vld [vmem:[%s1799_s0 + $0x2e8] sm:$0xff]  ;;  %v299_v6 = vsel %vm142_vm0, %v93_v63, 0.0  ;;  %v122_v11 = vld [vmem:[%s1799_s0 + $0x360] sm:$0xff]  ;;  %v108_v23 = vld [vmem:[%s1799_s0 + $0x2f0] sm:$0xff]  ;;  %v279_v37 = vsel %vm142_vm0, %v83_v48, 0.0 }
  0x21   :  { %221 = vadd.xlane.f32.xlu1 %v220_v24  ;;  %v131_v24 = vld [vmem:[%s1799_s0 + $0x3a8] sm:$0xff]  ;;  %v327_v62 = vsel %vm142_vm0, %v107_v55, 0.0  ;;  %v82_v14 = vld [vmem:[%s1799_s0 + $0x220] sm:$0xff]  ;;  %v68_v27 = vld [vmem:[%s1799_s0 + $0x1b0] sm:$0xff] }
  0x22   :  { %193 = vadd.xlane.f32.xlu0 %v192_v40  ;;  %v375_v31 = vsel %vm142_vm0, %v131_v24, 0.0  ;;  %v135_v1 = vld [vmem:[%s1799_s0 + $0x3c8] sm:$0xff]  ;;  %v1420_v5 = vadd.f32 %v327_v62, %v106_v54  ;;  %v109_v24 = vld [vmem:[%s1799_s0 + $0x2f8] sm:$0xff]  ;;  %v124_v33 = vld [vmem:[%s1799_s0 + $0x370] sm:$0xff] }
  0x23   :  { %v1372_v40 = vadd.f32 %v375_v31, %v130_v17  ;;  %v383_v7 = vsel %vm142_vm0, %v135_v1, 0.0  ;;  %v123_v20 = vld [vmem:[%s1799_s0 + $0x368] sm:$0xff]  ;;  %v331_v32 = vsel %vm142_vm0, %v109_v24, 0.0  ;;  %v125_v36 = vld [vmem:[%s1799_s0 + $0x378] sm:$0xff]  ;;  %v138_v45 = vld [vmem:[%s1799_s0 + $0x3e0] sm:$0xff] }
  0x24   :  { %v1438_v16 = vadd.f32 %v383_v7, %v134_v0  ;;  %v359_v31 = vsel %vm142_vm0, %v123_v20, 0.0  ;;  %v1469_v39 = vadd.f32 %v331_v32, %v108_v23  ;;  %v363_v43 = vsel %vm142_vm0, %v125_v36, 0.0  ;;  %v137_v44 = vld [vmem:[%s1799_s0 + $0x3d8] sm:$0xff]  ;;  %v139_v46 = vld [vmem:[%s1799_s0 + $0x3e8] sm:$0xff]  ;;  %v140_v55 = vld [vmem:[%s1799_s0 + $0x3f0] sm:$0xff] }
  0x25   :  { %273 = vadd.xlane.f32.xlu1 %v272_v56  ;;  %v92_v56 = vld [vmem:[%s1799_s0 + $0x270] sm:$0xff]  ;;  %v1467_v38 = vadd.f32 %v359_v31, %v122_v11  ;;  %v97_v48 = vld [vmem:[%s1799_s0 + $0x298] sm:$0xff]  ;;  %v1485_v52 = vadd.f32 %v363_v43, %v124_v33  ;;  %v387_v53 = vsel %vm142_vm0, %v137_v44, 0.0  ;;  %v391_v54 = vsel %vm142_vm0, %v139_v46, 0.0  ;;  %v95_v57 = vld [vmem:[%s1799_s0 + $0x288] sm:$0xff] }
  0x26   :  { %249 = vadd.xlane.f32.xlu0 %v248_v9  ;;  %v121_v9 = vld [vmem:[%s1799_s0 + $0x358] sm:$0xff]  ;;  %v1436_v15 = vadd.f32 %v299_v6, %v92_v56  ;;  %v1500_v62 = vadd.f32 %v391_v54, %v138_v45  ;;  %v280_v0 = vadd.f32 %v279_v37, %v82_v14  ;;  %v96_v7 = vld [vmem:[%s1799_s0 + $0x290] sm:$0xff]  ;;  %v303_v11 = vsel %vm142_vm0, %v95_v57, 0.0  ;;  %v27_v14 = vld [vmem:[%s1799_s0 + $0x68] sm:$0xff] }
  0x27   :  { %v355_v17 = vsel %vm142_vm0, %v121_v9, 0.0  ;;  %v141_v56 = vld [vmem:[%s1799_s0 + $0x3f8] sm:$0xff]  ;;  %v94_v9 = vld [vmem:[%s1799_s0 + $0x280] sm:$0xff]  ;;  %v71_v31 = vld [vmem:[%s1799_s0 + $0x1c8] sm:$0xff] }
  0x28   :  { %v1453_v29 = vadd.f32 %v355_v17, %v120_v8  ;;  %v395_v63 = vsel %vm142_vm0, %v141_v56, 0.0  ;;  %v307_v8 = vsel %vm142_vm0, %v97_v48, 0.0  ;;  %v304_v20 = vadd.f32 %v303_v11, %v94_v9  ;;  %v42_v23 = vld [vmem:[%s1799_s0 + $0xe0] sm:$0xff]  ;;  %v57_v32 = vld [vmem:[%s1799_s0 + $0x158] sm:$0xff]  ;;  %v56_v43 = vld [vmem:[%s1799_s0 + $0x150] sm:$0xff] }
  0x29   :  { %165 = vadd.xlane.f32.xlu1 %v164_v28  ;;  %v136_v28 = vld [vmem:[%s1799_s0 + $0x3d0] sm:$0xff]  ;;  %v1503_v1 = vadd.f32 %v395_v63, %v140_v55  ;;  %v308_v17 = vadd.f32 %v307_v8, %v96_v7  ;;  %v255_v37 = vsel %vm142_vm0, %v71_v31, 0.0  ;;  %v227_v44 = vsel %vm142_vm0, %v57_v32, 0.0  ;;  %v99_v45 = vld [vmem:[%s1799_s0 + $0x2a8] sm:$0xff]  ;;  %v85_v46 = vld [vmem:[%s1799_s0 + $0x238] sm:$0xff] }
  0x2a   :  { %277 = vadd.xlane.f32.xlu0 %v276_v47  ;;  %v251_v47 = vsel %vm142_vm0, %v69_v59, 0.0  ;;  %v1498_v59 = vadd.f32 %v387_v53, %v136_v28  ;;  %v70_v28 = vld [vmem:[%s1799_s0 + $0x1c0] sm:$0xff]  ;;  %v228_v48 = vadd.f32 %v227_v44, %v56_v43  ;;  %v311_v54 = vsel %vm142_vm0, %v99_v45, 0.0  ;;  %v84_v55 = vld [vmem:[%s1799_s0 + $0x230] sm:$0xff] }
  0x2b   :  { %v252_v6 = vadd.f32 %v251_v47, %v68_v27  ;;  %v167_v27 = vsel %vm142_vm0, %v27_v14, 0.0  ;;  %v256_v47 = vadd.f32 %v255_v37, %v70_v28  ;;  %v98_v53 = vld [vmem:[%s1799_s0 + $0x2a0] sm:$0xff]  ;;  %v283_v56 = vsel %vm142_vm0, %v85_v46, 0.0 }
  0x2c   :  { %v312_v57 = vadd.f32 %v311_v54, %v98_v53  ;;  %v284_v63 = vadd.f32 %v283_v56, %v84_v55 }
  0x2d   :  { %225 = vadd.xlane.f32.xlu1 %v224_v13  ;;  %v43_v13 = vld [vmem:[%s1799_s0 + $0xe8] sm:$0xff] }
  0x2e   :  { %197 = vadd.xlane.f32.xlu0 %v196_v25  ;;  %v199_v24 = vsel %vm142_vm0, %v43_v13, 0.0  ;;  %v26_v25 = vld [vmem:[%s1799_s0 + $0x60] sm:$0xff]  ;;  %vm885_vm0 = vcmask 523264  }
  0x2f   :  { %v200_v33 = vadd.f32 %v199_v24, %v42_v23  ;;  %v168_v36 = vadd.f32 %v167_v27, %v26_v25 }
  0x31   :  { %281 = vadd.xlane.f32.xlu1 %v280_v0 }
  0x32   :  { %253 = vadd.xlane.f32.xlu0 %v252_v6 }
  0x35   :  { %309 = vadd.xlane.f32.xlu1 %v308_v17 }
  0x36   :  { %305 = vadd.xlane.f32.xlu0 %v304_v20 }
  0x39   :  { %201 = vadd.xlane.f32.xlu1 %v200_v33 }
  0x3a   :  { %169 = vadd.xlane.f32.xlu0 %v168_v36 }
  0x3d   :  { %257 = vadd.xlane.f32.xlu1 %v256_v47 }
  0x3e   :  { %229 = vadd.xlane.f32.xlu0 %v228_v48 }
  0x41   :  { %313 = vadd.xlane.f32.xlu1 %v312_v57 }
  0x42   :  { %285 = vadd.xlane.f32.xlu0 %v284_v63 }
  0x45   :  { %341 = vadd.xlane.f32.xlu1 %v1173_v3  ;;  %v464_v3 = vld [vmem:[%s1800_s1] sm:$0xff] }
  0x46   :  { %337 = vadd.xlane.f32.xlu0 %v1188_v10  ;;  %v465_v10 = vld [vmem:[%s1800_s1 + $0x8] sm:$0xff] }
  0x49   :  { %205 = vadd.xlane.f32.xlu1 %v1205_v18  ;;  %v1002_v18 = vpack.c.bf16 %v465_v10, %v464_v3 }
  0x4a   :  { %173 = vadd.xlane.f32.xlu0 %v1207_v19  ;;  %v1020_v19 = vmov 0.0|0.0  }
  0x4b   :  { %1001 = vmatprep.subr.bf16.mxu0 %v1020_v19 }
  0x4c   :  { %1003 = vmatpush3.bf16.msra.mxu0 %v1002_v18 }
  0x4d   :  { %261 = vadd.xlane.f32.xlu1 %v1222_v26  ;;  %1004 = vmatprep.subr.bf16.mxu0 %v1020_v19  ;;  %v466_v26 = vld [vmem:[%s1800_s1 + $0x10] sm:$0xff] }
  0x4e   :  { %233 = vadd.xlane.f32.xlu0 %v1239_v34  ;;  %v467_v34 = vld [vmem:[%s1800_s1 + $0x18] sm:$0xff] }
  0x51   :  { %317 = vadd.xlane.f32.xlu1 %v1241_v35  ;;  %v1005_v35 = vpack.c.bf16 %v467_v34, %v466_v26 }
  0x52   :  { %289 = vadd.xlane.f32.xlu0 %v1256_v42  ;;  %v543_v42 = vlaneseq }
  0x53   :  { %1006 = vmatpush3.bf16.msra.mxu0 %v1005_v35 }
  0x54   :  { %1007 = vmatprep.subr.bf16.mxu0 %v1020_v19 }
  0x55   :  { %369 = vadd.xlane.f32.xlu1 %v1273_v50  ;;  %v468_v50 = vld [vmem:[%s1800_s1 + $0x20] sm:$0xff] }
  0x56   :  { %345 = vadd.xlane.f32.xlu0 %v1275_v51  ;;  %v469_v51 = vld [vmem:[%s1800_s1 + $0x28] sm:$0xff] }
  0x59   :  { %237 = vadd.xlane.f32.xlu1 %v1290_v58  ;;  %v1008_v58 = vpack.c.bf16 %v469_v51, %v468_v50 }
  0x5a   :  { %373 = vadd.xlane.f32.xlu0 %v1307_v2  ;;  %v1605_v2 = vand.u32 127, %v543_v42 }
  0x5b   :  { %1009 = vmatpush3.bf16.msra.mxu0 %v1008_v58 }
  0x5c   :  { %1010 = vmatprep.subr.bf16.mxu0 %v1020_v19  ;;  %v563_v20 = vadd.s32 4294967272, %v1605_v2  ;;  %v570_v53 = vadd.s32 4294967264, %v1605_v2 }
  0x5d   :  { %293 = vadd.xlane.f32.xlu1 %v1309_v4  ;;  %v1607_v4 = vshrl.u32 %v543_v42, 7 }
  0x5e   :  { %265 = vadd.xlane.f32.xlu0 %v1324_v12  ;;  %v549_v12 = vadd.s32 4294967288, %v1605_v2 }
  0x5f   :  { %v1640_v28 = vsub.s32 %v563_v20, %v1607_v4  ;;  %v1650_v10 = vsub.s32 %v570_v53, %v1607_v4  ;;  %v584_v53 = vadd.s32 4294967248, %v1605_v2 }
  0x61   :  { %349 = vadd.xlane.f32.xlu1 %v1338_v21  ;;  %v470_v21 = vld [vmem:[%s1800_s1 + $0x30] sm:$0xff] }
  0x62   :  { %321 = vadd.xlane.f32.xlu0 %v1340_v22  ;;  %v471_v22 = vld [vmem:[%s1800_s1 + $0x38] sm:$0xff] }
  0x65   :  { %269 = vadd.xlane.f32.xlu1 %v1355_v30 }
  0x66   :  { %377 = vadd.xlane.f32.xlu0 %v1372_v40  ;;  %v1011_v40 = vpack.c.bf16 %v471_v22, %v470_v21 }
  0x68   :  { %1012 = vmatpush3.bf16.msra.mxu0 %v1011_v40 }
  0x69   :  { %325 = vadd.xlane.f32.xlu1 %v1374_v41 }
  0x6a   :  { %297 = vadd.xlane.f32.xlu0 %v1389_v49  ;;  %v1618_v49 = vsub.s32 %v1605_v2, %v1607_v4 }
  0x6d   :  { %381 = vadd.xlane.f32.xlu1 %v1406_v60 }
  0x6e   :  { %353 = vadd.xlane.f32.xlu0 %v1408_v61  ;;  %v1621_v61 = vsub.s32 %v549_v12, %v1607_v4 }
  0x71   :  { %329 = vadd.xlane.f32.xlu1 %v1420_v5  ;;  %v556_v5 = vadd.s32 4294967280, %v1605_v2 }
  0x72   :  { %301 = vadd.xlane.f32.xlu0 %v1436_v15  ;;  %v1022_v15 = vmov 0.0  }
  0x73   :  { %998 = vmatprep.mubr.msk.f32.mxu0 %vm1021_vm1, %v1022_v15  ;;  %v1627_v0 = vsub.s32 %v556_v5, %v1607_v4  ;;  %v577_v15 = vadd.s32 4294967256, %v1605_v2  ;;  %vm964_vm1 = vcmask 130048  }
  0x75   :  { %385 = vadd.xlane.f32.xlu1 %v1438_v16 }
  0x76   :  { %357 = vadd.xlane.f32.xlu0 %v1453_v29 }
  0x79   :  { %361 = vadd.xlane.f32.xlu1 %v1467_v38 }
  0x7a   :  { %333 = vadd.xlane.f32.xlu0 %v1469_v39 }
  0x7d   :  { %365 = vadd.xlane.f32.xlu1 %v1485_v52 }
  0x7e   :  { %389 = vadd.xlane.f32.xlu0 %v1498_v59 }
  0x81   :  { %397 = vadd.xlane.f32.xlu1 %v1503_v1 }
  0x82   :  { %393 = vadd.xlane.f32.xlu0 %v1500_v62 }
  0x92   :  { %v178_v30 = vpop.xlane.xlu1 %177 }
  0x93   :  { %v146_v41 = vpop.xlane.xlu0 %145  ;;  %v408_v60 = vmul.f32 0.0051020407, %v178_v30 }
  0x94   :  { %v400_v16 = vmul.f32 0.0051020407, %v146_v41 }
  0x95   :  { %v601_v59 = vrot.slane %v408_v60, %v1618_v49 }
  0x96   :  { %v182_v29 = vpop.xlane.xlu1 %181  ;;  %v548_v1 = vrot.slane %v400_v16, %v1618_v49 }
  0x97   :  { %v409_v38 = vmul.f32 0.0051020407, %v182_v29  ;;  %v150_v39 = vpop.xlane.xlu0 %149 }
  0x98   :  { %v401_v52 = vmul.f32 0.0051020407, %v150_v39 }
  0x99   :  { %v605_v62 = vrot.slane %v409_v38, %v1621_v61 }
  0x9a   :  { %v553_v6 = vrot.slane %v401_v52, %v1621_v61  ;;  %v186_v7 = vpop.xlane.xlu1 %185 }
  0x9b   :  { %v606_v8 = vsel %vm554_vm2, %v605_v62, %v601_v59  ;;  %v410_v9 = vmul.f32 0.0051020407, %v186_v7  ;;  %v154_v11 = vpop.xlane.xlu0 %153  ;;  %v1665_v62 = vsub.s32 %v577_v15, %v1607_v4  ;;  %v591_v15 = vadd.s32 4294967240, %v1605_v2 }
  0x9c   :  { %v555_v13 = vsel %vm554_vm2, %v553_v6, %v548_v1  ;;  %v402_v14 = vmul.f32 0.0051020407, %v154_v11 }
  0x9d   :  { %v610_v17 = vrot.slane %v410_v9, %v1627_v0 }
  0x9e   :  { %v560_v23 = vrot.slane %v402_v14, %v1627_v0  ;;  %v214_v24 = vpop.xlane.xlu1 %213 }
  0x9f   :  { %v611_v25 = vsel %vm561_vm3, %v610_v17, %v606_v8  ;;  %v417_v27 = vmul.f32 0.0051020407, %v214_v24  ;;  %v210_v31 = vpop.xlane.xlu0 %209 }
  0xa0   :  { %v562_v32 = vsel %vm561_vm3, %v560_v23, %v555_v13  ;;  %v416_v33 = vmul.f32 0.0051020407, %v210_v31 }
  0xa1   :  { %v644_v36 = vrot.slane %v417_v27, %v1621_v61 }
  0xa2   :  { %v640_v37 = vrot.slane %v416_v33, %v1618_v49  ;;  %v190_v43 = vpop.xlane.xlu1 %189 }
  0xa3   :  { %v411_v44 = vmul.f32 0.0051020407, %v190_v43  ;;  %v158_v45 = vpop.xlane.xlu0 %157 }
  0xa4   :  { %v645_v46 = vsel %vm554_vm2, %v644_v36, %v640_v37  ;;  %v403_v47 = vmul.f32 0.0051020407, %v158_v45 }
  0xa5   :  { %v615_v48 = vrot.slane %v411_v44, %v1640_v28 }
  0xa6   :  { %v567_v54 = vrot.slane %v403_v47, %v1640_v28  ;;  %v242_v55 = vpop.xlane.xlu1 %241 }
  0xa7   :  { %v616_v56 = vsel %vm568_vm4, %v615_v48, %v611_v25  ;;  %v218_v57 = vpop.xlane.xlu0 %217  ;;  %v424_v18 = vmul.f32 0.0051020407, %v242_v55 }
  0xa8   :  { %v569_v63 = vsel %vm568_vm4, %v567_v54, %v562_v32  ;;  %v418_v3 = vmul.f32 0.0051020407, %v218_v57 }
  0xa9   :  { %v679_v58 = vrot.slane %v424_v18, %v1618_v49 }
  0xaa   :  { %v649_v19 = vrot.slane %v418_v3, %v1627_v0  ;;  %v162_v26 = vpop.xlane.xlu1 %161 }
  0xab   :  { %v404_v34 = vmul.f32 0.0051020407, %v162_v26  ;;  %v246_v35 = vpop.xlane.xlu0 %245  ;;  %v1689_v26 = vsub.s32 %v584_v53, %v1607_v4 }
  0xac   :  { %v650_v42 = vsel %vm561_vm3, %v649_v19, %v645_v46  ;;  %v425_v50 = vmul.f32 0.0051020407, %v246_v35 }
  0xad   :  { %v574_v51 = vrot.slane %v404_v34, %v1650_v10 }
  0xae   :  { %v683_v12 = vrot.slane %v425_v50, %v1621_v61  ;;  %v222_v21 = vpop.xlane.xlu1 %221 }
  0xaf   :  { %v576_v22 = vsel %vm575_vm5, %v574_v51, %v569_v63  ;;  %v419_v30 = vmul.f32 0.0051020407, %v222_v21  ;;  %v194_v40 = vpop.xlane.xlu0 %193 }
  0xb0   :  { %v684_v41 = vsel %vm554_vm2, %v683_v12, %v679_v58  ;;  %v412_v60 = vmul.f32 0.0051020407, %v194_v40 }
  0xb1   :  { %v654_v5 = vrot.slane %v419_v30, %v1640_v28 }
  0xb2   :  { %v620_v16 = vrot.slane %v412_v60, %v1650_v10  ;;  %v274_v29 = vpop.xlane.xlu1 %273 }
  0xb3   :  { %v655_v38 = vsel %vm568_vm4, %v654_v5, %v650_v42  ;;  %v250_v39 = vpop.xlane.xlu0 %249  ;;  %v432_v1 = vmul.f32 0.0051020407, %v274_v29 }
  0xb4   :  { %v621_v52 = vsel %vm575_vm5, %v620_v16, %v616_v56  ;;  %v426_v59 = vmul.f32 0.0051020407, %v250_v39 }
  0xb5   :  { %v718_v17 = vrot.slane %v432_v1, %v1618_v49 }
  0xb6   :  { %v688_v6 = vrot.slane %v426_v59, %v1627_v0  ;;  %v166_v7 = vpop.xlane.xlu1 %165 }
  0xb7   :  { %v405_v8 = vmul.f32 0.0051020407, %v166_v7  ;;  %v278_v9 = vpop.xlane.xlu0 %277 }
  0xb8   :  { %v689_v11 = vsel %vm561_vm3, %v688_v6, %v684_v41  ;;  %v433_v13 = vmul.f32 0.0051020407, %v278_v9 }
  0xb9   :  { %v581_v14 = vrot.slane %v405_v8, %v1665_v62 }
  0xba   :  { %v722_v20 = vrot.slane %v433_v13, %v1621_v61  ;;  %v226_v23 = vpop.xlane.xlu1 %225 }
  0xbb   :  { %v583_v24 = vsel %vm582_vm6, %v581_v14, %v576_v22  ;;  %v420_v25 = vmul.f32 0.0051020407, %v226_v23  ;;  %v198_v27 = vpop.xlane.xlu0 %197 }
  0xbc   :  { %v723_v31 = vsel %vm554_vm2, %v722_v20, %v718_v17  ;;  %v413_v32 = vmul.f32 0.0051020407, %v198_v27 }
  0xbd   :  { %v659_v33 = vrot.slane %v420_v25, %v1650_v10 }
  0xbe   :  { %v625_v36 = vrot.slane %v413_v32, %v1665_v62  ;;  %v282_v37 = vpop.xlane.xlu1 %281 }
  0xbf   :  { %v660_v43 = vsel %vm575_vm5, %v659_v33, %v655_v38  ;;  %v434_v44 = vmul.f32 0.0051020407, %v282_v37  ;;  %v254_v45 = vpop.xlane.xlu0 %253  ;;  %v1705_v38 = vsub.s32 %v591_v15, %v1607_v4 }
  0xc0   :  { %v626_v46 = vsel %vm582_vm6, %v625_v36, %v621_v52  ;;  %v427_v47 = vmul.f32 0.0051020407, %v254_v45 }
  0xc1   :  { %v727_v48 = vrot.slane %v434_v44, %v1627_v0 }
  0xc2   :  { %v693_v54 = vrot.slane %v427_v47, %v1640_v28  ;;  %v310_v55 = vpop.xlane.xlu1 %309 }
  0xc3   :  { %v1682_v56 = vsel %vm561_vm3, %v727_v48, %v723_v31  ;;  %v441_v57 = vmul.f32 0.0051020407, %v310_v55  ;;  %v306_v63 = vpop.xlane.xlu0 %305 }
  0xc4   :  { %v1685_v3 = vsel %vm568_vm4, %v693_v54, %v689_v11  ;;  %v440_v18 = vmul.f32 0.0051020407, %v306_v63 }
  0xc5   :  { %v761_v19 = vrot.slane %v441_v57, %v1621_v61 }
  0xc6   :  { %v757_v34 = vrot.slane %v440_v18, %v1618_v49  ;;  %v202_v35 = vpop.xlane.xlu1 %201 }
  0xc7   :  { %v414_v42 = vmul.f32 0.0051020407, %v202_v35  ;;  %v170_v50 = vpop.xlane.xlu0 %169 }
  0xc8   :  { %v1693_v51 = vsel %vm554_vm2, %v761_v19, %v757_v34  ;;  %v406_v58 = vmul.f32 0.0051020407, %v170_v50 }
  0xc9   :  { %v630_v12 = vrot.slane %v414_v42, %v1689_v26 }
  0xca   :  { %v588_v21 = vrot.slane %v406_v58, %v1689_v26  ;;  %v258_v22 = vpop.xlane.xlu1 %257 }
  0xcb   :  { %v631_v30 = vsel %vm589_vm7, %v630_v12, %v626_v46  ;;  %v230_v40 = vpop.xlane.xlu0 %229  ;;  %v428_v48 = vmul.f32 0.0051020407, %v258_v22 }
  0xcc   :  { %v590_v41 = vsel %vm589_vm7, %v588_v21, %v583_v24  ;;  %v421_v17 = vmul.f32 0.0051020407, %v230_v40 }
  0xcd   :  { %v698_v18 = vrot.slane %v428_v48, %v1650_v10 }
  0xce   :  { %v1699_v60 = vpop.xlane.xlu1 %313  ;;  %v664_v25 = vrot.slane %v421_v17, %v1665_v62 }
  0xcf   :  { %v286_v5 = vpop.xlane.xlu0 %285  ;;  %v699_v50 = vsel %vm575_vm5, %v698_v18, %v1685_v3 }
  0xd0   :  { %v665_v36 = vsel %vm582_vm6, %v664_v25, %v660_v43 }
  0xd2   :  { %v342_v16 = vpop.xlane.xlu1 %341 }
  0xd3   :  { %v1702_v29 = vpop.xlane.xlu0 %337 }
  0xd6   :  { %v206_v39 = vpop.xlane.xlu1 %205 }
  0xd7   :  { %v415_v52 = vmul.f32 0.0051020407, %v206_v39  ;;  %v174_v59 = vpop.xlane.xlu0 %173 }
  0xd8   :  { %v407_v1 = vmul.f32 0.0051020407, %v174_v59 }
  0xd9   :  { %v635_v6 = vrot.slane %v415_v52, %v1705_v38 }
  0xda   :  { %v595_v7 = vrot.slane %v407_v1, %v1705_v38  ;;  %v262_v8 = vpop.xlane.xlu1 %261 }
  0xdb   :  { %v636_v9 = vsel %vm596_vm8, %v635_v6, %v631_v30  ;;  %v234_v2 = vpop.xlane.xlu0 %233  ;;  %v429_v54 = vmul.f32 0.0051020407, %v262_v8  ;;  %v449_v8 = vmul.f32 0.0051020407, %v342_v16 }
  0xdc   :  { %v597_v11 = vsel %vm596_vm8, %v595_v7, %v590_v41  ;;  %v422_v20 = vmul.f32 0.0051020407, %v234_v2  ;;  %v435_v41 = vmul.f32 0.0051020407, %v286_v5  ;;  %v442_v7 = vmul.f32 0.0051020407, %v1699_v60 }
  0xdd   :  { %v872_v13 = vsel %vm871_vm9, %v636_v9, %v597_v11  ;;  %v703_v19 = vrot.slane %v429_v54, %v1665_v62  ;;  %v448_v2 = vmul.f32 0.0051020407, %v1702_v29  ;;  %v800_v60 = vrot.slane %v449_v8, %v1621_v61 }
  0xde   :  { %v318_v14 = vpop.xlane.xlu1 %317  ;;  %v669_v27 = vrot.slane %v422_v20, %v1689_v26  ;;  %v732_v3 = vrot.slane %v435_v41, %v1640_v28 }
  0xdf   :  { %v290_v4 = vpop.xlane.xlu0 %289  ;;  %v704_v58 = vsel %vm582_vm6, %v703_v19, %v699_v50  ;;  %v443_v17 = vmul.f32 0.0051020407, %v318_v14  ;;  %v796_v29 = vrot.slane %v448_v2, %v1618_v49 }
  0xe0   :  { %v670_v44 = vsel %vm589_vm7, %v669_v27, %v665_v36  ;;  %v436_v39 = vmul.f32 0.0051020407, %v290_v4  ;;  %v733_v20 = vsel %vm568_vm4, %v732_v3, %v1682_v56  ;;  %v766_v27 = vrot.slane %v442_v7, %v1627_v0 }
  0xe1   :  { %v801_v18 = vsel %vm554_vm2, %v800_v60, %v796_v29 }
  0xe2   :  { %v1711_v23 = vpop.xlane.xlu1 %369  ;;  %v737_v9 = vrot.slane %v436_v39, %v1650_v10 }
  0xe3   :  { %v1713_v24 = vpop.xlane.xlu0 %345 }
  0xe4   :  { %v738_v16 = vsel %vm575_vm5, %v737_v9, %v733_v20 }
  0xe6   :  { %v238_v31 = vpop.xlane.xlu1 %237 }
  0xe7   :  { %v423_v32 = vmul.f32 0.0051020407, %v238_v31  ;;  %v1717_v33 = vpop.xlane.xlu0 %373 }
  0xe9   :  { %v674_v37 = vrot.slane %v423_v32, %v1705_v38 }
  0xea   :  { %v294_v45 = vpop.xlane.xlu1 %293 }
  0xeb   :  { %v675_v46 = vsel %vm596_vm8, %v674_v37, %v670_v44  ;;  %v266_v47 = vpop.xlane.xlu0 %265  ;;  %v437_v52 = vmul.f32 0.0051020407, %v294_v45  ;;  %v771_v44 = vrot.slane %v443_v17, %v1640_v28 }
  0xec   :  { %v874_v53 = vsel %vm873_vm10, %v675_v46, %v872_v13  ;;  %v430_v55 = vmul.f32 0.0051020407, %v266_v47  ;;  %v456_v47 = vmul.f32 0.0051020407, %v1711_v23 }
  0xed   :  { %v742_v11 = vrot.slane %v437_v52, %v1665_v62 }
  0xee   :  { %v350_v57 = vpop.xlane.xlu1 %349  ;;  %v708_v43 = vrot.slane %v430_v55, %v1689_v26 }
  0xef   :  { %v322_v63 = vpop.xlane.xlu0 %321  ;;  %v743_v32 = vsel %vm582_vm6, %v742_v11, %v738_v16  ;;  %v451_v19 = vmul.f32 0.0051020407, %v350_v57 }
  0xf0   :  { %v709_v21 = vsel %vm589_vm7, %v708_v43, %v704_v58  ;;  %v444_v31 = vmul.f32 0.0051020407, %v322_v63  ;;  %v767_v63 = vsel %vm561_vm3, %v766_v27, %v1693_v51 }
  0xf1   :  { %v772_v23 = vsel %vm568_vm4, %v771_v44, %v767_v63 }
  0xf2   :  { %v270_v34 = vpop.xlane.xlu1 %269  ;;  %v776_v54 = vrot.slane %v444_v31, %v1650_v10 }
  0xf3   :  { %v431_v35 = vmul.f32 0.0051020407, %v270_v34  ;;  %v378_v42 = vpop.xlane.xlu0 %377 }
  0xf4   :  { %v777_v57 = vsel %vm575_vm5, %v776_v54, %v772_v23 }
  0xf5   :  { %v713_v12 = vrot.slane %v431_v35, %v1705_v38  ;;  %v457_v35 = vmul.f32 0.0051020407, %v1717_v33 }
  0xf6   :  { %v326_v22 = vpop.xlane.xlu1 %325 }
  0xf7   :  { %v714_v30 = vsel %vm596_vm8, %v713_v12, %v709_v21  ;;  %v298_v40 = vpop.xlane.xlu0 %297  ;;  %v445_v14 = vmul.f32 0.0051020407, %v326_v22  ;;  %v835_v12 = vrot.slane %v456_v47, %v1618_v49  ;;  %v458_v21 = vmul.f32 0.0051020407, %v378_v42 }
  0xf8   :  { %v876_v15 = vsel %vm875_vm11, %v714_v30, %v874_v53  ;;  %v438_v1 = vmul.f32 0.0051020407, %v298_v40  ;;  %v450_v53 = vmul.f32 0.0051020407, %v1713_v24 }
  0xf9   :  { %v781_v43 = vrot.slane %v445_v14, %v1665_v62  ;;  %v844_v8 = vrot.slane %v458_v21, %v1627_v0 }
  0xfa   :  { %v382_v59 = vpop.xlane.xlu1 %381  ;;  %v747_v5 = vrot.slane %v438_v1, %v1689_v26  ;;  %v805_v51 = vrot.slane %v450_v53, %v1627_v0 }
  0xfb   :  { %v354_v6 = vpop.xlane.xlu0 %353  ;;  %v459_v40 = vmul.f32 0.0051020407, %v382_v59  ;;  %v782_v39 = vsel %vm582_vm6, %v781_v43, %v777_v57 }
  0xfc   :  { %v748_v56 = vsel %vm589_vm7, %v747_v5, %v743_v32  ;;  %v452_v50 = vmul.f32 0.0051020407, %v354_v6  ;;  %v839_v6 = vrot.slane %v457_v35, %v1621_v61  ;;  %v806_v11 = vsel %vm561_vm3, %v805_v51, %v801_v18 }
  0xfe   :  { %v330_v13 = vpop.xlane.xlu1 %329  ;;  %v815_v49 = vrot.slane %v452_v50, %v1650_v10 }
  0xff   :  { %v302_v4 = vpop.xlane.xlu0 %301  ;;  %v446_v45 = vmul.f32 0.0051020407, %v330_v13  ;;  %v849_v13 = vrot.slane %v459_v40, %v1640_v28 }
 0x100   :  { %v439_v25 = vmul.f32 0.0051020407, %v302_v4 }
 0x101   :  { %v786_v24 = vrot.slane %v446_v45, %v1689_v26 }
 0x102   :  { %v752_v36 = vrot.slane %v439_v25, %v1705_v38  ;;  %v386_v37 = vpop.xlane.xlu1 %385  ;;  %v840_v25 = vsel %vm554_vm2, %v839_v6, %v835_v12 }
 0x103   :  { %v358_v46 = vpop.xlane.xlu0 %357  ;;  %v460_v33 = vmul.f32 0.0051020407, %v386_v37  ;;  %v787_v42 = vsel %vm589_vm7, %v786_v24, %v782_v39 }
 0x104   :  { %v753_v48 = vsel %vm596_vm8, %v752_v36, %v748_v56  ;;  %v453_v22 = vmul.f32 0.0051020407, %v358_v46 }
 0x105   :  { %v878_v55 = vsel %vm877_vm12, %v753_v48, %v876_v15  ;;  %v810_v15 = vrot.slane %v451_v19, %v1640_v28  ;;  %v854_v4 = vrot.slane %v460_v33, %v1650_v10  ;;  %v845_v28 = vsel %vm561_vm3, %v844_v8, %v840_v25 }
 0x106   :  { %v362_v34 = vpop.xlane.xlu1 %361  ;;  %v820_v59 = vrot.slane %v453_v22, %v1665_v62  ;;  %v850_v14 = vsel %vm568_vm4, %v849_v13, %v845_v28 }
 0x107   :  { %v334_v58 = vpop.xlane.xlu0 %333  ;;  %v454_v41 = vmul.f32 0.0051020407, %v362_v34  ;;  %v811_v5 = vsel %vm568_vm4, %v810_v15, %v806_v11  ;;  %v855_v37 = vsel %vm575_vm5, %v854_v4, %v850_v14 }
 0x108   :  { %v447_v30 = vmul.f32 0.0051020407, %v334_v58  ;;  %v816_v27 = vsel %vm575_vm5, %v815_v49, %v811_v5 }
 0x109   :  { %v825_v17 = vrot.slane %v454_v41, %v1689_v26  ;;  %v821_v29 = vsel %vm582_vm6, %v820_v59, %v816_v27 }
 0x10a   :  { %v791_v52 = vrot.slane %v447_v30, %v1705_v38  ;;  %v366_v1 = vpop.xlane.xlu1 %365 }
 0x10b   :  { %v455_v3 = vmul.f32 0.0051020407, %v366_v1  ;;  %v390_v7 = vpop.xlane.xlu0 %389  ;;  %v826_v10 = vsel %vm589_vm7, %v825_v17, %v821_v29 }
 0x10c   :  { %v792_v9 = vsel %vm596_vm8, %v791_v52, %v787_v42  ;;  %v461_v2 = vmul.f32 0.0051020407, %v390_v7 }
 0x10d   :  { %v880_v61 = vsel %vm879_vm13, %v792_v9, %v878_v55  ;;  %v830_v20 = vrot.slane %v455_v3, %v1705_v38 }
 0x10e   :  { %v398_v0 = vpop.xlane.xlu1 %397  ;;  %v859_v60 = vrot.slane %v461_v2, %v1665_v62 }
 0x10f   :  { %v394_v16 = vpop.xlane.xlu0 %393  ;;  %v463_v31 = vmul.f32 0.0051020407, %v398_v0  ;;  %v831_v44 = vsel %vm596_vm8, %v830_v20, %v826_v10 }
 0x110   :  { %v462_v32 = vmul.f32 0.0051020407, %v394_v16  ;;  %v860_v62 = vsel %vm582_vm6, %v859_v60, %v855_v37  ;;  %v882_v47 = vsel %vm881_vm14, %v831_v44, %v880_v61 }
 0x111   :  { %v869_v36 = vrot.slane %v463_v31, %v1705_v38  ;;  %v971_v38 = vld [vmem:[%s1801_s2] ss:$0 sm:$0xff] }
 0x112   :  { %v864_v56 = vrot.slane %v462_v32, %v1689_v26 }
 0x114   :  { %v865_v45 = vsel %vm589_vm7, %v864_v56, %v860_v62 }
 0x115   :  { %v870_v46 = vsel %vm596_vm8, %v869_v36, %v865_v45 }
 0x116   :  { %v884_v48 = vsel %vm883_vm15, %v870_v46, %v882_v47 }
 0x117   :  { %999 = vmatmul.mubr.msk.f32.vlgmr.msra.gmra.mrb[0].mxu0 %vm885_vm0, %v884_v48 }
 0x1ea   :  { %v954_v53 = vpop.f32.mrb[0].mxu0 }
 0x1eb   :  { %v955_v54 = vadd.f32 %v971_v38, %v954_v53  ;;  %v1000_v55 = vpop.f32.mrb[1].mxu0 }
 0x1ed   :  { %v958_v26 = vsub.f32 0.0, %v955_v54 }
 0x1ef   :  { %v959_v63 = vmul.f32 1.442695, %v958_v26 }
 0x1f1   :  { %1016 = vpow2.f32 %v959_v63 }
 0x1fb   :  { %v1017_v18 = vpop.eup %1016 }
 0x1fc   :  { %v961_v19 = vadd.f32 1.0, %v1017_v18 }
 0x1fe   :  { %1018 = vrcp.f32 %v961_v19 }
 0x208   :  { %v1019_v43 = vpop.eup %1018 }
 0x209   :  { %v965_v34 = vsel %vm964_vm1, %v1019_v43, 0.0 }
 0x20a   :  { %966 = vst [vmem:[%s1802_s3] sm:$0xff] %v965_v34 }

</bundles_post_ra>
